<compile_context>
chip_gen: v5e
topology: v5e:2x2
jax: 0.10.0
libtpu: 0.0.40
codegen_flags: <defaults>
</compile_context>

<pallas_src>
import functools
import math

import jax
import jax.numpy as jnp
from jax.experimental import pallas as pl
from jax.experimental.pallas import tpu as pltpu


# ----------------------------- compiler params ------------------------------

def _default_vmem_limit():
    # Parametrize the scoped-VMEM budget from the chip (review: don't hard-cap
    # at 32 MiB on 128-MiB parts; stay well under 64 MiB physical on v7x).
    try:
        cap = pltpu.get_tpu_info().vmem_capacity_bytes
    except Exception:
        cap = 64 * 1024 * 1024
    return int(min(cap * 3 // 4, 96 * 1024 * 1024))


_VMEM_LIMIT = _default_vmem_limit()


def _mosaic_params(n_grid_dims):
    return pltpu.CompilerParams(
        dimension_semantics=("parallel",) * n_grid_dims,
        vmem_limit_bytes=_VMEM_LIMIT,
    )


# ----------------------------- tiling helpers -------------------------------

def _row_tile(M, desired=256):
    """Row (sublane) tile: multiple of 8, <= desired; cdiv grids handle ragged M."""
    if M >= desired:
        return desired
    return ((M + 7) // 8) * 8


def _col_tile(N, desired=512):
    """Column (lane) tile: full N when small, else a 128-multiple tile."""
    return N if N <= desired else desired


# ----------------------------- Pallas kernels ------------------------------

def _ln_qkv_kernel(x_ref, g_ref, b_ref, w_ref, wb_ref, q_ref, k_ref, v_ref, *, eps):
    """Fused LayerNorm + QKV projection: one (tm,E)x(E,3E) matmul, 3 outputs."""
    x = x_ref[...].astype(jnp.float32)                     # LN math in f32
    mean = jnp.mean(x, axis=-1, keepdims=True)
    xc = x - mean
    var = jnp.mean(xc * xc, axis=-1, keepdims=True)
    h = xc * jax.lax.rsqrt(var + eps) * g_ref[...] + b_ref[...]
    y = jnp.dot(h.astype(w_ref.dtype), w_ref[...],
                preferred_element_type=jnp.float32) + wb_ref[...]
    # NOTE: at real ESM sizes E is a multiple of 128, so these lane slices are
    # 128-aligned and the stores stay unmasked / lane-dense.
    E = q_ref.shape[-1]
    q_ref[...] = y[:, :E].astype(q_ref.dtype)
    k_ref[...] = y[:, E:2 * E].astype(k_ref.dtype)
    v_ref[...] = y[:, 2 * E:3 * E].astype(v_ref.dtype)


def _ln_matmul_kernel(x_ref, g_ref, b_ref, w_ref, wb_ref, o_ref, *, eps, activation):
    """Fused LayerNorm + Linear(N-tile) (+ optional tanh-GELU)."""
    x = x_ref[...].astype(jnp.float32)
    mean = jnp.mean(x, axis=-1, keepdims=True)
    xc = x - mean
    var = jnp.mean(xc * xc, axis=-1, keepdims=True)
    h = xc * jax.lax.rsqrt(var + eps) * g_ref[...] + b_ref[...]
    y = jnp.dot(h.astype(w_ref.dtype), w_ref[...],
                preferred_element_type=jnp.float32) + wb_ref[...]
    if activation == "gelu_tanh":
        c = math.sqrt(2.0 / math.pi)
        y = 0.5 * y * (1.0 + jnp.tanh(c * (y + 0.044715 * y * y * y)))
    o_ref[...] = y.astype(o_ref.dtype)


def _matmul_residual_kernel(x_ref, w_ref, wb_ref, res_ref, o_ref):
    """Linear(N-tile) + bias + fused residual add."""
    x = x_ref[...].astype(w_ref.dtype)
    y = jnp.dot(x, w_ref[...], preferred_element_type=jnp.float32) + wb_ref[...]
    y = y + res_ref[...].astype(jnp.float32)
    o_ref[...] = y.astype(o_ref.dtype)


def _layernorm_kernel(x_ref, g_ref, b_ref, o_ref, *, eps):
    x = x_ref[...].astype(jnp.float32)
    mean = jnp.mean(x, axis=-1, keepdims=True)
    xc = x - mean
    var = jnp.mean(xc * xc, axis=-1, keepdims=True)
    y = xc * jax.lax.rsqrt(var + eps)
    o_ref[...] = (y * g_ref[...] + b_ref[...]).astype(o_ref.dtype)


def _attn_kernel(q_ref, k_ref, v_ref, cosq_ref, sinq_ref, cosk_ref, sink_ref,
                 wo_ref, bo_ref, res_ref, o_ref, *, n_head, scale, approx_recip):
    """Rotary + causal attention for one (batch, q-tile) step, all heads
    batched, with the attention out-projection + residual fused in."""
    S = k_ref.shape[1]
    E = k_ref.shape[2]
    tq = q_ref.shape[1]
    e = E // n_head
    q_start = pl.program_id(1) * tq

    q = q_ref[0].astype(jnp.float32)            # (tq, E)
    k = k_ref[0].astype(jnp.float32)            # (S,  E)
    v = v_ref[0].astype(jnp.float32)            # (S,  E)

    def split_heads(x):
        # (T, E) -> (H, T, e): static lane slices consumed immediately by one
        # leading-axis stack (bounds live ranges; no minor-dim reshape).
        return jnp.stack([x[:, h * e:(h + 1) * e] for h in range(n_head)], axis=0)

    qh = split_heads(q)                         # (H, tq, e)
    kh = split_heads(k)                         # (H, S,  e)
    vh = split_heads(v)                         # (H, S,  e)

    def rope(xh, cos, sin):
        # rotate_half's sign is folded into the sin table; the half swap is a
        # single lane rotation by e//2 (XLU slot, no per-head concat copies).
        return xh * cos + pltpu.roll(xh, shift=e // 2, axis=2) * sin

    qh = rope(qh, cosq_ref[...][None], sinq_ref[...][None])
    kh = rope(kh, cosk_ref[...][None], sink_ref[...][None])

    # Batched scores for all heads; causal mask computed once, broadcast.
    s = jnp.einsum("hqd,hkd->hqk", qh, kh,
                   preferred_element_type=jnp.float32) * scale
    row = jax.lax.broadcasted_iota(jnp.int32, (tq, S), 0) + q_start
    col = jax.lax.broadcasted_iota(jnp.int32, (tq, S), 1)
    s = jnp.where((col <= row)[None, :, :], s, -1e30)     # is_causal=True

    s = s - jnp.max(s, axis=-1, keepdims=True)
    p = jnp.exp(s)
    denom = jnp.sum(p, axis=-1, keepdims=True)
    if approx_recip:
        p = p * pl.reciprocal(denom, approx=True)
    else:
        p = p / denom                                       # exact (parity)

    ctx = jnp.einsum("hqk,hkd->hqd", p, vh,
                     preferred_element_type=jnp.float32)    # (H, tq, e)
    y = jnp.concatenate([ctx[h] for h in range(n_head)], axis=-1)  # (tq, E)

    # Fused attention out-projection + bias + residual (saves a y round trip).
    out = jnp.dot(y.astype(wo_ref.dtype), wo_ref[...],
                  preferred_element_type=jnp.float32) + bo_ref[...]
    out = out + res_ref[0].astype(jnp.float32)
    o_ref[0] = out.astype(o_ref.dtype)
    # TODO(synk): flash-style KV tiling (online softmax + block-level causal
    # skip) for production S on v7x.


# ----------------------------- kernel wrappers ------------------------------

def ln_qkv(x2d, gamma, beta, wqkv, bqkv, *, eps=1e-5, tm_desired=256):
    """Fused LN + QKV: (M,E) -> three (M,E) tensors (q, k, v)."""
    M, E = x2d.shape
    N3 = wqkv.shape[1]
    Eo = N3 // 3
    tm = _row_tile(M, tm_desired)
    g2 = gamma.reshape(1, E).astype(jnp.float32)
    b2 = beta.reshape(1, E).astype(jnp.float32)
    wb2 = bqkv.reshape(1, N3).astype(jnp.float32)
    # TODO(synk): N-tile the (E,3E) weight for production ESM sizes on v7x.
    return pl.pallas_call(
        functools.partial(_ln_qkv_kernel, eps=eps),
        out_shape=tuple(jax.ShapeDtypeStruct((M, Eo), x2d.dtype) for _ in range(3)),
        grid_spec=pltpu.PrefetchScalarGridSpec(
            num_scalar_prefetch=0,
            grid=(pl.cdiv(M, tm),),
            in_specs=[
                pl.BlockSpec((tm, E), lambda i: (i, 0)),
                pl.BlockSpec((1, E), lambda i: (0, 0)),
                pl.BlockSpec((1, E), lambda i: (0, 0)),
                pl.BlockSpec((E, N3), lambda i: (0, 0)),     # weight resident
                pl.BlockSpec((1, N3), lambda i: (0, 0)),
            ],
            out_specs=[pl.BlockSpec((tm, Eo), lambda i: (i, 0)) for _ in range(3)],
        ),
        compiler_params=_mosaic_params(1),
    )(x2d, g2, b2, wqkv, wb2)


def ln_matmul(x2d, gamma, beta, w, b, *, activation=None, eps=1e-5,
              tm_desired=256, tn_desired=512):
    """Fused LN + Linear (+GELU), tiled over rows and output columns."""
    M, K = x2d.shape
    N = w.shape[1]
    tm = _row_tile(M, tm_desired)
    tn = _col_tile(N, tn_desired)
    g2 = gamma.reshape(1, K).astype(jnp.float32)
    b2 = beta.reshape(1, K).astype(jnp.float32)
    wb2 = b.reshape(1, N).astype(jnp.float32)
    return pl.pallas_call(
        functools.partial(_ln_matmul_kernel, eps=eps, activation=activation),
        out_shape=jax.ShapeDtypeStruct((M, N), x2d.dtype),
        grid_spec=pltpu.PrefetchScalarGridSpec(
            num_scalar_prefetch=0,
            grid=(pl.cdiv(M, tm), pl.cdiv(N, tn)),
            in_specs=[
                pl.BlockSpec((tm, K), lambda i, j: (i, 0)),
                pl.BlockSpec((1, K), lambda i, j: (0, 0)),
                pl.BlockSpec((1, K), lambda i, j: (0, 0)),
                pl.BlockSpec((K, tn), lambda i, j: (0, j)),   # weight N-tiled
                pl.BlockSpec((1, tn), lambda i, j: (0, j)),
            ],
            out_specs=pl.BlockSpec((tm, tn), lambda i, j: (i, j)),
        ),
        compiler_params=_mosaic_params(2),
    )(x2d, g2, b2, w, wb2)


def matmul_residual(x2d, w, b, res2d, *, tm_desired=256, tn_desired=512):
    """Linear + bias + residual add fused, tiled over rows and output columns."""
    M, K = x2d.shape
    N = w.shape[1]
    tm = _row_tile(M, tm_desired)
    tn = _col_tile(N, tn_desired)
    b2 = b.reshape(1, N).astype(jnp.float32)
    return pl.pallas_call(
        _matmul_residual_kernel,
        out_shape=jax.ShapeDtypeStruct((M, N), x2d.dtype),
        grid_spec=pltpu.PrefetchScalarGridSpec(
            num_scalar_prefetch=0,
            grid=(pl.cdiv(M, tm), pl.cdiv(N, tn)),
            in_specs=[
                pl.BlockSpec((tm, K), lambda i, j: (i, 0)),
                pl.BlockSpec((K, tn), lambda i, j: (0, j)),
                pl.BlockSpec((1, tn), lambda i, j: (0, j)),
                pl.BlockSpec((tm, tn), lambda i, j: (i, j)),
            ],
            out_specs=pl.BlockSpec((tm, tn), lambda i, j: (i, j)),
        ),
        compiler_params=_mosaic_params(2),
    )(x2d, w, b2, res2d)


def layernorm(x2d, gamma, beta, *, eps=1e-5, tm_desired=256):
    M, E = x2d.shape
    tm = _row_tile(M, tm_desired)
    g2 = gamma.reshape(1, E).astype(jnp.float32)
    b2 = beta.reshape(1, E).astype(jnp.float32)
    return pl.pallas_call(
        functools.partial(_layernorm_kernel, eps=eps),
        out_shape=jax.ShapeDtypeStruct((M, E), x2d.dtype),
        grid_spec=pltpu.PrefetchScalarGridSpec(
            num_scalar_prefetch=0,
            grid=(pl.cdiv(M, tm),),
            in_specs=[
                pl.BlockSpec((tm, E), lambda i: (i, 0)),
                pl.BlockSpec((1, E), lambda i: (0, 0)),
                pl.BlockSpec((1, E), lambda i: (0, 0)),
            ],
            out_specs=pl.BlockSpec((tm, E), lambda i: (i, 0)),
        ),
        compiler_params=_mosaic_params(1),
    )(x2d, g2, b2)


def attention_outproj_residual(q, k, v, cos, sin, wo, bo, res, *, n_head,
                               approx_recip=False, tq_desired=128):
    """q,k,v,res: (B,S,E). Returns out_proj(attn(q,k,v)) + bias + res, (B,S,E)."""
    B, S, E = q.shape
    e = E // n_head
    tq = S if S <= tq_desired else tq_desired
    bo2 = bo.reshape(1, E).astype(jnp.float32)
    kernel = functools.partial(_attn_kernel, n_head=n_head,
                               scale=1.0 / math.sqrt(e),
                               approx_recip=approx_recip)
    return pl.pallas_call(
        kernel,
        out_shape=jax.ShapeDtypeStruct((B, S, E), q.dtype),
        grid_spec=pltpu.PrefetchScalarGridSpec(
            num_scalar_prefetch=0,
            grid=(B, pl.cdiv(S, tq)),
            in_specs=[
                pl.BlockSpec((1, tq, E), lambda b, i: (b, i, 0)),   # q tile
                pl.BlockSpec((1, S, E), lambda b, i: (b, 0, 0)),    # full K
                pl.BlockSpec((1, S, E), lambda b, i: (b, 0, 0)),    # full V
                pl.BlockSpec((tq, e), lambda b, i: (i, 0)),         # cos (q rows)
                pl.BlockSpec((tq, e), lambda b, i: (i, 0)),         # sin (q rows)
                pl.BlockSpec((S, e), lambda b, i: (0, 0)),          # cos (k rows)
                pl.BlockSpec((S, e), lambda b, i: (0, 0)),          # sin (k rows)
                pl.BlockSpec((E, E), lambda b, i: (0, 0)),          # wo resident
                pl.BlockSpec((1, E), lambda b, i: (0, 0)),          # bo
                pl.BlockSpec((1, tq, E), lambda b, i: (b, i, 0)),   # residual
            ],
            out_specs=pl.BlockSpec((1, tq, E), lambda b, i: (b, i, 0)),
        ),
        compiler_params=_mosaic_params(2),
    )(q, k, v, cos, sin, cos, sin, wo, bo2, res)


# ------------------------------ Model (glue) --------------------------------

def rotary_tables(seq_len, dim):
    """ESM rotary cos/sin tables; rotate_half's sign folded into sin."""
    inv_freq = 1.0 / (10000.0 ** (jnp.arange(0, dim, 2, dtype=jnp.float32) / dim))
    t = jnp.arange(seq_len, dtype=jnp.float32)
    freqs = jnp.einsum("s,d->sd", t, inv_freq)              # (S, dim/2)
    emb = jnp.concatenate([freqs, freqs], axis=-1)          # (S, dim)
    cos = jnp.cos(emb)
    sin = jnp.sin(emb)
    sin_signed = jnp.concatenate([-sin[:, : dim // 2], sin[:, dim // 2:]], axis=-1)
    return cos, sin_signed


def init_linear(key, nin, nout):
    kw, kb = jax.random.split(key)
    bound = 1.0 / math.sqrt(nin)
    w = jax.random.uniform(kw, (nin, nout), jnp.float32, -bound, bound)
    b = jax.random.uniform(kb, (nout,), jnp.float32, -bound, bound)
    return w, b


def init_params(key, n_layer, n_embd, hidden_size, param_dtype=jnp.float32):
    # param_dtype=jnp.bfloat16 feeds the MXU natively and halves weight traffic.
    layers = []
    for _ in range(n_layer):
        keys = jax.random.split(key, 7)
        key = keys[0]
        wq, bq = init_linear(keys[1], n_embd, n_embd)
        wk, bk = init_linear(keys[2], n_embd, n_embd)
        wv, bv = init_linear(keys[3], n_embd, n_embd)
        wo, bo = init_linear(keys[4], n_embd, n_embd)
        wi, bi = init_linear(keys[5], n_embd, hidden_size)
        w2, b2 = init_linear(keys[6], hidden_size, n_embd)
        layers.append(dict(
            ln1_g=jnp.ones((n_embd,), jnp.float32), ln1_b=jnp.zeros((n_embd,), jnp.float32),
            # QKV weights pre-concatenated -> one big MXU matmul in the fused kernel.
            wqkv=jnp.concatenate([wq, wk, wv], axis=1).astype(param_dtype),
            bqkv=jnp.concatenate([bq, bk, bv], axis=0),
            wo=wo.astype(param_dtype), bo=bo,
            ln2_g=jnp.ones((n_embd,), jnp.float32), ln2_b=jnp.zeros((n_embd,), jnp.float32),
            wi=wi.astype(param_dtype), bi=bi,
            w2=w2.astype(param_dtype), b2=b2,
        ))
    return dict(
        layers=layers,
        lnf_g=jnp.ones((n_embd,), jnp.float32),
        lnf_b=jnp.zeros((n_embd,), jnp.float32),
    )


def esm_encoder_forward(x, params, n_head, *, activation_dtype=None,
                        approx_softmax_recip=False):
    # x: (B, S, E); attention_mask is None (causal attention), dropout p=0.0.
    # activation_dtype=jnp.bfloat16 halves inter-kernel HBM traffic (v5e win);
    # LN / softmax / accumulation math stays f32 in-kernel regardless.
    B, S, E = x.shape
    e = E // n_head
    cos, sin = rotary_tables(S, e)
    act_dtype = x.dtype if activation_dtype is None else activation_dtype
    x2 = x.reshape(B * S, E).astype(act_dtype)

    for lp in params["layers"]:
        # --- ESMAttn: fused pre-LN + QKV projection ---
        q2, k2, v2 = ln_qkv(x2, lp["ln1_g"], lp["ln1_b"], lp["wqkv"], lp["bqkv"])
        # attention (rotary + causal) with out-projection + residual fused in
        attn_out = attention_outproj_residual(
            q2.reshape(B, S, E), k2.reshape(B, S, E), v2.reshape(B, S, E),
            cos, sin, lp["wo"], lp["bo"], x2.reshape(B, S, E),
            n_head=n_head, approx_recip=approx_softmax_recip)
        attn2 = attn_out.reshape(B * S, E)

        # --- MLP block: fused LN2 + intermediate + GELU, then out-proj + residual ---
        inter = ln_matmul(attn2, lp["ln2_g"], lp["ln2_b"], lp["wi"], lp["bi"],
                          activation="gelu_tanh")
        x2 = matmul_residual(inter, lp["w2"], lp["b2"], attn2)

    xf = layernorm(x2, params["lnf_g"], params["lnf_b"])
    return xf.reshape(B, S, E).astype(x.dtype)


# TODO(synk): explicit (non-None) attention_mask is not supported; the PyTorch
# reference would error when combining attn_mask with is_causal=True anyway.

if __name__ == "__main__":
    # Small config: n_layer=2, n_embd=32, n_head=4 (head_dim=8), hidden_size=64,
    # batch=2, seq=8.
    B, S, E, H, HIDDEN, NLAYER = 2, 8, 32, 4, 64, 2

    key = jax.random.PRNGKey(0)
    kx, kp = jax.random.split(key)
    x = jax.random.normal(kx, (B, S, E), jnp.float32)
    params = init_params(kp, NLAYER, E, HIDDEN)

    fwd = jax.jit(functools.partial(esm_encoder_forward, n_head=H))
    out = fwd(x, params)
    jax.block_until_ready(out)
    assert out.shape == (B, S, E)
    print("KERNEL_OK")
</pallas_src>

<mosaic_0001>
module attributes {stable_mosaic.version = 11 : i64} {
  func.func @_matmul_residual_kernel(%arg0: i32, %arg1: i32, %arg2: memref<16x64xf32, #tpu.memory_space<vmem>>, %arg3: memref<64x32xf32, #tpu.memory_space<vmem>>, %arg4: memref<1x32xf32, #tpu.memory_space<vmem>>, %arg5: memref<16x32xf32, #tpu.memory_space<vmem>>, %arg6: memref<16x32xf32, #tpu.memory_space<vmem>>) attributes {dimension_semantics = [#tpu.dimension_semantics<parallel>, #tpu.dimension_semantics<parallel>], iteration_bounds = array<i64: 1, 1>, scalar_prefetch = 0 : i64, scratch_operands = 0 : i64, tpu.core_type = #tpu.core_type<tc>, window_params = [{transform_indices = @transform_0, window_bounds = array<i64: 16, 64>}, {transform_indices = @transform_1, window_bounds = array<i64: 64, 32>}, {transform_indices = @transform_2, window_bounds = array<i64: 1, 32>}, {transform_indices = @transform_3, window_bounds = array<i64: 16, 32>}, {transform_indices = @transform_4, window_bounds = array<i64: 16, 32>}]} {
    %c0 = arith.constant 0 : index
    %c0_0 = arith.constant 0 : index
    %0 = vector.load %arg2[%c0, %c0_0] : memref<16x64xf32, #tpu.memory_space<vmem>>, vector<16x64xf32>
    %c0_1 = arith.constant 0 : index
    %c0_2 = arith.constant 0 : index
    %1 = vector.load %arg3[%c0_1, %c0_2] : memref<64x32xf32, #tpu.memory_space<vmem>>, vector<64x32xf32>
    %cst = arith.constant dense<0.000000e+00> : vector<16x32xf32>
    %2 = tpu.matmul %0, %1, %cst {dimension_numbers = #tpu.dot_dimension_numbers<[1], [0], [0], [1], [0, 0, 1, 1], [], []>} : vector<16x64xf32>, vector<64x32xf32>, vector<16x32xf32> -> vector<16x32xf32>
    %c0_3 = arith.constant 0 : index
    %c0_4 = arith.constant 0 : index
    %3 = vector.load %arg4[%c0_3, %c0_4] : memref<1x32xf32, #tpu.memory_space<vmem>>, vector<1x32xf32>
    %4 = vector.broadcast %3 : vector<1x32xf32> to vector<16x32xf32>
    %5 = arith.addf %2, %4 : vector<16x32xf32>
    %c0_5 = arith.constant 0 : index
    %c0_6 = arith.constant 0 : index
    %6 = vector.load %arg5[%c0_5, %c0_6] : memref<16x32xf32, #tpu.memory_space<vmem>>, vector<16x32xf32>
    %7 = arith.addf %5, %6 : vector<16x32xf32>
    %c0_7 = arith.constant 0 : index
    %c0_8 = arith.constant 0 : index
    %8 = vector.load %arg6[%c0_7, %c0_8] : memref<16x32xf32, #tpu.memory_space<vmem>>, vector<16x32xf32>
    tpu.vector_store %arg6[%c0_7, %c0_8], %7 {strides = array<i32>} : memref<16x32xf32, #tpu.memory_space<vmem>>, vector<16x32xf32>,
    return
  }
  func.func @transform_0(%arg0: i32, %arg1: i32) -> (i32, i32) {
    %c0_i32 = arith.constant 0 : i32
    %c0_i32_0 = arith.constant 0 : i32
    return %arg0, %c0_i32 : i32, i32
  }
  func.func @transform_1(%arg0: i32, %arg1: i32) -> (i32, i32) {
    %c0_i32 = arith.constant 0 : i32
    %c0_i32_0 = arith.constant 0 : i32
    return %c0_i32, %arg1 : i32, i32
  }
  func.func @transform_2(%arg0: i32, %arg1: i32) -> (i32, i32) {
    %c0_i32 = arith.constant 0 : i32
    %c0_i32_0 = arith.constant 0 : i32
    return %c0_i32, %arg1 : i32, i32
  }
  func.func @transform_3(%arg0: i32, %arg1: i32) -> (i32, i32) {
    %c0_i32 = arith.constant 0 : i32
    return %arg0, %arg1 : i32, i32
  }
  func.func @transform_4(%arg0: i32, %arg1: i32) -> (i32, i32) {
    %c0_i32 = arith.constant 0 : i32
    return %arg0, %arg1 : i32, i32
  }
}

module attributes {stable_mosaic.version = 11 : i64} {
  func.func @_ln_qkv_kernel(%arg0: i32, %arg1: memref<16x32xf32, #tpu.memory_space<vmem>>, %arg2: memref<1x32xf32, #tpu.memory_space<vmem>>, %arg3: memref<1x32xf32, #tpu.memory_space<vmem>>, %arg4: memref<32x96xf32, #tpu.memory_space<vmem>>, %arg5: memref<1x96xf32, #tpu.memory_space<vmem>>, %arg6: memref<16x32xf32, #tpu.memory_space<vmem>>, %arg7: memref<16x32xf32, #tpu.memory_space<vmem>>, %arg8: memref<16x32xf32, #tpu.memory_space<vmem>>) attributes {dimension_semantics = [#tpu.dimension_semantics<parallel>], iteration_bounds = array<i64: 1>, scalar_prefetch = 0 : i64, scratch_operands = 0 : i64, tpu.core_type = #tpu.core_type<tc>, window_params = [{transform_indices = @transform_0, window_bounds = array<i64: 16, 32>}, {pipeline_mode = #tpu.pipeline_mode<synchronous>, transform_indices = @transform_1, window_bounds = array<i64: 1, 32>}, {pipeline_mode = #tpu.pipeline_mode<synchronous>, transform_indices = @transform_2, window_bounds = array<i64: 1, 32>}, {pipeline_mode = #tpu.pipeline_mode<synchronous>, transform_indices = @transform_3, window_bounds = array<i64: 32, 96>}, {pipeline_mode = #tpu.pipeline_mode<synchronous>, transform_indices = @transform_4, window_bounds = array<i64: 1, 96>}, {transform_indices = @transform_5, window_bounds = array<i64: 16, 32>}, {transform_indices = @transform_6, window_bounds = array<i64: 16, 32>}, {transform_indices = @transform_7, window_bounds = array<i64: 16, 32>}]} {
    %c0 = arith.constant 0 : index
    %c0_0 = arith.constant 0 : index
    %0 = vector.load %arg1[%c0, %c0_0] : memref<16x32xf32, #tpu.memory_space<vmem>>, vector<16x32xf32>
    %cst = arith.constant dense<0.000000e+00> : vector<16xf32>
    %1 = vector.multi_reduction <add>, %0, %cst [1] : vector<16x32xf32> to vector<16xf32>
    %2 = vector.shape_cast %1 : vector<16xf32> to vector<16x1xf32>
    %cst_1 = arith.constant 3.200000e+01 : f32
    %3 = vector.broadcast %cst_1 : f32 to vector<16x1xf32>
    %4 = arith.divf %2, %3 : vector<16x1xf32>
    %5 = vector.broadcast %4 : vector<16x1xf32> to vector<16x32xf32>
    %6 = arith.subf %0, %5 : vector<16x32xf32>
    %7 = arith.mulf %6, %6 : vector<16x32xf32>
    %cst_2 = arith.constant dense<0.000000e+00> : vector<16xf32>
    %8 = vector.multi_reduction <add>, %7, %cst_2 [1] : vector<16x32xf32> to vector<16xf32>
    %9 = vector.shape_cast %8 : vector<16xf32> to vector<16x1xf32>
    %cst_3 = arith.constant 3.200000e+01 : f32
    %10 = vector.broadcast %cst_3 : f32 to vector<16x1xf32>
    %11 = arith.divf %9, %10 : vector<16x1xf32>
    %cst_4 = arith.constant 9.99999974E-6 : f32
    %12 = vector.broadcast %cst_4 : f32 to vector<16x1xf32>
    %13 = arith.addf %11, %12 : vector<16x1xf32>
    %14 = math.rsqrt %13 : vector<16x1xf32>
    %15 = vector.broadcast %14 : vector<16x1xf32> to vector<16x32xf32>
    %16 = arith.mulf %6, %15 : vector<16x32xf32>
    %c0_5 = arith.constant 0 : index
    %c0_6 = arith.constant 0 : index
    %17 = vector.load %arg2[%c0_5, %c0_6] : memref<1x32xf32, #tpu.memory_space<vmem>>, vector<1x32xf32>
    %18 = vector.broadcast %17 : vector<1x32xf32> to vector<16x32xf32>
    %19 = arith.mulf %16, %18 : vector<16x32xf32>
    %c0_7 = arith.constant 0 : index
    %c0_8 = arith.constant 0 : index
    %20 = vector.load %arg3[%c0_7, %c0_8] : memref<1x32xf32, #tpu.memory_space<vmem>>, vector<1x32xf32>
    %21 = vector.broadcast %20 : vector<1x32xf32> to vector<16x32xf32>
    %22 = arith.addf %19, %21 : vector<16x32xf32>
    %c0_9 = arith.constant 0 : index
    %c0_10 = arith.constant 0 : index
    %23 = vector.load %arg4[%c0_9, %c0_10] : memref<32x96xf32, #tpu.memory_space<vmem>>, vector<32x96xf32>
    %cst_11 = arith.constant dense<0.000000e+00> : vector<16x96xf32>
    %24 = tpu.matmul %22, %23, %cst_11 {dimension_numbers = #tpu.dot_dimension_numbers<[1], [0], [0], [1], [0, 0, 1, 1], [], []>} : vector<16x32xf32>, vector<32x96xf32>, vector<16x96xf32> -> vector<16x96xf32>
    %c0_12 = arith.constant 0 : index
    %c0_13 = arith.constant 0 : index
    %25 = vector.load %arg5[%c0_12, %c0_13] : memref<1x96xf32, #tpu.memory_space<vmem>>, vector<1x96xf32>
    %26 = vector.broadcast %25 : vector<1x96xf32> to vector<16x96xf32>
    %27 = arith.addf %24, %26 : vector<16x96xf32>
    %28 = vector.extract_strided_slice %27 {offsets = [0, 0], sizes = [16, 32], strides = [1, 1]} : vector<16x96xf32> to vector<16x32xf32>
    %c0_14 = arith.constant 0 : index
    %c0_15 = arith.constant 0 : index
    %29 = vector.load %arg6[%c0_14, %c0_15] : memref<16x32xf32, #tpu.memory_space<vmem>>, vector<16x32xf32>
    tpu.vector_store %arg6[%c0_14, %c0_15], %28 {strides = array<i32>} : memref<16x32xf32, #tpu.memory_space<vmem>>, vector<16x32xf32>,
    %30 = vector.extract_strided_slice %27 {offsets = [0, 32], sizes = [16, 32], strides = [1, 1]} : vector<16x96xf32> to vector<16x32xf32>
    %c0_16 = arith.constant 0 : index
    %c0_17 = arith.constant 0 : index
    %31 = vector.load %arg7[%c0_16, %c0_17] : memref<16x32xf32, #tpu.memory_space<vmem>>, vector<16x32xf32>
    tpu.vector_store %arg7[%c0_16, %c0_17], %30 {strides = array<i32>} : memref<16x32xf32, #tpu.memory_space<vmem>>, vector<16x32xf32>,
    %32 = vector.extract_strided_slice %27 {offsets = [0, 64], sizes = [16, 32], strides = [1, 1]} : vector<16x96xf32> to vector<16x32xf32>
    %c0_18 = arith.constant 0 : index
    %c0_19 = arith.constant 0 : index
    %33 = vector.load %arg8[%c0_18, %c0_19] : memref<16x32xf32, #tpu.memory_space<vmem>>, vector<16x32xf32>
    tpu.vector_store %arg8[%c0_18, %c0_19], %32 {strides = array<i32>} : memref<16x32xf32, #tpu.memory_space<vmem>>, vector<16x32xf32>,
    return
  }
  func.func @transform_0(%arg0: i32) -> (i32, i32) {
    %c0_i32 = arith.constant 0 : i32
    %c0_i32_0 = arith.constant 0 : i32
    return %arg0, %c0_i32 : i32, i32
  }
  func.func @transform_1(%arg0: i32) -> (i32, i32) {
    %c0_i32 = arith.constant 0 : i32
    %c0_i32_0 = arith.constant 0 : i32
    %c0_i32_1 = arith.constant 0 : i32
    return %c0_i32, %c0_i32_0 : i32, i32
  }
  func.func @transform_2(%arg0: i32) -> (i32, i32) {
    %c0_i32 = arith.constant 0 : i32
    %c0_i32_0 = arith.constant 0 : i32
    %c0_i32_1 = arith.constant 0 : i32
    return %c0_i32, %c0_i32_0 : i32, i32
  }
  func.func @transform_3(%arg0: i32) -> (i32, i32) {
    %c0_i32 = arith.constant 0 : i32
    %c0_i32_0 = arith.constant 0 : i32
    %c0_i32_1 = arith.constant 0 : i32
    return %c0_i32, %c0_i32_0 : i32, i32
  }
  func.func @transform_4(%arg0: i32) -> (i32, i32) {
    %c0_i32 = arith.constant 0 : i32
    %c0_i32_0 = arith.constant 0 : i32
    %c0_i32_1 = arith.constant 0 : i32
    return %c0_i32, %c0_i32_0 : i32, i32
  }
  func.func @transform_5(%arg0: i32) -> (i32, i32) {
    %c0_i32 = arith.constant 0 : i32
    %c0_i32_0 = arith.constant 0 : i32
    return %arg0, %c0_i32 : i32, i32
  }
  func.func @transform_6(%arg0: i32) -> (i32, i32) {
    %c0_i32 = arith.constant 0 : i32
    %c0_i32_0 = arith.constant 0 : i32
    return %arg0, %c0_i32 : i32, i32
  }
  func.func @transform_7(%arg0: i32) -> (i32, i32) {
    %c0_i32 = arith.constant 0 : i32
    %c0_i32_0 = arith.constant 0 : i32
    return %arg0, %c0_i32 : i32, i32
  }
}

module attributes {stable_mosaic.version = 11 : i64} {
  func.func @_attn_kernel(%arg0: i32, %arg1: i32, %arg2: memref<1x8x32xf32, #tpu.memory_space<vmem>>, %arg3: memref<1x8x32xf32, #tpu.memory_space<vmem>>, %arg4: memref<1x8x32xf32, #tpu.memory_space<vmem>>, %arg5: memref<8x8xf32, #tpu.memory_space<vmem>>, %arg6: memref<8x8xf32, #tpu.memory_space<vmem>>, %arg7: memref<8x8xf32, #tpu.memory_space<vmem>>, %arg8: memref<8x8xf32, #tpu.memory_space<vmem>>, %arg9: memref<32x32xf32, #tpu.memory_space<vmem>>, %arg10: memref<1x32xf32, #tpu.memory_space<vmem>>, %arg11: memref<1x8x32xf32, #tpu.memory_space<vmem>>, %arg12: memref<1x8x32xf32, #tpu.memory_space<vmem>>) attributes {dimension_semantics = [#tpu.dimension_semantics<parallel>, #tpu.dimension_semantics<parallel>], iteration_bounds = array<i64: 2, 1>, scalar_prefetch = 0 : i64, scratch_operands = 0 : i64, tpu.core_type = #tpu.core_type<tc>, window_params = [{transform_indices = @transform_0, window_bounds = array<i64: 1, 8, 32>}, {transform_indices = @transform_1, window_bounds = array<i64: 1, 8, 32>}, {transform_indices = @transform_2, window_bounds = array<i64: 1, 8, 32>}, {transform_indices = @transform_3, window_bounds = array<i64: 8, 8>}, {transform_indices = @transform_4, window_bounds = array<i64: 8, 8>}, {pipeline_mode = #tpu.pipeline_mode<synchronous>, transform_indices = @transform_5, window_bounds = array<i64: 8, 8>}, {pipeline_mode = #tpu.pipeline_mode<synchronous>, transform_indices = @transform_6, window_bounds = array<i64: 8, 8>}, {pipeline_mode = #tpu.pipeline_mode<synchronous>, transform_indices = @transform_7, window_bounds = array<i64: 32, 32>}, {pipeline_mode = #tpu.pipeline_mode<synchronous>, transform_indices = @transform_8, window_bounds = array<i64: 1, 32>}, {transform_indices = @transform_9, window_bounds = array<i64: 1, 8, 32>}, {transform_indices = @transform_10, window_bounds = array<i64: 1, 8, 32>}]} {
    %c8_i32 = arith.constant 8 : i32
    %0 = arith.muli %arg1, %c8_i32 : i32
    %c0 = arith.constant 0 : index
    %c0_0 = arith.constant 0 : index
    %c0_1 = arith.constant 0 : index
    %1 = vector.load %arg2[%c0, %c0_0, %c0_1] : memref<1x8x32xf32, #tpu.memory_space<vmem>>, vector<1x8x32xf32>
    %2 = vector.shape_cast %1 : vector<1x8x32xf32> to vector<8x32xf32>
    %c0_2 = arith.constant 0 : index
    %c0_3 = arith.constant 0 : index
    %c0_4 = arith.constant 0 : index
    %3 = vector.load %arg3[%c0_2, %c0_3, %c0_4] : memref<1x8x32xf32, #tpu.memory_space<vmem>>, vector<1x8x32xf32>
    %4 = vector.shape_cast %3 : vector<1x8x32xf32> to vector<8x32xf32>
    %c0_5 = arith.constant 0 : index
    %c0_6 = arith.constant 0 : index
    %c0_7 = arith.constant 0 : index
    %5 = vector.load %arg4[%c0_5, %c0_6, %c0_7] : memref<1x8x32xf32, #tpu.memory_space<vmem>>, vector<1x8x32xf32>
    %6 = vector.shape_cast %5 : vector<1x8x32xf32> to vector<8x32xf32>
    %7 = vector.extract_strided_slice %2 {offsets = [0, 0], sizes = [8, 8], strides = [1, 1]} : vector<8x32xf32> to vector<8x8xf32>
    %8 = vector.extract_strided_slice %2 {offsets = [0, 8], sizes = [8, 8], strides = [1, 1]} : vector<8x32xf32> to vector<8x8xf32>
    %9 = vector.extract_strided_slice %2 {offsets = [0, 16], sizes = [8, 8], strides = [1, 1]} : vector<8x32xf32> to vector<8x8xf32>
    %10 = vector.extract_strided_slice %2 {offsets = [0, 24], sizes = [8, 8], strides = [1, 1]} : vector<8x32xf32> to vector<8x8xf32>
    %11 = vector.shape_cast %7 : vector<8x8xf32> to vector<1x8x8xf32>
    %12 = vector.shape_cast %8 : vector<8x8xf32> to vector<1x8x8xf32>
    %13 = vector.shape_cast %9 : vector<8x8xf32> to vector<1x8x8xf32>
    %14 = vector.shape_cast %10 : vector<8x8xf32> to vector<1x8x8xf32>
    %15 = tpu.concatenate %11, %12, %13, %14 in 0 : vector<1x8x8xf32>, vector<1x8x8xf32>, vector<1x8x8xf32>, vector<1x8x8xf32> -> vector<4x8x8xf32>
    %16 = vector.extract_strided_slice %4 {offsets = [0, 0], sizes = [8, 8], strides = [1, 1]} : vector<8x32xf32> to vector<8x8xf32>
    %17 = vector.extract_strided_slice %4 {offsets = [0, 8], sizes = [8, 8], strides = [1, 1]} : vector<8x32xf32> to vector<8x8xf32>
    %18 = vector.extract_strided_slice %4 {offsets = [0, 16], sizes = [8, 8], strides = [1, 1]} : vector<8x32xf32> to vector<8x8xf32>
    %19 = vector.extract_strided_slice %4 {offsets = [0, 24], sizes = [8, 8], strides = [1, 1]} : vector<8x32xf32> to vector<8x8xf32>
    %20 = vector.shape_cast %16 : vector<8x8xf32> to vector<1x8x8xf32>
    %21 = vector.shape_cast %17 : vector<8x8xf32> to vector<1x8x8xf32>
    %22 = vector.shape_cast %18 : vector<8x8xf32> to vector<1x8x8xf32>
    %23 = vector.shape_cast %19 : vector<8x8xf32> to vector<1x8x8xf32>
    %24 = tpu.concatenate %20, %21, %22, %23 in 0 : vector<1x8x8xf32>, vector<1x8x8xf32>, vector<1x8x8xf32>, vector<1x8x8xf32> -> vector<4x8x8xf32>
    %25 = vector.extract_strided_slice %6 {offsets = [0, 0], sizes = [8, 8], strides = [1, 1]} : vector<8x32xf32> to vector<8x8xf32>
    %26 = vector.extract_strided_slice %6 {offsets = [0, 8], sizes = [8, 8], strides = [1, 1]} : vector<8x32xf32> to vector<8x8xf32>
    %27 = vector.extract_strided_slice %6 {offsets = [0, 16], sizes = [8, 8], strides = [1, 1]} : vector<8x32xf32> to vector<8x8xf32>
    %28 = vector.extract_strided_slice %6 {offsets = [0, 24], sizes = [8, 8], strides = [1, 1]} : vector<8x32xf32> to vector<8x8xf32>
    %29 = vector.shape_cast %25 : vector<8x8xf32> to vector<1x8x8xf32>
    %30 = vector.shape_cast %26 : vector<8x8xf32> to vector<1x8x8xf32>
    %31 = vector.shape_cast %27 : vector<8x8xf32> to vector<1x8x8xf32>
    %32 = vector.shape_cast %28 : vector<8x8xf32> to vector<1x8x8xf32>
    %33 = tpu.concatenate %29, %30, %31, %32 in 0 : vector<1x8x8xf32>, vector<1x8x8xf32>, vector<1x8x8xf32>, vector<1x8x8xf32> -> vector<4x8x8xf32>
    %c0_8 = arith.constant 0 : index
    %c0_9 = arith.constant 0 : index
    %34 = vector.load %arg5[%c0_8, %c0_9] : memref<8x8xf32, #tpu.memory_space<vmem>>, vector<8x8xf32>
    %35 = vector.shape_cast %34 : vector<8x8xf32> to vector<1x8x8xf32>
    %c0_10 = arith.constant 0 : index
    %c0_11 = arith.constant 0 : index
    %36 = vector.load %arg6[%c0_10, %c0_11] : memref<8x8xf32, #tpu.memory_space<vmem>>, vector<8x8xf32>
    %37 = vector.shape_cast %36 : vector<8x8xf32> to vector<1x8x8xf32>
    %38 = vector.broadcast %35 : vector<1x8x8xf32> to vector<4x8x8xf32>
    %39 = arith.mulf %15, %38 : vector<4x8x8xf32>
    %c4_i32 = arith.constant 4 : i32
    %40 = tpu.dynamic_rotate %15 by %c4_i32 dim 2 : vector<4x8x8xf32>, i32 -> vector<4x8x8xf32>
    %41 = vector.broadcast %37 : vector<1x8x8xf32> to vector<4x8x8xf32>
    %42 = arith.mulf %40, %41 : vector<4x8x8xf32>
    %43 = arith.addf %39, %42 : vector<4x8x8xf32>
    %c0_12 = arith.constant 0 : index
    %c0_13 = arith.constant 0 : index
    %44 = vector.load %arg7[%c0_12, %c0_13] : memref<8x8xf32, #tpu.memory_space<vmem>>, vector<8x8xf32>
    %45 = vector.shape_cast %44 : vector<8x8xf32> to vector<1x8x8xf32>
    %c0_14 = arith.constant 0 : index
    %c0_15 = arith.constant 0 : index
    %46 = vector.load %arg8[%c0_14, %c0_15] : memref<8x8xf32, #tpu.memory_space<vmem>>, vector<8x8xf32>
    %47 = vector.shape_cast %46 : vector<8x8xf32> to vector<1x8x8xf32>
    %48 = vector.broadcast %45 : vector<1x8x8xf32> to vector<4x8x8xf32>
    %49 = arith.mulf %24, %48 : vector<4x8x8xf32>
    %c4_i32_16 = arith.constant 4 : i32
    %50 = tpu.dynamic_rotate %24 by %c4_i32_16 dim 2 : vector<4x8x8xf32>, i32 -> vector<4x8x8xf32>
    %51 = vector.broadcast %47 : vector<1x8x8xf32> to vector<4x8x8xf32>
    %52 = arith.mulf %50, %51 : vector<4x8x8xf32>
    %53 = arith.addf %49, %52 : vector<4x8x8xf32>
    "tpu.trace_start"() <{level = 10 : i32, message = "hqd,hkd->hqk"}> : () -> ()
    %cst = arith.constant dense<0.000000e+00> : vector<4x8x8xf32>
    %54 = tpu.matmul %43, %53, %cst {dimension_numbers = #tpu.dot_dimension_numbers<[2], [2], [1], [1], [0, 0, 0, 1, 1, 1], [0], [0]>} : vector<4x8x8xf32>, vector<4x8x8xf32>, vector<4x8x8xf32> -> vector<4x8x8xf32>
    "tpu.trace_stop"() : () -> ()
    %cst_17 = arith.constant 0.353553385 : f32
    %55 = vector.broadcast %cst_17 : f32 to vector<4x8x8xf32>
    %56 = arith.mulf %54, %55 : vector<4x8x8xf32>
    %57 = tpu.iota {dimensions = array<i32: 0>} : vector<8x8xi32>
    %58 = vector.broadcast %0 : i32 to vector<8x8xi32>
    %59 = arith.addi %57, %58 : vector<8x8xi32>
    %60 = tpu.iota {dimensions = array<i32: 1>} : vector<8x8xi32>
    %61 = arith.cmpi sle, %60, %59 : vector<8x8xi32>
    %62 = vector.shape_cast %61 : vector<8x8xi1> to vector<1x8x8xi1>
    %cst_18 = arith.constant -1.000000e+30 : f32
    %63 = vector.shape_cast %62 : vector<1x8x8xi1> to vector<1x8x8xi1>
    %64 = vector.broadcast %63 : vector<1x8x8xi1> to vector<4x8x8xi1>
    %65 = vector.broadcast %cst_18 : f32 to vector<4x8x8xf32>
    %66 = arith.select %64, %56, %65 : vector<4x8x8xi1>, vector<4x8x8xf32>
    %cst_19 = arith.constant dense<0xFF800000> : vector<4x8xf32>
    %67 = vector.multi_reduction <maximumf>, %66, %cst_19 [2] : vector<4x8x8xf32> to vector<4x8xf32>
    %68 = vector.shape_cast %67 : vector<4x8xf32> to vector<4x8x1xf32>
    %69 = vector.broadcast %68 : vector<4x8x1xf32> to vector<4x8x8xf32>
    %70 = arith.subf %66, %69 : vector<4x8x8xf32>
    %71 = math.exp %70 : vector<4x8x8xf32>
    %cst_20 = arith.constant dense<0.000000e+00> : vector<4x8xf32>
    %72 = vector.multi_reduction <add>, %71, %cst_20 [2] : vector<4x8x8xf32> to vector<4x8xf32>
    %73 = vector.shape_cast %72 : vector<4x8xf32> to vector<4x8x1xf32>
    %74 = vector.broadcast %73 : vector<4x8x1xf32> to vector<4x8x8xf32>
    %75 = arith.divf %71, %74 : vector<4x8x8xf32>
    "tpu.trace_start"() <{level = 10 : i32, message = "hqk,hkd->hqd"}> : () -> ()
    %cst_21 = arith.constant dense<0.000000e+00> : vector<4x8x8xf32>
    %76 = tpu.matmul %75, %33, %cst_21 {dimension_numbers = #tpu.dot_dimension_numbers<[2], [1], [1], [2], [0, 0, 0, 1, 1, 2], [0], [0]>} : vector<4x8x8xf32>, vector<4x8x8xf32>, vector<4x8x8xf32> -> vector<4x8x8xf32>
    "tpu.trace_stop"() : () -> ()
    %77 = vector.extract_strided_slice %76 {offsets = [0, 0, 0], sizes = [1, 8, 8], strides = [1, 1, 1]} : vector<4x8x8xf32> to vector<1x8x8xf32>
    %78 = vector.shape_cast %77 : vector<1x8x8xf32> to vector<8x8xf32>
    %79 = vector.extract_strided_slice %76 {offsets = [1, 0, 0], sizes = [1, 8, 8], strides = [1, 1, 1]} : vector<4x8x8xf32> to vector<1x8x8xf32>
    %80 = vector.shape_cast %79 : vector<1x8x8xf32> to vector<8x8xf32>
    %81 = vector.extract_strided_slice %76 {offsets = [2, 0, 0], sizes = [1, 8, 8], strides = [1, 1, 1]} : vector<4x8x8xf32> to vector<1x8x8xf32>
    %82 = vector.shape_cast %81 : vector<1x8x8xf32> to vector<8x8xf32>
    %83 = vector.extract_strided_slice %76 {offsets = [3, 0, 0], sizes = [1, 8, 8], strides = [1, 1, 1]} : vector<4x8x8xf32> to vector<1x8x8xf32>
    %84 = vector.shape_cast %83 : vector<1x8x8xf32> to vector<8x8xf32>
    %85 = tpu.concatenate %78, %80, %82, %84 in 1 : vector<8x8xf32>, vector<8x8xf32>, vector<8x8xf32>, vector<8x8xf32> -> vector<8x32xf32>
    %c0_22 = arith.constant 0 : index
    %c0_23 = arith.constant 0 : index
    %86 = vector.load %arg9[%c0_22, %c0_23] : memref<32x32xf32, #tpu.memory_space<vmem>>, vector<32x32xf32>
    %cst_24 = arith.constant dense<0.000000e+00> : vector<8x32xf32>
    %87 = tpu.matmul %85, %86, %cst_24 {dimension_numbers = #tpu.dot_dimension_numbers<[1], [0], [0], [1], [0, 0, 1, 1], [], []>} : vector<8x32xf32>, vector<32x32xf32>, vector<8x32xf32> -> vector<8x32xf32>
    %c0_25 = arith.constant 0 : index
    %c0_26 = arith.constant 0 : index
    %88 = vector.load %arg10[%c0_25, %c0_26] : memref<1x32xf32, #tpu.memory_space<vmem>>, vector<1x32xf32>
    %89 = vector.broadcast %88 : vector<1x32xf32> to vector<8x32xf32>
    %90 = arith.addf %87, %89 : vector<8x32xf32>
    %c0_27 = arith.constant 0 : index
    %c0_28 = arith.constant 0 : index
    %c0_29 = arith.constant 0 : index
    %91 = vector.load %arg11[%c0_27, %c0_28, %c0_29] : memref<1x8x32xf32, #tpu.memory_space<vmem>>, vector<1x8x32xf32>
    %92 = vector.shape_cast %91 : vector<1x8x32xf32> to vector<8x32xf32>
    %93 = arith.addf %90, %92 : vector<8x32xf32>
    %c0_30 = arith.constant 0 : index
    %c0_31 = arith.constant 0 : index
    %c0_32 = arith.constant 0 : index
    %94 = vector.load %arg12[%c0_30, %c0_31, %c0_32] : memref<1x8x32xf32, #tpu.memory_space<vmem>>, vector<1x8x32xf32>
    %95 = vector.shape_cast %94 : vector<1x8x32xf32> to vector<8x32xf32>
    %96 = vector.shape_cast %93 : vector<8x32xf32> to vector<1x8x32xf32>
    tpu.vector_store %arg12[%c0_30, %c0_31, %c0_32], %96 {strides = array<i32>} : memref<1x8x32xf32, #tpu.memory_space<vmem>>, vector<1x8x32xf32>,
    return
  }
  func.func @transform_0(%arg0: i32, %arg1: i32) -> (i32, i32, i32) {
    %c0_i32 = arith.constant 0 : i32
    %c0_i32_0 = arith.constant 0 : i32
    return %arg0, %arg1, %c0_i32 : i32, i32, i32
  }
  func.func @transform_1(%arg0: i32, %arg1: i32) -> (i32, i32, i32) {
    %c0_i32 = arith.constant 0 : i32
    %c0_i32_0 = arith.constant 0 : i32
    %c0_i32_1 = arith.constant 0 : i32
    return %arg0, %c0_i32, %c0_i32_0 : i32, i32, i32
  }
  func.func @transform_2(%arg0: i32, %arg1: i32) -> (i32, i32, i32) {
    %c0_i32 = arith.constant 0 : i32
    %c0_i32_0 = arith.constant 0 : i32
    %c0_i32_1 = arith.constant 0 : i32
    return %arg0, %c0_i32, %c0_i32_0 : i32, i32, i32
  }
  func.func @transform_3(%arg0: i32, %arg1: i32) -> (i32, i32) {
    %c0_i32 = arith.constant 0 : i32
    %c0_i32_0 = arith.constant 0 : i32
    return %arg1, %c0_i32 : i32, i32
  }
  func.func @transform_4(%arg0: i32, %arg1: i32) -> (i32, i32) {
    %c0_i32 = arith.constant 0 : i32
    %c0_i32_0 = arith.constant 0 : i32
    return %arg1, %c0_i32 : i32, i32
  }
  func.func @transform_5(%arg0: i32, %arg1: i32) -> (i32, i32) {
    %c0_i32 = arith.constant 0 : i32
    %c0_i32_0 = arith.constant 0 : i32
    %c0_i32_1 = arith.constant 0 : i32
    return %c0_i32, %c0_i32_0 : i32, i32
  }
  func.func @transform_6(%arg0: i32, %arg1: i32) -> (i32, i32) {
    %c0_i32 = arith.constant 0 : i32
    %c0_i32_0 = arith.constant 0 : i32
    %c0_i32_1 = arith.constant 0 : i32
    return %c0_i32, %c0_i32_0 : i32, i32
  }
  func.func @transform_7(%arg0: i32, %arg1: i32) -> (i32, i32) {
    %c0_i32 = arith.constant 0 : i32
    %c0_i32_0 = arith.constant 0 : i32
    %c0_i32_1 = arith.constant 0 : i32
    return %c0_i32, %c0_i32_0 : i32, i32
  }
  func.func @transform_8(%arg0: i32, %arg1: i32) -> (i32, i32) {
    %c0_i32 = arith.constant 0 : i32
    %c0_i32_0 = arith.constant 0 : i32
    %c0_i32_1 = arith.constant 0 : i32
    return %c0_i32, %c0_i32_0 : i32, i32
  }
  func.func @transform_9(%arg0: i32, %arg1: i32) -> (i32, i32, i32) {
    %c0_i32 = arith.constant 0 : i32
    %c0_i32_0 = arith.constant 0 : i32
    return %arg0, %arg1, %c0_i32 : i32, i32, i32
  }
  func.func @transform_10(%arg0: i32, %arg1: i32) -> (i32, i32, i32) {
    %c0_i32 = arith.constant 0 : i32
    %c0_i32_0 = arith.constant 0 : i32
    return %arg0, %arg1, %c0_i32 : i32, i32, i32
  }
}

module attributes {stable_mosaic.version = 11 : i64} {
  func.func @_ln_matmul_kernel(%arg0: i32, %arg1: i32, %arg2: memref<16x32xf32, #tpu.memory_space<vmem>>, %arg3: memref<1x32xf32, #tpu.memory_space<vmem>>, %arg4: memref<1x32xf32, #tpu.memory_space<vmem>>, %arg5: memref<32x64xf32, #tpu.memory_space<vmem>>, %arg6: memref<1x64xf32, #tpu.memory_space<vmem>>, %arg7: memref<16x64xf32, #tpu.memory_space<vmem>>) attributes {dimension_semantics = [#tpu.dimension_semantics<parallel>, #tpu.dimension_semantics<parallel>], iteration_bounds = array<i64: 1, 1>, scalar_prefetch = 0 : i64, scratch_operands = 0 : i64, tpu.core_type = #tpu.core_type<tc>, window_params = [{transform_indices = @transform_0, window_bounds = array<i64: 16, 32>}, {pipeline_mode = #tpu.pipeline_mode<synchronous>, transform_indices = @transform_1, window_bounds = array<i64: 1, 32>}, {pipeline_mode = #tpu.pipeline_mode<synchronous>, transform_indices = @transform_2, window_bounds = array<i64: 1, 32>}, {transform_indices = @transform_3, window_bounds = array<i64: 32, 64>}, {transform_indices = @transform_4, window_bounds = array<i64: 1, 64>}, {transform_indices = @transform_5, window_bounds = array<i64: 16, 64>}]} {
    %c0 = arith.constant 0 : index
    %c0_0 = arith.constant 0 : index
    %0 = vector.load %arg2[%c0, %c0_0] : memref<16x32xf32, #tpu.memory_space<vmem>>, vector<16x32xf32>
    %cst = arith.constant dense<0.000000e+00> : vector<16xf32>
    %1 = vector.multi_reduction <add>, %0, %cst [1] : vector<16x32xf32> to vector<16xf32>
    %2 = vector.shape_cast %1 : vector<16xf32> to vector<16x1xf32>
    %cst_1 = arith.constant 3.200000e+01 : f32
    %3 = vector.broadcast %cst_1 : f32 to vector<16x1xf32>
    %4 = arith.divf %2, %3 : vector<16x1xf32>
    %5 = vector.broadcast %4 : vector<16x1xf32> to vector<16x32xf32>
    %6 = arith.subf %0, %5 : vector<16x32xf32>
    %7 = arith.mulf %6, %6 : vector<16x32xf32>
    %cst_2 = arith.constant dense<0.000000e+00> : vector<16xf32>
    %8 = vector.multi_reduction <add>, %7, %cst_2 [1] : vector<16x32xf32> to vector<16xf32>
    %9 = vector.shape_cast %8 : vector<16xf32> to vector<16x1xf32>
    %cst_3 = arith.constant 3.200000e+01 : f32
    %10 = vector.broadcast %cst_3 : f32 to vector<16x1xf32>
    %11 = arith.divf %9, %10 : vector<16x1xf32>
    %cst_4 = arith.constant 9.99999974E-6 : f32
    %12 = vector.broadcast %cst_4 : f32 to vector<16x1xf32>
    %13 = arith.addf %11, %12 : vector<16x1xf32>
    %14 = math.rsqrt %13 : vector<16x1xf32>
    %15 = vector.broadcast %14 : vector<16x1xf32> to vector<16x32xf32>
    %16 = arith.mulf %6, %15 : vector<16x32xf32>
    %c0_5 = arith.constant 0 : index
    %c0_6 = arith.constant 0 : index
    %17 = vector.load %arg3[%c0_5, %c0_6] : memref<1x32xf32, #tpu.memory_space<vmem>>, vector<1x32xf32>
    %18 = vector.broadcast %17 : vector<1x32xf32> to vector<16x32xf32>
    %19 = arith.mulf %16, %18 : vector<16x32xf32>
    %c0_7 = arith.constant 0 : index
    %c0_8 = arith.constant 0 : index
    %20 = vector.load %arg4[%c0_7, %c0_8] : memref<1x32xf32, #tpu.memory_space<vmem>>, vector<1x32xf32>
    %21 = vector.broadcast %20 : vector<1x32xf32> to vector<16x32xf32>
    %22 = arith.addf %19, %21 : vector<16x32xf32>
    %c0_9 = arith.constant 0 : index
    %c0_10 = arith.constant 0 : index
    %23 = vector.load %arg5[%c0_9, %c0_10] : memref<32x64xf32, #tpu.memory_space<vmem>>, vector<32x64xf32>
    %cst_11 = arith.constant dense<0.000000e+00> : vector<16x64xf32>
    %24 = tpu.matmul %22, %23, %cst_11 {dimension_numbers = #tpu.dot_dimension_numbers<[1], [0], [0], [1], [0, 0, 1, 1], [], []>} : vector<16x32xf32>, vector<32x64xf32>, vector<16x64xf32> -> vector<16x64xf32>
    %c0_12 = arith.constant 0 : index
    %c0_13 = arith.constant 0 : index
    %25 = vector.load %arg6[%c0_12, %c0_13] : memref<1x64xf32, #tpu.memory_space<vmem>>, vector<1x64xf32>
    %26 = vector.broadcast %25 : vector<1x64xf32> to vector<16x64xf32>
    %27 = arith.addf %24, %26 : vector<16x64xf32>
    %cst_14 = arith.constant 5.000000e-01 : f32
    %28 = vector.broadcast %cst_14 : f32 to vector<16x64xf32>
    %29 = arith.mulf %28, %27 : vector<16x64xf32>
    %cst_15 = arith.constant 4.471500e-02 : f32
    %30 = vector.broadcast %cst_15 : f32 to vector<16x64xf32>
    %31 = arith.mulf %30, %27 : vector<16x64xf32>
    %32 = arith.mulf %31, %27 : vector<16x64xf32>
    %33 = arith.mulf %32, %27 : vector<16x64xf32>
    %34 = arith.addf %27, %33 : vector<16x64xf32>
    %cst_16 = arith.constant 0.797884583 : f32
    %35 = vector.broadcast %cst_16 : f32 to vector<16x64xf32>
    %36 = arith.mulf %35, %34 : vector<16x64xf32>
    %37 = math.tanh %36 : vector<16x64xf32>
    %cst_17 = arith.constant 1.000000e+00 : f32
    %38 = vector.broadcast %cst_17 : f32 to vector<16x64xf32>
    %39 = arith.addf %38, %37 : vector<16x64xf32>
    %40 = arith.mulf %29, %39 : vector<16x64xf32>
    %c0_18 = arith.constant 0 : index
    %c0_19 = arith.constant 0 : index
    %41 = vector.load %arg7[%c0_18, %c0_19] : memref<16x64xf32, #tpu.memory_space<vmem>>, vector<16x64xf32>
    tpu.vector_store %arg7[%c0_18, %c0_19], %40 {strides = array<i32>} : memref<16x64xf32, #tpu.memory_space<vmem>>, vector<16x64xf32>,
    return
  }
  func.func @transform_0(%arg0: i32, %arg1: i32) -> (i32, i32) {
    %c0_i32 = arith.constant 0 : i32
    %c0_i32_0 = arith.constant 0 : i32
    return %arg0, %c0_i32 : i32, i32
  }
  func.func @transform_1(%arg0: i32, %arg1: i32) -> (i32, i32) {
    %c0_i32 = arith.constant 0 : i32
    %c0_i32_0 = arith.constant 0 : i32
    %c0_i32_1 = arith.constant 0 : i32
    return %c0_i32, %c0_i32_0 : i32, i32
  }
  func.func @transform_2(%arg0: i32, %arg1: i32) -> (i32, i32) {
    %c0_i32 = arith.constant 0 : i32
    %c0_i32_0 = arith.constant 0 : i32
    %c0_i32_1 = arith.constant 0 : i32
    return %c0_i32, %c0_i32_0 : i32, i32
  }
  func.func @transform_3(%arg0: i32, %arg1: i32) -> (i32, i32) {
    %c0_i32 = arith.constant 0 : i32
    %c0_i32_0 = arith.constant 0 : i32
    return %c0_i32, %arg1 : i32, i32
  }
  func.func @transform_4(%arg0: i32, %arg1: i32) -> (i32, i32) {
    %c0_i32 = arith.constant 0 : i32
    %c0_i32_0 = arith.constant 0 : i32
    return %c0_i32, %arg1 : i32, i32
  }
  func.func @transform_5(%arg0: i32, %arg1: i32) -> (i32, i32) {
    %c0_i32 = arith.constant 0 : i32
    return %arg0, %arg1 : i32, i32
  }
}

module attributes {stable_mosaic.version = 11 : i64} {
  func.func @_attn_kernel(%arg0: i32, %arg1: i32, %arg2: memref<1x8x32xf32, #tpu.memory_space<vmem>>, %arg3: memref<1x8x32xf32, #tpu.memory_space<vmem>>, %arg4: memref<1x8x32xf32, #tpu.memory_space<vmem>>, %arg5: memref<8x8xf32, #tpu.memory_space<vmem>>, %arg6: memref<8x8xf32, #tpu.memory_space<vmem>>, %arg7: memref<8x8xf32, #tpu.memory_space<vmem>>, %arg8: memref<8x8xf32, #tpu.memory_space<vmem>>, %arg9: memref<32x32xf32, #tpu.memory_space<vmem>>, %arg10: memref<1x32xf32, #tpu.memory_space<vmem>>, %arg11: memref<1x8x32xf32, #tpu.memory_space<vmem>>, %arg12: memref<1x8x32xf32, #tpu.memory_space<vmem>>) attributes {dimension_semantics = [#tpu.dimension_semantics<parallel>, #tpu.dimension_semantics<parallel>], iteration_bounds = array<i64: 2, 1>, scalar_prefetch = 0 : i64, scratch_operands = 0 : i64, tpu.core_type = #tpu.core_type<tc>, window_params = [{transform_indices = @transform_0, window_bounds = array<i64: 1, 8, 32>}, {transform_indices = @transform_1, window_bounds = array<i64: 1, 8, 32>}, {transform_indices = @transform_2, window_bounds = array<i64: 1, 8, 32>}, {transform_indices = @transform_3, window_bounds = array<i64: 8, 8>}, {transform_indices = @transform_4, window_bounds = array<i64: 8, 8>}, {pipeline_mode = #tpu.pipeline_mode<synchronous>, transform_indices = @transform_5, window_bounds = array<i64: 8, 8>}, {pipeline_mode = #tpu.pipeline_mode<synchronous>, transform_indices = @transform_6, window_bounds = array<i64: 8, 8>}, {pipeline_mode = #tpu.pipeline_mode<synchronous>, transform_indices = @transform_7, window_bounds = array<i64: 32, 32>}, {pipeline_mode = #tpu.pipeline_mode<synchronous>, transform_indices = @transform_8, window_bounds = array<i64: 1, 32>}, {transform_indices = @transform_9, window_bounds = array<i64: 1, 8, 32>}, {transform_indices = @transform_10, window_bounds = array<i64: 1, 8, 32>}]} {
    %c8_i32 = arith.constant 8 : i32
    %0 = arith.muli %arg1, %c8_i32 : i32
    %c0 = arith.constant 0 : index
    %c0_0 = arith.constant 0 : index
    %c0_1 = arith.constant 0 : index
    %1 = vector.load %arg2[%c0, %c0_0, %c0_1] : memref<1x8x32xf32, #tpu.memory_space<vmem>>, vector<1x8x32xf32>
    %2 = vector.shape_cast %1 : vector<1x8x32xf32> to vector<8x32xf32>
    %c0_2 = arith.constant 0 : index
    %c0_3 = arith.constant 0 : index
    %c0_4 = arith.constant 0 : index
    %3 = vector.load %arg3[%c0_2, %c0_3, %c0_4] : memref<1x8x32xf32, #tpu.memory_space<vmem>>, vector<1x8x32xf32>
    %4 = vector.shape_cast %3 : vector<1x8x32xf32> to vector<8x32xf32>
    %c0_5 = arith.constant 0 : index
    %c0_6 = arith.constant 0 : index
    %c0_7 = arith.constant 0 : index
    %5 = vector.load %arg4[%c0_5, %c0_6, %c0_7] : memref<1x8x32xf32, #tpu.memory_space<vmem>>, vector<1x8x32xf32>
    %6 = vector.shape_cast %5 : vector<1x8x32xf32> to vector<8x32xf32>
    %7 = vector.extract_strided_slice %2 {offsets = [0, 0], sizes = [8, 8], strides = [1, 1]} : vector<8x32xf32> to vector<8x8xf32>
    %8 = vector.extract_strided_slice %2 {offsets = [0, 8], sizes = [8, 8], strides = [1, 1]} : vector<8x32xf32> to vector<8x8xf32>
    %9 = vector.extract_strided_slice %2 {offsets = [0, 16], sizes = [8, 8], strides = [1, 1]} : vector<8x32xf32> to vector<8x8xf32>
    %10 = vector.extract_strided_slice %2 {offsets = [0, 24], sizes = [8, 8], strides = [1, 1]} : vector<8x32xf32> to vector<8x8xf32>
    %11 = vector.shape_cast %7 : vector<8x8xf32> to vector<1x8x8xf32>
    %12 = vector.shape_cast %8 : vector<8x8xf32> to vector<1x8x8xf32>
    %13 = vector.shape_cast %9 : vector<8x8xf32> to vector<1x8x8xf32>
    %14 = vector.shape_cast %10 : vector<8x8xf32> to vector<1x8x8xf32>
    %15 = tpu.concatenate %11, %12, %13, %14 in 0 : vector<1x8x8xf32>, vector<1x8x8xf32>, vector<1x8x8xf32>, vector<1x8x8xf32> -> vector<4x8x8xf32>
    %16 = vector.extract_strided_slice %4 {offsets = [0, 0], sizes = [8, 8], strides = [1, 1]} : vector<8x32xf32> to vector<8x8xf32>
    %17 = vector.extract_strided_slice %4 {offsets = [0, 8], sizes = [8, 8], strides = [1, 1]} : vector<8x32xf32> to vector<8x8xf32>
    %18 = vector.extract_strided_slice %4 {offsets = [0, 16], sizes = [8, 8], strides = [1, 1]} : vector<8x32xf32> to vector<8x8xf32>
    %19 = vector.extract_strided_slice %4 {offsets = [0, 24], sizes = [8, 8], strides = [1, 1]} : vector<8x32xf32> to vector<8x8xf32>
    %20 = vector.shape_cast %16 : vector<8x8xf32> to vector<1x8x8xf32>
    %21 = vector.shape_cast %17 : vector<8x8xf32> to vector<1x8x8xf32>
    %22 = vector.shape_cast %18 : vector<8x8xf32> to vector<1x8x8xf32>
    %23 = vector.shape_cast %19 : vector<8x8xf32> to vector<1x8x8xf32>
    %24 = tpu.concatenate %20, %21, %22, %23 in 0 : vector<1x8x8xf32>, vector<1x8x8xf32>, vector<1x8x8xf32>, vector<1x8x8xf32> -> vector<4x8x8xf32>
    %25 = vector.extract_strided_slice %6 {offsets = [0, 0], sizes = [8, 8], strides = [1, 1]} : vector<8x32xf32> to vector<8x8xf32>
    %26 = vector.extract_strided_slice %6 {offsets = [0, 8], sizes = [8, 8], strides = [1, 1]} : vector<8x32xf32> to vector<8x8xf32>
    %27 = vector.extract_strided_slice %6 {offsets = [0, 16], sizes = [8, 8], strides = [1, 1]} : vector<8x32xf32> to vector<8x8xf32>
    %28 = vector.extract_strided_slice %6 {offsets = [0, 24], sizes = [8, 8], strides = [1, 1]} : vector<8x32xf32> to vector<8x8xf32>
    %29 = vector.shape_cast %25 : vector<8x8xf32> to vector<1x8x8xf32>
    %30 = vector.shape_cast %26 : vector<8x8xf32> to vector<1x8x8xf32>
    %31 = vector.shape_cast %27 : vector<8x8xf32> to vector<1x8x8xf32>
    %32 = vector.shape_cast %28 : vector<8x8xf32> to vector<1x8x8xf32>
    %33 = tpu.concatenate %29, %30, %31, %32 in 0 : vector<1x8x8xf32>, vector<1x8x8xf32>, vector<1x8x8xf32>, vector<1x8x8xf32> -> vector<4x8x8xf32>
    %c0_8 = arith.constant 0 : index
    %c0_9 = arith.constant 0 : index
    %34 = vector.load %arg5[%c0_8, %c0_9] : memref<8x8xf32, #tpu.memory_space<vmem>>, vector<8x8xf32>
    %35 = vector.shape_cast %34 : vector<8x8xf32> to vector<1x8x8xf32>
    %c0_10 = arith.constant 0 : index
    %c0_11 = arith.constant 0 : index
    %36 = vector.load %arg6[%c0_10, %c0_11] : memref<8x8xf32, #tpu.memory_space<vmem>>, vector<8x8xf32>
    %37 = vector.shape_cast %36 : vector<8x8xf32> to vector<1x8x8xf32>
    %38 = vector.broadcast %35 : vector<1x8x8xf32> to vector<4x8x8xf32>
    %39 = arith.mulf %15, %38 : vector<4x8x8xf32>
    %c4_i32 = arith.constant 4 : i32
    %40 = tpu.dynamic_rotate %15 by %c4_i32 dim 2 : vector<4x8x8xf32>, i32 -> vector<4x8x8xf32>
    %41 = vector.broadcast %37 : vector<1x8x8xf32> to vector<4x8x8xf32>
    %42 = arith.mulf %40, %41 : vector<4x8x8xf32>
    %43 = arith.addf %39, %42 : vector<4x8x8xf32>
    %c0_12 = arith.constant 0 : index
    %c0_13 = arith.constant 0 : index
    %44 = vector.load %arg7[%c0_12, %c0_13] : memref<8x8xf32, #tpu.memory_space<vmem>>, vector<8x8xf32>
    %45 = vector.shape_cast %44 : vector<8x8xf32> to vector<1x8x8xf32>
    %c0_14 = arith.constant 0 : index
    %c0_15 = arith.constant 0 : index
    %46 = vector.load %arg8[%c0_14, %c0_15] : memref<8x8xf32, #tpu.memory_space<vmem>>, vector<8x8xf32>
    %47 = vector.shape_cast %46 : vector<8x8xf32> to vector<1x8x8xf32>
    %48 = vector.broadcast %45 : vector<1x8x8xf32> to vector<4x8x8xf32>
    %49 = arith.mulf %24, %48 : vector<4x8x8xf32>
    %c4_i32_16 = arith.constant 4 : i32
    %50 = tpu.dynamic_rotate %24 by %c4_i32_16 dim 2 : vector<4x8x8xf32>, i32 -> vector<4x8x8xf32>
    %51 = vector.broadcast %47 : vector<1x8x8xf32> to vector<4x8x8xf32>
    %52 = arith.mulf %50, %51 : vector<4x8x8xf32>
    %53 = arith.addf %49, %52 : vector<4x8x8xf32>
    "tpu.trace_start"() <{level = 10 : i32, message = "hqd,hkd->hqk"}> : () -> ()
    %cst = arith.constant dense<0.000000e+00> : vector<4x8x8xf32>
    %54 = tpu.matmul %43, %53, %cst {dimension_numbers = #tpu.dot_dimension_numbers<[2], [2], [1], [1], [0, 0, 0, 1, 1, 1], [0], [0]>} : vector<4x8x8xf32>, vector<4x8x8xf32>, vector<4x8x8xf32> -> vector<4x8x8xf32>
    "tpu.trace_stop"() : () -> ()
    %cst_17 = arith.constant 0.353553385 : f32
    %55 = vector.broadcast %cst_17 : f32 to vector<4x8x8xf32>
    %56 = arith.mulf %54, %55 : vector<4x8x8xf32>
    %57 = tpu.iota {dimensions = array<i32: 0>} : vector<8x8xi32>
    %58 = vector.broadcast %0 : i32 to vector<8x8xi32>
    %59 = arith.addi %57, %58 : vector<8x8xi32>
    %60 = tpu.iota {dimensions = array<i32: 1>} : vector<8x8xi32>
    %61 = arith.cmpi sle, %60, %59 : vector<8x8xi32>
    %62 = vector.shape_cast %61 : vector<8x8xi1> to vector<1x8x8xi1>
    %cst_18 = arith.constant -1.000000e+30 : f32
    %63 = vector.shape_cast %62 : vector<1x8x8xi1> to vector<1x8x8xi1>
    %64 = vector.broadcast %63 : vector<1x8x8xi1> to vector<4x8x8xi1>
    %65 = vector.broadcast %cst_18 : f32 to vector<4x8x8xf32>
    %66 = arith.select %64, %56, %65 : vector<4x8x8xi1>, vector<4x8x8xf32>
    %cst_19 = arith.constant dense<0xFF800000> : vector<4x8xf32>
    %67 = vector.multi_reduction <maximumf>, %66, %cst_19 [2] : vector<4x8x8xf32> to vector<4x8xf32>
    %68 = vector.shape_cast %67 : vector<4x8xf32> to vector<4x8x1xf32>
    %69 = vector.broadcast %68 : vector<4x8x1xf32> to vector<4x8x8xf32>
    %70 = arith.subf %66, %69 : vector<4x8x8xf32>
    %71 = math.exp %70 : vector<4x8x8xf32>
    %cst_20 = arith.constant dense<0.000000e+00> : vector<4x8xf32>
    %72 = vector.multi_reduction <add>, %71, %cst_20 [2] : vector<4x8x8xf32> to vector<4x8xf32>
    %73 = vector.shape_cast %72 : vector<4x8xf32> to vector<4x8x1xf32>
    %74 = vector.broadcast %73 : vector<4x8x1xf32> to vector<4x8x8xf32>
    %75 = arith.divf %71, %74 : vector<4x8x8xf32>
    "tpu.trace_start"() <{level = 10 : i32, message = "hqk,hkd->hqd"}> : () -> ()
    %cst_21 = arith.constant dense<0.000000e+00> : vector<4x8x8xf32>
    %76 = tpu.matmul %75, %33, %cst_21 {dimension_numbers = #tpu.dot_dimension_numbers<[2], [1], [1], [2], [0, 0, 0, 1, 1, 2], [0], [0]>} : vector<4x8x8xf32>, vector<4x8x8xf32>, vector<4x8x8xf32> -> vector<4x8x8xf32>
    "tpu.trace_stop"() : () -> ()
    %77 = vector.extract_strided_slice %76 {offsets = [0, 0, 0], sizes = [1, 8, 8], strides = [1, 1, 1]} : vector<4x8x8xf32> to vector<1x8x8xf32>
    %78 = vector.shape_cast %77 : vector<1x8x8xf32> to vector<8x8xf32>
    %79 = vector.extract_strided_slice %76 {offsets = [1, 0, 0], sizes = [1, 8, 8], strides = [1, 1, 1]} : vector<4x8x8xf32> to vector<1x8x8xf32>
    %80 = vector.shape_cast %79 : vector<1x8x8xf32> to vector<8x8xf32>
    %81 = vector.extract_strided_slice %76 {offsets = [2, 0, 0], sizes = [1, 8, 8], strides = [1, 1, 1]} : vector<4x8x8xf32> to vector<1x8x8xf32>
    %82 = vector.shape_cast %81 : vector<1x8x8xf32> to vector<8x8xf32>
    %83 = vector.extract_strided_slice %76 {offsets = [3, 0, 0], sizes = [1, 8, 8], strides = [1, 1, 1]} : vector<4x8x8xf32> to vector<1x8x8xf32>
    %84 = vector.shape_cast %83 : vector<1x8x8xf32> to vector<8x8xf32>
    %85 = tpu.concatenate %78, %80, %82, %84 in 1 : vector<8x8xf32>, vector<8x8xf32>, vector<8x8xf32>, vector<8x8xf32> -> vector<8x32xf32>
    %c0_22 = arith.constant 0 : index
    %c0_23 = arith.constant 0 : index
    %86 = vector.load %arg9[%c0_22, %c0_23] : memref<32x32xf32, #tpu.memory_space<vmem>>, vector<32x32xf32>
    %cst_24 = arith.constant dense<0.000000e+00> : vector<8x32xf32>
    %87 = tpu.matmul %85, %86, %cst_24 {dimension_numbers = #tpu.dot_dimension_numbers<[1], [0], [0], [1], [0, 0, 1, 1], [], []>} : vector<8x32xf32>, vector<32x32xf32>, vector<8x32xf32> -> vector<8x32xf32>
    %c0_25 = arith.constant 0 : index
    %c0_26 = arith.constant 0 : index
    %88 = vector.load %arg10[%c0_25, %c0_26] : memref<1x32xf32, #tpu.memory_space<vmem>>, vector<1x32xf32>
    %89 = vector.broadcast %88 : vector<1x32xf32> to vector<8x32xf32>
    %90 = arith.addf %87, %89 : vector<8x32xf32>
    %c0_27 = arith.constant 0 : index
    %c0_28 = arith.constant 0 : index
    %c0_29 = arith.constant 0 : index
    %91 = vector.load %arg11[%c0_27, %c0_28, %c0_29] : memref<1x8x32xf32, #tpu.memory_space<vmem>>, vector<1x8x32xf32>
    %92 = vector.shape_cast %91 : vector<1x8x32xf32> to vector<8x32xf32>
    %93 = arith.addf %90, %92 : vector<8x32xf32>
    %c0_30 = arith.constant 0 : index
    %c0_31 = arith.constant 0 : index
    %c0_32 = arith.constant 0 : index
    %94 = vector.load %arg12[%c0_30, %c0_31, %c0_32] : memref<1x8x32xf32, #tpu.memory_space<vmem>>, vector<1x8x32xf32>
    %95 = vector.shape_cast %94 : vector<1x8x32xf32> to vector<8x32xf32>
    %96 = vector.shape_cast %93 : vector<8x32xf32> to vector<1x8x32xf32>
    tpu.vector_store %arg12[%c0_30, %c0_31, %c0_32], %96 {strides = array<i32>} : memref<1x8x32xf32, #tpu.memory_space<vmem>>, vector<1x8x32xf32>,
    return
  }
  func.func @transform_0(%arg0: i32, %arg1: i32) -> (i32, i32, i32) {
    %c0_i32 = arith.constant 0 : i32
    %c0_i32_0 = arith.constant 0 : i32
    return %arg0, %arg1, %c0_i32 : i32, i32, i32
  }
  func.func @transform_1(%arg0: i32, %arg1: i32) -> (i32, i32, i32) {
    %c0_i32 = arith.constant 0 : i32
    %c0_i32_0 = arith.constant 0 : i32
    %c0_i32_1 = arith.constant 0 : i32
    return %arg0, %c0_i32, %c0_i32_0 : i32, i32, i32
  }
  func.func @transform_2(%arg0: i32, %arg1: i32) -> (i32, i32, i32) {
    %c0_i32 = arith.constant 0 : i32
    %c0_i32_0 = arith.constant 0 : i32
    %c0_i32_1 = arith.constant 0 : i32
    return %arg0, %c0_i32, %c0_i32_0 : i32, i32, i32
  }
  func.func @transform_3(%arg0: i32, %arg1: i32) -> (i32, i32) {
    %c0_i32 = arith.constant 0 : i32
    %c0_i32_0 = arith.constant 0 : i32
    return %arg1, %c0_i32 : i32, i32
  }
  func.func @transform_4(%arg0: i32, %arg1: i32) -> (i32, i32) {
    %c0_i32 = arith.constant 0 : i32
    %c0_i32_0 = arith.constant 0 : i32
    return %arg1, %c0_i32 : i32, i32
  }
  func.func @transform_5(%arg0: i32, %arg1: i32) -> (i32, i32) {
    %c0_i32 = arith.constant 0 : i32
    %c0_i32_0 = arith.constant 0 : i32
    %c0_i32_1 = arith.constant 0 : i32
    return %c0_i32, %c0_i32_0 : i32, i32
  }
  func.func @transform_6(%arg0: i32, %arg1: i32) -> (i32, i32) {
    %c0_i32 = arith.constant 0 : i32
    %c0_i32_0 = arith.constant 0 : i32
    %c0_i32_1 = arith.constant 0 : i32
    return %c0_i32, %c0_i32_0 : i32, i32
  }
  func.func @transform_7(%arg0: i32, %arg1: i32) -> (i32, i32) {
    %c0_i32 = arith.constant 0 : i32
    %c0_i32_0 = arith.constant 0 : i32
    %c0_i32_1 = arith.constant 0 : i32
    return %c0_i32, %c0_i32_0 : i32, i32
  }
  func.func @transform_8(%arg0: i32, %arg1: i32) -> (i32, i32) {
    %c0_i32 = arith.constant 0 : i32
    %c0_i32_0 = arith.constant 0 : i32
    %c0_i32_1 = arith.constant 0 : i32
    return %c0_i32, %c0_i32_0 : i32, i32
  }
  func.func @transform_9(%arg0: i32, %arg1: i32) -> (i32, i32, i32) {
    %c0_i32 = arith.constant 0 : i32
    %c0_i32_0 = arith.constant 0 : i32
    return %arg0, %arg1, %c0_i32 : i32, i32, i32
  }
  func.func @transform_10(%arg0: i32, %arg1: i32) -> (i32, i32, i32) {
    %c0_i32 = arith.constant 0 : i32
    %c0_i32_0 = arith.constant 0 : i32
    return %arg0, %arg1, %c0_i32 : i32, i32, i32
  }
}

module attributes {stable_mosaic.version = 11 : i64} {
  func.func @_ln_matmul_kernel(%arg0: i32, %arg1: i32, %arg2: memref<16x32xf32, #tpu.memory_space<vmem>>, %arg3: memref<1x32xf32, #tpu.memory_space<vmem>>, %arg4: memref<1x32xf32, #tpu.memory_space<vmem>>, %arg5: memref<32x64xf32, #tpu.memory_space<vmem>>, %arg6: memref<1x64xf32, #tpu.memory_space<vmem>>, %arg7: memref<16x64xf32, #tpu.memory_space<vmem>>) attributes {dimension_semantics = [#tpu.dimension_semantics<parallel>, #tpu.dimension_semantics<parallel>], iteration_bounds = array<i64: 1, 1>, scalar_prefetch = 0 : i64, scratch_operands = 0 : i64, tpu.core_type = #tpu.core_type<tc>, window_params = [{transform_indices = @transform_0, window_bounds = array<i64: 16, 32>}, {pipeline_mode = #tpu.pipeline_mode<synchronous>, transform_indices = @transform_1, window_bounds = array<i64: 1, 32>}, {pipeline_mode = #tpu.pipeline_mode<synchronous>, transform_indices = @transform_2, window_bounds = array<i64: 1, 32>}, {transform_indices = @transform_3, window_bounds = array<i64: 32, 64>}, {transform_indices = @transform_4, window_bounds = array<i64: 1, 64>}, {transform_indices = @transform_5, window_bounds = array<i64: 16, 64>}]} {
    %c0 = arith.constant 0 : index
    %c0_0 = arith.constant 0 : index
    %0 = vector.load %arg2[%c0, %c0_0] : memref<16x32xf32, #tpu.memory_space<vmem>>, vector<16x32xf32>
    %cst = arith.constant dense<0.000000e+00> : vector<16xf32>
    %1 = vector.multi_reduction <add>, %0, %cst [1] : vector<16x32xf32> to vector<16xf32>
    %2 = vector.shape_cast %1 : vector<16xf32> to vector<16x1xf32>
    %cst_1 = arith.constant 3.200000e+01 : f32
    %3 = vector.broadcast %cst_1 : f32 to vector<16x1xf32>
    %4 = arith.divf %2, %3 : vector<16x1xf32>
    %5 = vector.broadcast %4 : vector<16x1xf32> to vector<16x32xf32>
    %6 = arith.subf %0, %5 : vector<16x32xf32>
    %7 = arith.mulf %6, %6 : vector<16x32xf32>
    %cst_2 = arith.constant dense<0.000000e+00> : vector<16xf32>
    %8 = vector.multi_reduction <add>, %7, %cst_2 [1] : vector<16x32xf32> to vector<16xf32>
    %9 = vector.shape_cast %8 : vector<16xf32> to vector<16x1xf32>
    %cst_3 = arith.constant 3.200000e+01 : f32
    %10 = vector.broadcast %cst_3 : f32 to vector<16x1xf32>
    %11 = arith.divf %9, %10 : vector<16x1xf32>
    %cst_4 = arith.constant 9.99999974E-6 : f32
    %12 = vector.broadcast %cst_4 : f32 to vector<16x1xf32>
    %13 = arith.addf %11, %12 : vector<16x1xf32>
    %14 = math.rsqrt %13 : vector<16x1xf32>
    %15 = vector.broadcast %14 : vector<16x1xf32> to vector<16x32xf32>
    %16 = arith.mulf %6, %15 : vector<16x32xf32>
    %c0_5 = arith.constant 0 : index
    %c0_6 = arith.constant 0 : index
    %17 = vector.load %arg3[%c0_5, %c0_6] : memref<1x32xf32, #tpu.memory_space<vmem>>, vector<1x32xf32>
    %18 = vector.broadcast %17 : vector<1x32xf32> to vector<16x32xf32>
    %19 = arith.mulf %16, %18 : vector<16x32xf32>
    %c0_7 = arith.constant 0 : index
    %c0_8 = arith.constant 0 : index
    %20 = vector.load %arg4[%c0_7, %c0_8] : memref<1x32xf32, #tpu.memory_space<vmem>>, vector<1x32xf32>
    %21 = vector.broadcast %20 : vector<1x32xf32> to vector<16x32xf32>
    %22 = arith.addf %19, %21 : vector<16x32xf32>
    %c0_9 = arith.constant 0 : index
    %c0_10 = arith.constant 0 : index
    %23 = vector.load %arg5[%c0_9, %c0_10] : memref<32x64xf32, #tpu.memory_space<vmem>>, vector<32x64xf32>
    %cst_11 = arith.constant dense<0.000000e+00> : vector<16x64xf32>
    %24 = tpu.matmul %22, %23, %cst_11 {dimension_numbers = #tpu.dot_dimension_numbers<[1], [0], [0], [1], [0, 0, 1, 1], [], []>} : vector<16x32xf32>, vector<32x64xf32>, vector<16x64xf32> -> vector<16x64xf32>
    %c0_12 = arith.constant 0 : index
    %c0_13 = arith.constant 0 : index
    %25 = vector.load %arg6[%c0_12, %c0_13] : memref<1x64xf32, #tpu.memory_space<vmem>>, vector<1x64xf32>
    %26 = vector.broadcast %25 : vector<1x64xf32> to vector<16x64xf32>
    %27 = arith.addf %24, %26 : vector<16x64xf32>
    %cst_14 = arith.constant 5.000000e-01 : f32
    %28 = vector.broadcast %cst_14 : f32 to vector<16x64xf32>
    %29 = arith.mulf %28, %27 : vector<16x64xf32>
    %cst_15 = arith.constant 4.471500e-02 : f32
    %30 = vector.broadcast %cst_15 : f32 to vector<16x64xf32>
    %31 = arith.mulf %30, %27 : vector<16x64xf32>
    %32 = arith.mulf %31, %27 : vector<16x64xf32>
    %33 = arith.mulf %32, %27 : vector<16x64xf32>
    %34 = arith.addf %27, %33 : vector<16x64xf32>
    %cst_16 = arith.constant 0.797884583 : f32
    %35 = vector.broadcast %cst_16 : f32 to vector<16x64xf32>
    %36 = arith.mulf %35, %34 : vector<16x64xf32>
    %37 = math.tanh %36 : vector<16x64xf32>
    %cst_17 = arith.constant 1.000000e+00 : f32
    %38 = vector.broadcast %cst_17 : f32 to vector<16x64xf32>
    %39 = arith.addf %38, %37 : vector<16x64xf32>
    %40 = arith.mulf %29, %39 : vector<16x64xf32>
    %c0_18 = arith.constant 0 : index
    %c0_19 = arith.constant 0 : index
    %41 = vector.load %arg7[%c0_18, %c0_19] : memref<16x64xf32, #tpu.memory_space<vmem>>, vector<16x64xf32>
    tpu.vector_store %arg7[%c0_18, %c0_19], %40 {strides = array<i32>} : memref<16x64xf32, #tpu.memory_space<vmem>>, vector<16x64xf32>,
    return
  }
  func.func @transform_0(%arg0: i32, %arg1: i32) -> (i32, i32) {
    %c0_i32 = arith.constant 0 : i32
    %c0_i32_0 = arith.constant 0 : i32
    return %arg0, %c0_i32 : i32, i32
  }
  func.func @transform_1(%arg0: i32, %arg1: i32) -> (i32, i32) {
    %c0_i32 = arith.constant 0 : i32
    %c0_i32_0 = arith.constant 0 : i32
    %c0_i32_1 = arith.constant 0 : i32
    return %c0_i32, %c0_i32_0 : i32, i32
  }
  func.func @transform_2(%arg0: i32, %arg1: i32) -> (i32, i32) {
    %c0_i32 = arith.constant 0 : i32
    %c0_i32_0 = arith.constant 0 : i32
    %c0_i32_1 = arith.constant 0 : i32
    return %c0_i32, %c0_i32_0 : i32, i32
  }
  func.func @transform_3(%arg0: i32, %arg1: i32) -> (i32, i32) {
    %c0_i32 = arith.constant 0 : i32
    %c0_i32_0 = arith.constant 0 : i32
    return %c0_i32, %arg1 : i32, i32
  }
  func.func @transform_4(%arg0: i32, %arg1: i32) -> (i32, i32) {
    %c0_i32 = arith.constant 0 : i32
    %c0_i32_0 = arith.constant 0 : i32
    return %c0_i32, %arg1 : i32, i32
  }
  func.func @transform_5(%arg0: i32, %arg1: i32) -> (i32, i32) {
    %c0_i32 = arith.constant 0 : i32
    return %arg0, %arg1 : i32, i32
  }
}

module attributes {stable_mosaic.version = 11 : i64} {
  func.func @_ln_qkv_kernel(%arg0: i32, %arg1: memref<16x32xf32, #tpu.memory_space<vmem>>, %arg2: memref<1x32xf32, #tpu.memory_space<vmem>>, %arg3: memref<1x32xf32, #tpu.memory_space<vmem>>, %arg4: memref<32x96xf32, #tpu.memory_space<vmem>>, %arg5: memref<1x96xf32, #tpu.memory_space<vmem>>, %arg6: memref<16x32xf32, #tpu.memory_space<vmem>>, %arg7: memref<16x32xf32, #tpu.memory_space<vmem>>, %arg8: memref<16x32xf32, #tpu.memory_space<vmem>>) attributes {dimension_semantics = [#tpu.dimension_semantics<parallel>], iteration_bounds = array<i64: 1>, scalar_prefetch = 0 : i64, scratch_operands = 0 : i64, tpu.core_type = #tpu.core_type<tc>, window_params = [{transform_indices = @transform_0, window_bounds = array<i64: 16, 32>}, {pipeline_mode = #tpu.pipeline_mode<synchronous>, transform_indices = @transform_1, window_bounds = array<i64: 1, 32>}, {pipeline_mode = #tpu.pipeline_mode<synchronous>, transform_indices = @transform_2, window_bounds = array<i64: 1, 32>}, {pipeline_mode = #tpu.pipeline_mode<synchronous>, transform_indices = @transform_3, window_bounds = array<i64: 32, 96>}, {pipeline_mode = #tpu.pipeline_mode<synchronous>, transform_indices = @transform_4, window_bounds = array<i64: 1, 96>}, {transform_indices = @transform_5, window_bounds = array<i64: 16, 32>}, {transform_indices = @transform_6, window_bounds = array<i64: 16, 32>}, {transform_indices = @transform_7, window_bounds = array<i64: 16, 32>}]} {
    %c0 = arith.constant 0 : index
    %c0_0 = arith.constant 0 : index
    %0 = vector.load %arg1[%c0, %c0_0] : memref<16x32xf32, #tpu.memory_space<vmem>>, vector<16x32xf32>
    %cst = arith.constant dense<0.000000e+00> : vector<16xf32>
    %1 = vector.multi_reduction <add>, %0, %cst [1] : vector<16x32xf32> to vector<16xf32>
    %2 = vector.shape_cast %1 : vector<16xf32> to vector<16x1xf32>
    %cst_1 = arith.constant 3.200000e+01 : f32
    %3 = vector.broadcast %cst_1 : f32 to vector<16x1xf32>
    %4 = arith.divf %2, %3 : vector<16x1xf32>
    %5 = vector.broadcast %4 : vector<16x1xf32> to vector<16x32xf32>
    %6 = arith.subf %0, %5 : vector<16x32xf32>
    %7 = arith.mulf %6, %6 : vector<16x32xf32>
    %cst_2 = arith.constant dense<0.000000e+00> : vector<16xf32>
    %8 = vector.multi_reduction <add>, %7, %cst_2 [1] : vector<16x32xf32> to vector<16xf32>
    %9 = vector.shape_cast %8 : vector<16xf32> to vector<16x1xf32>
    %cst_3 = arith.constant 3.200000e+01 : f32
    %10 = vector.broadcast %cst_3 : f32 to vector<16x1xf32>
    %11 = arith.divf %9, %10 : vector<16x1xf32>
    %cst_4 = arith.constant 9.99999974E-6 : f32
    %12 = vector.broadcast %cst_4 : f32 to vector<16x1xf32>
    %13 = arith.addf %11, %12 : vector<16x1xf32>
    %14 = math.rsqrt %13 : vector<16x1xf32>
    %15 = vector.broadcast %14 : vector<16x1xf32> to vector<16x32xf32>
    %16 = arith.mulf %6, %15 : vector<16x32xf32>
    %c0_5 = arith.constant 0 : index
    %c0_6 = arith.constant 0 : index
    %17 = vector.load %arg2[%c0_5, %c0_6] : memref<1x32xf32, #tpu.memory_space<vmem>>, vector<1x32xf32>
    %18 = vector.broadcast %17 : vector<1x32xf32> to vector<16x32xf32>
    %19 = arith.mulf %16, %18 : vector<16x32xf32>
    %c0_7 = arith.constant 0 : index
    %c0_8 = arith.constant 0 : index
    %20 = vector.load %arg3[%c0_7, %c0_8] : memref<1x32xf32, #tpu.memory_space<vmem>>, vector<1x32xf32>
    %21 = vector.broadcast %20 : vector<1x32xf32> to vector<16x32xf32>
    %22 = arith.addf %19, %21 : vector<16x32xf32>
    %c0_9 = arith.constant 0 : index
    %c0_10 = arith.constant 0 : index
    %23 = vector.load %arg4[%c0_9, %c0_10] : memref<32x96xf32, #tpu.memory_space<vmem>>, vector<32x96xf32>
    %cst_11 = arith.constant dense<0.000000e+00> : vector<16x96xf32>
    %24 = tpu.matmul %22, %23, %cst_11 {dimension_numbers = #tpu.dot_dimension_numbers<[1], [0], [0], [1], [0, 0, 1, 1], [], []>} : vector<16x32xf32>, vector<32x96xf32>, vector<16x96xf32> -> vector<16x96xf32>
    %c0_12 = arith.constant 0 : index
    %c0_13 = arith.constant 0 : index
    %25 = vector.load %arg5[%c0_12, %c0_13] : memref<1x96xf32, #tpu.memory_space<vmem>>, vector<1x96xf32>
    %26 = vector.broadcast %25 : vector<1x96xf32> to vector<16x96xf32>
    %27 = arith.addf %24, %26 : vector<16x96xf32>
    %28 = vector.extract_strided_slice %27 {offsets = [0, 0], sizes = [16, 32], strides = [1, 1]} : vector<16x96xf32> to vector<16x32xf32>
    %c0_14 = arith.constant 0 : index
    %c0_15 = arith.constant 0 : index
    %29 = vector.load %arg6[%c0_14, %c0_15] : memref<16x32xf32, #tpu.memory_space<vmem>>, vector<16x32xf32>
    tpu.vector_store %arg6[%c0_14, %c0_15], %28 {strides = array<i32>} : memref<16x32xf32, #tpu.memory_space<vmem>>, vector<16x32xf32>,
    %30 = vector.extract_strided_slice %27 {offsets = [0, 32], sizes = [16, 32], strides = [1, 1]} : vector<16x96xf32> to vector<16x32xf32>
    %c0_16 = arith.constant 0 : index
    %c0_17 = arith.constant 0 : index
    %31 = vector.load %arg7[%c0_16, %c0_17] : memref<16x32xf32, #tpu.memory_space<vmem>>, vector<16x32xf32>
    tpu.vector_store %arg7[%c0_16, %c0_17], %30 {strides = array<i32>} : memref<16x32xf32, #tpu.memory_space<vmem>>, vector<16x32xf32>,
    %32 = vector.extract_strided_slice %27 {offsets = [0, 64], sizes = [16, 32], strides = [1, 1]} : vector<16x96xf32> to vector<16x32xf32>
    %c0_18 = arith.constant 0 : index
    %c0_19 = arith.constant 0 : index
    %33 = vector.load %arg8[%c0_18, %c0_19] : memref<16x32xf32, #tpu.memory_space<vmem>>, vector<16x32xf32>
    tpu.vector_store %arg8[%c0_18, %c0_19], %32 {strides = array<i32>} : memref<16x32xf32, #tpu.memory_space<vmem>>, vector<16x32xf32>,
    return
  }
  func.func @transform_0(%arg0: i32) -> (i32, i32) {
    %c0_i32 = arith.constant 0 : i32
    %c0_i32_0 = arith.constant 0 : i32
    return %arg0, %c0_i32 : i32, i32
  }
  func.func @transform_1(%arg0: i32) -> (i32, i32) {
    %c0_i32 = arith.constant 0 : i32
    %c0_i32_0 = arith.constant 0 : i32
    %c0_i32_1 = arith.constant 0 : i32
    return %c0_i32, %c0_i32_0 : i32, i32
  }
  func.func @transform_2(%arg0: i32) -> (i32, i32) {
    %c0_i32 = arith.constant 0 : i32
    %c0_i32_0 = arith.constant 0 : i32
    %c0_i32_1 = arith.constant 0 : i32
    return %c0_i32, %c0_i32_0 : i32, i32
  }
  func.func @transform_3(%arg0: i32) -> (i32, i32) {
    %c0_i32 = arith.constant 0 : i32
    %c0_i32_0 = arith.constant 0 : i32
    %c0_i32_1 = arith.constant 0 : i32
    return %c0_i32, %c0_i32_0 : i32, i32
  }
  func.func @transform_4(%arg0: i32) -> (i32, i32) {
    %c0_i32 = arith.constant 0 : i32
    %c0_i32_0 = arith.constant 0 : i32
    %c0_i32_1 = arith.constant 0 : i32
    return %c0_i32, %c0_i32_0 : i32, i32
  }
  func.func @transform_5(%arg0: i32) -> (i32, i32) {
    %c0_i32 = arith.constant 0 : i32
    %c0_i32_0 = arith.constant 0 : i32
    return %arg0, %c0_i32 : i32, i32
  }
  func.func @transform_6(%arg0: i32) -> (i32, i32) {
    %c0_i32 = arith.constant 0 : i32
    %c0_i32_0 = arith.constant 0 : i32
    return %arg0, %c0_i32 : i32, i32
  }
  func.func @transform_7(%arg0: i32) -> (i32, i32) {
    %c0_i32 = arith.constant 0 : i32
    %c0_i32_0 = arith.constant 0 : i32
    return %arg0, %c0_i32 : i32, i32
  }
}

module attributes {stable_mosaic.version = 11 : i64} {
  func.func @_layernorm_kernel(%arg0: i32, %arg1: memref<16x32xf32, #tpu.memory_space<vmem>>, %arg2: memref<1x32xf32, #tpu.memory_space<vmem>>, %arg3: memref<1x32xf32, #tpu.memory_space<vmem>>, %arg4: memref<16x32xf32, #tpu.memory_space<vmem>>) attributes {dimension_semantics = [#tpu.dimension_semantics<parallel>], iteration_bounds = array<i64: 1>, scalar_prefetch = 0 : i64, scratch_operands = 0 : i64, tpu.core_type = #tpu.core_type<tc>, window_params = [{transform_indices = @transform_0, window_bounds = array<i64: 16, 32>}, {pipeline_mode = #tpu.pipeline_mode<synchronous>, transform_indices = @transform_1, window_bounds = array<i64: 1, 32>}, {pipeline_mode = #tpu.pipeline_mode<synchronous>, transform_indices = @transform_2, window_bounds = array<i64: 1, 32>}, {transform_indices = @transform_3, window_bounds = array<i64: 16, 32>}]} {
    %c0 = arith.constant 0 : index
    %c0_0 = arith.constant 0 : index
    %0 = vector.load %arg1[%c0, %c0_0] : memref<16x32xf32, #tpu.memory_space<vmem>>, vector<16x32xf32>
    %cst = arith.constant dense<0.000000e+00> : vector<16xf32>
    %1 = vector.multi_reduction <add>, %0, %cst [1] : vector<16x32xf32> to vector<16xf32>
    %2 = vector.shape_cast %1 : vector<16xf32> to vector<16x1xf32>
    %cst_1 = arith.constant 3.200000e+01 : f32
    %3 = vector.broadcast %cst_1 : f32 to vector<16x1xf32>
    %4 = arith.divf %2, %3 : vector<16x1xf32>
    %5 = vector.broadcast %4 : vector<16x1xf32> to vector<16x32xf32>
    %6 = arith.subf %0, %5 : vector<16x32xf32>
    %7 = arith.mulf %6, %6 : vector<16x32xf32>
    %cst_2 = arith.constant dense<0.000000e+00> : vector<16xf32>
    %8 = vector.multi_reduction <add>, %7, %cst_2 [1] : vector<16x32xf32> to vector<16xf32>
    %9 = vector.shape_cast %8 : vector<16xf32> to vector<16x1xf32>
    %cst_3 = arith.constant 3.200000e+01 : f32
    %10 = vector.broadcast %cst_3 : f32 to vector<16x1xf32>
    %11 = arith.divf %9, %10 : vector<16x1xf32>
    %cst_4 = arith.constant 9.99999974E-6 : f32
    %12 = vector.broadcast %cst_4 : f32 to vector<16x1xf32>
    %13 = arith.addf %11, %12 : vector<16x1xf32>
    %14 = math.rsqrt %13 : vector<16x1xf32>
    %15 = vector.broadcast %14 : vector<16x1xf32> to vector<16x32xf32>
    %16 = arith.mulf %6, %15 : vector<16x32xf32>
    %c0_5 = arith.constant 0 : index
    %c0_6 = arith.constant 0 : index
    %17 = vector.load %arg2[%c0_5, %c0_6] : memref<1x32xf32, #tpu.memory_space<vmem>>, vector<1x32xf32>
    %18 = vector.broadcast %17 : vector<1x32xf32> to vector<16x32xf32>
    %19 = arith.mulf %16, %18 : vector<16x32xf32>
    %c0_7 = arith.constant 0 : index
    %c0_8 = arith.constant 0 : index
    %20 = vector.load %arg3[%c0_7, %c0_8] : memref<1x32xf32, #tpu.memory_space<vmem>>, vector<1x32xf32>
    %21 = vector.broadcast %20 : vector<1x32xf32> to vector<16x32xf32>
    %22 = arith.addf %19, %21 : vector<16x32xf32>
    %c0_9 = arith.constant 0 : index
    %c0_10 = arith.constant 0 : index
    %23 = vector.load %arg4[%c0_9, %c0_10] : memref<16x32xf32, #tpu.memory_space<vmem>>, vector<16x32xf32>
    tpu.vector_store %arg4[%c0_9, %c0_10], %22 {strides = array<i32>} : memref<16x32xf32, #tpu.memory_space<vmem>>, vector<16x32xf32>,
    return
  }
  func.func @transform_0(%arg0: i32) -> (i32, i32) {
    %c0_i32 = arith.constant 0 : i32
    %c0_i32_0 = arith.constant 0 : i32
    return %arg0, %c0_i32 : i32, i32
  }
  func.func @transform_1(%arg0: i32) -> (i32, i32) {
    %c0_i32 = arith.constant 0 : i32
    %c0_i32_0 = arith.constant 0 : i32
    %c0_i32_1 = arith.constant 0 : i32
    return %c0_i32, %c0_i32_0 : i32, i32
  }
  func.func @transform_2(%arg0: i32) -> (i32, i32) {
    %c0_i32 = arith.constant 0 : i32
    %c0_i32_0 = arith.constant 0 : i32
    %c0_i32_1 = arith.constant 0 : i32
    return %c0_i32, %c0_i32_0 : i32, i32
  }
  func.func @transform_3(%arg0: i32) -> (i32, i32) {
    %c0_i32 = arith.constant 0 : i32
    %c0_i32_0 = arith.constant 0 : i32
    return %arg0, %c0_i32 : i32, i32
  }
}

</mosaic_0001>

<bundles_post_ra>
// kernel: esm_encoder_forward.12
= control target key start
LH: loop header
LB: loop body
LE: loop exit
PB: predicated region body
PF: predicated region fallthrough
CT: control target
= control target key end

     0   :  { %vm31_vm0 = vcmask 523264   ;;  %vm65_vm1 = vcmask 261120   ;;  %s153_s1 = inlined_call_operand.vmem [shape: f32[64,32], index: 1, kind: input, shape index: {}]   ;;  %s154_s2 = inlined_call_operand.vmem [shape: f32[1,32], index: 2, kind: input, shape index: {}]   ;;  %s155_s0 = inlined_call_operand.vmem [shape: f32[16,64], index: 0, kind: input, shape index: {}]   ;;  %s156_s3 = inlined_call_operand.vmem [shape: f32[16,32], index: 3, kind: input, shape index: {}]   ;;  %s157_s4 = inlined_call_operand.vmem [shape: f32[16,32], index: 4, kind: output, shape index: {}]  }
   0x1   :  { %v26_v0 = vld [vmem:[%s153_s1 + $0x38] sm:$0xff]  ;;  %v25_v1 = vld [vmem:[%s153_s1 + $0x30] sm:$0xff]  ;;  %v24_v2 = vld [vmem:[%s153_s1 + $0x28] sm:$0xff] }
   0x2   :  { %46 = vmatpush.msra.mxu0 %v26_v0  ;;  %74 = vmatpush.msra.mxu1 %v26_v0  ;;  %v23_v3 = vld [vmem:[%s153_s1 + $0x20] sm:$0xff]  ;;  %v22_v4 = vld [vmem:[%s153_s1 + $0x18] sm:$0xff]  ;;  %v21_v5 = vld [vmem:[%s153_s1 + $0x10] sm:$0xff] }
   0x3   :  { %v20_v6 = vld [vmem:[%s153_s1 + $0x8] sm:$0xff]  ;;  %v19_v7 = vld [vmem:[%s153_s1] sm:$0xff] }
   0x4   :  { %47 = vmatpush.msra.mxu0 %v25_v1  ;;  %75 = vmatpush.msra.mxu1 %v25_v1  ;;  %v17_v8 = vld [vmem:[%s155_s0] sm:$0xff]  ;;  %v18_v9 = vld [vmem:[%s155_s0 + $0x8] sm:$0xff] }
   0x5   :  { %v82_v10 = vld [vmem:[%s154_s2] ss:$0 sm:$0xff]  ;;  %v62_v14 = vld [vmem:[%s156_s3 + $0x8] sm:$0xff] }
   0x6   :  { %48 = vmatpush.msra.mxu0 %v24_v2  ;;  %76 = vmatpush.msra.mxu1 %v24_v2  ;;  %v61_v12 = vld [vmem:[%s156_s3] sm:$0xff] }
   0x8   :  { %49 = vmatpush.msra.mxu0 %v23_v3  ;;  %77 = vmatpush.msra.mxu1 %v23_v3 }
   0xa   :  { %50 = vmatpush.msra.mxu0 %v22_v4  ;;  %78 = vmatpush.msra.mxu1 %v22_v4 }
   0xc   :  { %51 = vmatpush.msra.mxu0 %v21_v5  ;;  %79 = vmatpush.msra.mxu1 %v21_v5 }
   0xe   :  { %52 = vmatpush.msra.mxu0 %v20_v6  ;;  %80 = vmatpush.msra.mxu1 %v20_v6 }
  0x10   :  { %53 = vmatpush.msra.mxu0 %v19_v7  ;;  %81 = vmatpush.msra.mxu1 %v19_v7 }
  0x11   :  { %72 = vmatmul.msk.f32.vlgmr.msra.gmra.mxu0 %vm31_vm0, %v17_v8  ;;  %73 = vmatmul.msk.f32.vlgmr.msra.gmra.mxu1 %vm31_vm0, %v18_v9 }
  0x8e   :  { %v55_v11 = vpop.f32.mrf.mxu0  ;;  %v58_v13 = vpop.f32.mrf.mxu1 }
  0x8f   :  { %v56_v15 = vadd.f32 %v82_v10, %v55_v11  ;;  %v59_v16 = vadd.f32 %v82_v10, %v58_v13 }
  0x91   :  { %v63_v17 = vadd.f32 %v61_v12, %v56_v15  ;;  %v64_v18 = vadd.f32 %v62_v14, %v59_v16 }
  0x93   :  { %66 = vst.msk [vmem:[%s157_s4] sm:$0xff] %vm65_vm1, %v63_v17 }
  0x94   :  { %67 = vst.msk [vmem:[%s157_s4 + $0x8] sm:$0xff] %vm65_vm1, %v64_v18 }

// kernel: esm_encoder_forward.9
= control target key start
LH: loop header
LB: loop body
LE: loop exit
PB: predicated region body
PF: predicated region fallthrough
CT: control target
= control target key end

     0   :  { %13 = vsyncpa [#allocation3], 0  ;;  %s401_s0 = inlined_call_operand.vmem [shape: f32[16,32], index: 0, kind: input, shape index: {}]   ;;  %s402_s1 = inlined_call_operand.hbm [shape: f32[1,32], index: 1, kind: input, shape index: {}]   ;;  %s403_s2 = inlined_call_operand.hbm [shape: f32[1,32], index: 2, kind: input, shape index: {}]   ;;  %s404_s3 = inlined_call_operand.vmem [shape: f32[32,96], index: 3, kind: input, shape index: {}]   ;;  %s405_s4 = inlined_call_operand.hbm [shape: f32[1,96], index: 4, kind: input, shape index: {}]   ;;  %s406_s5 = inlined_call_operand.vmem [shape: f32[16,32], index: 5, kind: output, shape index: {0}]   ;;  %s407_s6 = inlined_call_operand.vmem [shape: f32[16,32], index: 6, kind: output, shape index: {1}]   ;;  %s408_s7 = inlined_call_operand.vmem [shape: f32[16,32], index: 7, kind: output, shape index: {2}]  }
   0x1   :  { %14 = vsyncpa [#allocation5], 0  ;;  %s33_s26 = sshll.u32 %s403_s2, 4  ;;  %s298_s27 = smov [#allocation4]   ;;  %s34_s26 = int_to_ptr.hbm [resolvable:$true] %s33_s26 }
   0x2   :  { %s35_s28 = sshll.u32 %s298_s27, 4  ;;  %s22_s8 = sshll.u32 %s402_s1, 4  ;;  %s36_s28 = int_to_ptr.vmem [resolvable:$true] %s35_s28  ;;  %s23_s8 = int_to_ptr.hbm [resolvable:$true] %s22_s8 }
   0x3   :  { %38 = dma.hbm_to_vmem [thread:$0]  %s34_s26, 16, %s36_s28, [#allocation5]  }
   0x4   :  { %s299_s9 = smov [#allocation2]   ;;  %s46_s13 = sshll.u32 %s405_s4, 4  ;;  %s47_s13 = int_to_ptr.hbm [resolvable:$true] %s46_s13 }
   0x5   :  { %s24_s10 = sshll.u32 %s299_s9, 4  ;;  %s300_s2 = smov [#allocation6]   ;;  %s25_s10 = int_to_ptr.vmem [resolvable:$true] %s24_s10 }
   0x6   :  { %27 = dma.hbm_to_vmem [thread:$0]  %s23_s8, 16, %s25_s10, [#allocation3]  }
   0x7   :  { %s48_s14 = sshll.u32 %s300_s2, 4  ;;  %s49_s14 = int_to_ptr.vmem [resolvable:$true] %s48_s14 }
   0x8   :  { %51 = dma.hbm_to_vmem [thread:$0]  %s47_s13, 16, %s49_s14, [#allocation5]  }
   0x9   :  { %294 = dma.done.wait [#allocation3], 16  }
   0xa   :  { %295 = vsyncadd [#allocation3], 4294967280 }
   0xb   :  { %296 = dma.done.wait [#allocation5], 32  }
   0xc   :  { %297 = vsyncadd [#allocation5], 4294967264  ;;  %vm66_vm0 = vcmask 261120   ;;  %v64_v0 = vld [vmem:[%s401_s0] sm:$0xff]  ;;  %v65_v2 = vld [vmem:[%s401_s0 + $0x8] sm:$0xff]  ;;  %v301_v4 = vmov 32.0  }
   0xd   :  { %v67_v1 = vsel %vm66_vm0, %v64_v0, 0.0  ;;  %v70_v3 = vsel %vm66_vm0, %v65_v2, 0.0  ;;  %216 = vrcp.f32 %v301_v4  ;;  %v133_v21 = vld [vmem:[%s404_s3 + $0x18] sm:$0xff]  ;;  %v132_v22 = vld [vmem:[%s404_s3 + $0x10] sm:$0xff]  ;;  %v131_v23 = vld [vmem:[%s404_s3 + $0x8] sm:$0xff]  ;;  %s302_s25 = smov 64  }
   0xe   :  { %68 = vadd.xlane.f32.xlu0 %v67_v1  ;;  %156 = vmatpush.msra.mxu0 %v133_v21  ;;  %v130_v24 = vld [vmem:[%s404_s3] sm:$0xff]  ;;  %s303_s26 = smov 96  }
   0xf   :  { %203 = vmatpush.msra.mxu1 %v133_v21  ;;  %v213_v39 = vld [vmem:[#allocation2] ss:$0 sm:$0xff]  ;;  %v214_v43 = vld [vmem:[#allocation4] ss:$0 sm:$0xff]  ;;  %v215_v53 = vld [vmem:[#allocation6] ss:$0 sm:$0xff] }
  0x10   :  { %157 = vmatpush.msra.mxu0 %v132_v22 }
  0x11   :  { %204 = vmatpush.msra.mxu1 %v132_v22 }
  0x12   :  { %158 = vmatpush.msra.mxu0 %v131_v23 }
  0x13   :  { %v217_v5 = vpop.eup %216  ;;  %205 = vmatpush.msra.mxu1 %v131_v23 }
  0x14   :  { %v74_v6 = vmul.f32 32.0, %v217_v5  ;;  %vm78_vm1 = vweird.f32 %v217_v5  ;;  %159 = vmatpush.msra.mxu0 %v130_v24 }
  0x15   :  { %206 = vmatpush.msra.mxu1 %v130_v24 }
  0x16   :  { %71 = vadd.xlane.f32.xlu0 %v70_v3  ;;  %v75_v7 = vsub.f32 1.0, %v74_v6 }
  0x18   :  { %v76_v8 = vmul.f32 %v217_v5, %v75_v7 }
  0x1a   :  { %v77_v9 = vadd.f32 %v217_v5, %v76_v8 }
  0x1c   :  { %v79_v10 = vsel %vm78_vm1, %v217_v5, %v77_v9 }
  0x81   :  { %v69_v11 = vpop.xlane.xlu0 %68 }
  0x82   :  { %v80_v12 = vmul.f32 %v79_v10, %v69_v11 }
  0x84   :  { %v82_v13 = vsub.f32 %v64_v0, %v80_v12 }
  0x86   :  { %v84_v14 = vmul.f32 %v82_v13, %v82_v13 }
  0x88   :  { %v86_v15 = vsel %vm66_vm0, %v84_v14, 0.0 }
  0x89   :  { %87 = vadd.xlane.f32.xlu1 %v86_v15  ;;  %v72_v16 = vpop.xlane.xlu0 %71 }
  0x8a   :  { %v81_v17 = vmul.f32 %v79_v10, %v72_v16 }
  0x8c   :  { %v83_v18 = vsub.f32 %v65_v2, %v81_v17 }
  0x8e   :  { %v85_v19 = vmul.f32 %v83_v18, %v83_v18 }
  0x90   :  { %v89_v20 = vsel %vm66_vm0, %v85_v19, 0.0 }
  0x91   :  { %90 = vadd.xlane.f32.xlu1 %v89_v20 }
  0xfc   :  { %v88_v25 = vpop.xlane.xlu1 %87 }
  0xfd   :  { %v92_v26 = vmul.f32 %v88_v25, %v79_v10 }
  0xff   :  { %v94_v27 = vadd.f32 1e-05, %v92_v26 }
 0x101   :  { %218 = vrsqrt.f32 %v94_v27  ;;  %vm102_vm3 = vweird.f32 %v94_v27 }
 0x104   :  { %v91_v28 = vpop.xlane.xlu1 %90 }
 0x105   :  { %v93_v29 = vmul.f32 %v91_v28, %v79_v10 }
 0x107   :  { %v219_v30 = vpop.eup %218  ;;  %v95_v31 = vadd.f32 1e-05, %v93_v29 }
 0x108   :  { %v97_v32 = vmul.f32 %v219_v30, %v94_v27  ;;  %vm103_vm2 = vweird.f32 %v219_v30 }
 0x109   :  { %220 = vrsqrt.f32 %v95_v31  ;;  %vm104_vm4 = vmor %vm102_vm3, %vm103_vm2  ;;  %vm112_vm6 = vweird.f32 %v95_v31 }
 0x10a   :  { %v98_v33 = vmul.f32 %v219_v30, %v97_v32 }
 0x10c   :  { %v99_v34 = vmul.f32 0.5, %v98_v33 }
 0x10e   :  { %v100_v35 = vsub.f32 1.5, %v99_v34 }
 0x10f   :  { %v221_v36 = vpop.eup %220 }
 0x110   :  { %v101_v37 = vmul.f32 %v219_v30, %v100_v35  ;;  %v107_v38 = vmul.f32 %v221_v36, %v95_v31  ;;  %vm113_vm5 = vweird.f32 %v221_v36 }
 0x111   :  { %vm114_vm7 = vmor %vm112_vm6, %vm113_vm5 }
 0x112   :  { %v105_v40 = vsel %vm104_vm4, %v219_v30, %v101_v37  ;;  %v108_v41 = vmul.f32 %v221_v36, %v107_v38 }
 0x113   :  { %v116_v42 = vmul.f32 %v105_v40, %v82_v13 }
 0x114   :  { %v109_v44 = vmul.f32 0.5, %v108_v41 }
 0x115   :  { %v122_v45 = vmul.f32 %v213_v39, %v116_v42 }
 0x116   :  { %v110_v46 = vsub.f32 1.5, %v109_v44 }
 0x117   :  { %v128_v47 = vadd.f32 %v214_v43, %v122_v45 }
 0x118   :  { %v111_v48 = vmul.f32 %v221_v36, %v110_v46 }
 0x119   :  { %201 = vmatmul.msk.f32.vlgmr.msra.gmra.mxu0 %vm66_vm0, %v128_v47 }
 0x11a   :  { %v115_v49 = vsel %vm114_vm7, %v221_v36, %v111_v48 }
 0x11b   :  { %v117_v50 = vmul.f32 %v115_v49, %v83_v18 }
 0x11d   :  { %v123_v51 = vmul.f32 %v213_v39, %v117_v50 }
 0x11f   :  { %v129_v52 = vadd.f32 %v214_v43, %v123_v51 }
 0x121   :  { %202 = vmatmul.msk.f32.vlgmr.msra.gmra.mxu1 %vm66_vm0, %v129_v52 }
 0x196   :  { %v161_v54 = vpop.f32.mrf.mxu0 }
 0x197   :  { %v162_v55 = vadd.f32 %v215_v53, %v161_v54 }
 0x199   :  { %167 = vst.msk [vmem:[%s406_s5] sm:$0xff] %vm66_vm0, %v162_v55  ;;  %179 = vrot.lane.b32.xlu0 %v162_v55, %s302_s25  ;;  %171 = vrot.lane.b32.xlu2 %v162_v55, %s303_s26 }
 0x19e   :  { %v164_v56 = vpop.f32.mrf.mxu1 }
 0x19f   :  { %v165_v57 = vadd.f32 %v215_v53, %v164_v56 }
 0x1a1   :  { %168 = vst.msk [vmem:[%s406_s5 + $0x8] sm:$0xff] %vm66_vm0, %v165_v57  ;;  %181 = vrot.lane.b32.xlu1 %v165_v57, %s302_s25  ;;  %173 = vrot.lane.b32.xlu2 %v165_v57, %s303_s26 }
 0x1f3   :  { %v172_v58 = vpop.permute.xlu2 %171 }
 0x1f4   :  { %177 = vst.msk [vmem:[%s407_s6] sm:$0xff] %vm66_vm0, %v172_v58 }
 0x1fb   :  { %v174_v59 = vpop.permute.xlu2 %173 }
 0x1fc   :  { %178 = vst.msk [vmem:[%s407_s6 + $0x8] sm:$0xff] %vm66_vm0, %v174_v59 }
 0x20b   :  { %v180_v60 = vpop.permute.xlu0 %179 }
 0x20c   :  { %185 = vst.msk [vmem:[%s408_s7] sm:$0xff] %vm66_vm0, %v180_v60 }
 0x213   :  { %v182_v61 = vpop.permute.xlu1 %181 }
 0x214   :  { %186 = vst.msk [vmem:[%s408_s7 + $0x8] sm:$0xff] %vm66_vm0, %v182_v61 }
 0x215   :  { %199 = vsyncpa [#allocation3], 1 }
 0x216   :  { %200 = vsyncpa [#allocation5], 1 }

// kernel: esm_encoder_forward.11
= control target key start
LH: loop header
LB: loop body
LE: loop exit
PB: predicated region body
PF: predicated region fallthrough
CT: control target
= control target key end

     0   :  { %10 = vsyncpa [#allocation3], 0  ;;  %s363_s0 = inlined_call_operand.vmem [shape: f32[16,32], index: 0, kind: input, shape index: {}]   ;;  %s364_s1 = inlined_call_operand.hbm [shape: f32[1,32], index: 1, kind: input, shape index: {}]   ;;  %s365_s2 = inlined_call_operand.hbm [shape: f32[1,32], index: 2, kind: input, shape index: {}]   ;;  %s366_s3 = inlined_call_operand.vmem [shape: f32[32,64], index: 3, kind: input, shape index: {}]   ;;  %s367_s4 = inlined_call_operand.hbm [shape: f32[1,64], index: 4, kind: input, shape index: {}]   ;;  %s368_s5 = inlined_call_operand.vmem [shape: f32[16,64], index: 5, kind: output, shape index: {}]  }
   0x1   :  { %11 = vsyncpa [#allocation5], 0  ;;  %s30_s20 = sshll.u32 %s365_s2, 4  ;;  %s290_s21 = smov [#allocation4]   ;;  %s31_s20 = int_to_ptr.hbm [resolvable:$true] %s30_s20 }
   0x2   :  { %s32_s22 = sshll.u32 %s290_s21, 4  ;;  %s19_s25 = sshll.u32 %s364_s1, 4  ;;  %s33_s22 = int_to_ptr.vmem [resolvable:$true] %s32_s22  ;;  %s20_s25 = int_to_ptr.hbm [resolvable:$true] %s19_s25 }
   0x3   :  { %35 = dma.hbm_to_vmem [thread:$0]  %s31_s20, 16, %s33_s22, [#allocation5]  }
   0x4   :  { %s291_s26 = smov [#allocation2]   ;;  %s43_s30 = sshll.u32 %s367_s4, 4  ;;  %s44_s30 = int_to_ptr.hbm [resolvable:$true] %s43_s30 }
   0x5   :  { %s21_s27 = sshll.u32 %s291_s26, 4  ;;  %s292_s2 = smov [#allocation6]   ;;  %s22_s27 = int_to_ptr.vmem [resolvable:$true] %s21_s27 }
   0x6   :  { %24 = dma.hbm_to_vmem [thread:$0]  %s20_s25, 16, %s22_s27, [#allocation3]  }
   0x7   :  { %s45_s6 = sshll.u32 %s292_s2, 4  ;;  %s46_s6 = int_to_ptr.vmem [resolvable:$true] %s45_s6 }
   0x8   :  { %48 = dma.hbm_to_vmem [thread:$0]  %s44_s30, 16, %s46_s6, [#allocation5]  }
   0x9   :  { %286 = dma.done.wait [#allocation3], 16  }
   0xa   :  { %287 = vsyncadd [#allocation3], 4294967280 }
   0xb   :  { %288 = dma.done.wait [#allocation5], 32  }
   0xc   :  { %289 = vsyncadd [#allocation5], 4294967264  ;;  %vm63_vm0 = vcmask 261120   ;;  %v61_v0 = vld [vmem:[%s363_s0] sm:$0xff]  ;;  %v62_v2 = vld [vmem:[%s363_s0 + $0x8] sm:$0xff]  ;;  %v293_v4 = vmov 32.0  }
   0xd   :  { %v64_v1 = vsel %vm63_vm0, %v61_v0, 0.0  ;;  %v67_v3 = vsel %vm63_vm0, %v62_v2, 0.0  ;;  %204 = vrcp.f32 %v293_v4  ;;  %v130_v21 = vld [vmem:[%s366_s3 + $0x18] sm:$0xff]  ;;  %v129_v22 = vld [vmem:[%s366_s3 + $0x10] sm:$0xff]  ;;  %v128_v23 = vld [vmem:[%s366_s3 + $0x8] sm:$0xff]  ;;  %vm182_vm8 = vcmask 523264  }
   0xe   :  { %65 = vadd.xlane.f32.xlu0 %v64_v1  ;;  %153 = vmatpush.msra.mxu0 %v130_v21  ;;  %v127_v24 = vld [vmem:[%s366_s3] sm:$0xff] }
   0xf   :  { %193 = vmatpush.msra.mxu1 %v130_v21  ;;  %v201_v39 = vld [vmem:[#allocation2] ss:$0 sm:$0xff]  ;;  %v202_v43 = vld [vmem:[#allocation4] ss:$0 sm:$0xff]  ;;  %v203_v53 = vld [vmem:[#allocation6] ss:$0 sm:$0xff] }
  0x10   :  { %154 = vmatpush.msra.mxu0 %v129_v22 }
  0x11   :  { %194 = vmatpush.msra.mxu1 %v129_v22 }
  0x12   :  { %155 = vmatpush.msra.mxu0 %v128_v23 }
  0x13   :  { %v205_v5 = vpop.eup %204  ;;  %195 = vmatpush.msra.mxu1 %v128_v23 }
  0x14   :  { %v71_v6 = vmul.f32 32.0, %v205_v5  ;;  %vm75_vm1 = vweird.f32 %v205_v5  ;;  %156 = vmatpush.msra.mxu0 %v127_v24 }
  0x15   :  { %196 = vmatpush.msra.mxu1 %v127_v24 }
  0x16   :  { %68 = vadd.xlane.f32.xlu0 %v67_v3  ;;  %v72_v7 = vsub.f32 1.0, %v71_v6 }
  0x18   :  { %v73_v8 = vmul.f32 %v205_v5, %v72_v7 }
  0x1a   :  { %v74_v9 = vadd.f32 %v205_v5, %v73_v8 }
  0x1c   :  { %v76_v10 = vsel %vm75_vm1, %v205_v5, %v74_v9 }
  0x81   :  { %v66_v11 = vpop.xlane.xlu0 %65 }
  0x82   :  { %v77_v12 = vmul.f32 %v76_v10, %v66_v11 }
  0x84   :  { %v79_v13 = vsub.f32 %v61_v0, %v77_v12 }
  0x86   :  { %v81_v14 = vmul.f32 %v79_v13, %v79_v13 }
  0x88   :  { %v83_v15 = vsel %vm63_vm0, %v81_v14, 0.0 }
  0x89   :  { %84 = vadd.xlane.f32.xlu1 %v83_v15  ;;  %v69_v16 = vpop.xlane.xlu0 %68 }
  0x8a   :  { %v78_v17 = vmul.f32 %v76_v10, %v69_v16 }
  0x8c   :  { %v80_v18 = vsub.f32 %v62_v2, %v78_v17 }
  0x8e   :  { %v82_v19 = vmul.f32 %v80_v18, %v80_v18 }
  0x90   :  { %v86_v20 = vsel %vm63_vm0, %v82_v19, 0.0 }
  0x91   :  { %87 = vadd.xlane.f32.xlu1 %v86_v20 }
  0xfc   :  { %v85_v25 = vpop.xlane.xlu1 %84 }
  0xfd   :  { %v89_v26 = vmul.f32 %v85_v25, %v76_v10 }
  0xff   :  { %v91_v27 = vadd.f32 1e-05, %v89_v26 }
 0x101   :  { %206 = vrsqrt.f32 %v91_v27  ;;  %vm99_vm3 = vweird.f32 %v91_v27 }
 0x104   :  { %v88_v28 = vpop.xlane.xlu1 %87 }
 0x105   :  { %v90_v29 = vmul.f32 %v88_v28, %v76_v10 }
 0x107   :  { %v207_v30 = vpop.eup %206  ;;  %v92_v31 = vadd.f32 1e-05, %v90_v29 }
 0x108   :  { %v94_v32 = vmul.f32 %v207_v30, %v91_v27  ;;  %vm100_vm2 = vweird.f32 %v207_v30 }
 0x109   :  { %208 = vrsqrt.f32 %v92_v31  ;;  %vm101_vm4 = vmor %vm99_vm3, %vm100_vm2  ;;  %vm109_vm6 = vweird.f32 %v92_v31 }
 0x10a   :  { %v95_v33 = vmul.f32 %v207_v30, %v94_v32 }
 0x10c   :  { %v96_v34 = vmul.f32 0.5, %v95_v33 }
 0x10e   :  { %v97_v35 = vsub.f32 1.5, %v96_v34 }
 0x10f   :  { %v209_v36 = vpop.eup %208 }
 0x110   :  { %v98_v37 = vmul.f32 %v207_v30, %v97_v35  ;;  %v104_v38 = vmul.f32 %v209_v36, %v92_v31  ;;  %vm110_vm5 = vweird.f32 %v209_v36 }
 0x111   :  { %vm111_vm7 = vmor %vm109_vm6, %vm110_vm5 }
 0x112   :  { %v102_v40 = vsel %vm101_vm4, %v207_v30, %v98_v37  ;;  %v105_v41 = vmul.f32 %v209_v36, %v104_v38 }
 0x113   :  { %v113_v42 = vmul.f32 %v102_v40, %v79_v13 }
 0x114   :  { %v106_v44 = vmul.f32 0.5, %v105_v41 }
 0x115   :  { %v119_v45 = vmul.f32 %v201_v39, %v113_v42 }
 0x116   :  { %v107_v46 = vsub.f32 1.5, %v106_v44 }
 0x117   :  { %v125_v47 = vadd.f32 %v202_v43, %v119_v45 }
 0x118   :  { %v108_v48 = vmul.f32 %v209_v36, %v107_v46 }
 0x119   :  { %191 = vmatmul.msk.f32.vlgmr.msra.gmra.mxu0 %vm63_vm0, %v125_v47 }
 0x11a   :  { %v112_v49 = vsel %vm111_vm7, %v209_v36, %v108_v48 }
 0x11b   :  { %v114_v50 = vmul.f32 %v112_v49, %v80_v18 }
 0x11d   :  { %v120_v51 = vmul.f32 %v201_v39, %v114_v50 }
 0x11f   :  { %v126_v52 = vadd.f32 %v202_v43, %v120_v51 }
 0x121   :  { %192 = vmatmul.msk.f32.vlgmr.msra.gmra.mxu1 %vm63_vm0, %v126_v52 }
 0x196   :  { %v158_v54 = vpop.f32.mrf.mxu0 }
 0x197   :  { %v159_v55 = vadd.f32 %v203_v53, %v158_v54 }
 0x199   :  { %v166_v56 = vmul.f32 0.044715, %v159_v55  ;;  %v164_v5 = vmul.f32 0.5, %v159_v55 }
 0x19b   :  { %v168_v57 = vmul.f32 %v166_v56, %v159_v55 }
 0x19d   :  { %v170_v58 = vmul.f32 %v168_v57, %v159_v55 }
 0x19e   :  { %v161_v59 = vpop.f32.mrf.mxu1 }
 0x19f   :  { %v172_v60 = vadd.f32 %v170_v58, %v159_v55  ;;  %v162_v61 = vadd.f32 %v203_v53, %v161_v59 }
 0x1a1   :  { %v174_v62 = vmul.f32 0.7978846, %v172_v60  ;;  %v167_v63 = vmul.f32 0.044715, %v162_v61  ;;  %v165_v9 = vmul.f32 0.5, %v162_v61 }
 0x1a3   :  { %210 = vtanh.f32 %v174_v62  ;;  %v169_v0 = vmul.f32 %v167_v63, %v162_v61 }
 0x1a5   :  { %v171_v1 = vmul.f32 %v169_v0, %v162_v61 }
 0x1a7   :  { %v173_v2 = vadd.f32 %v171_v1, %v162_v61 }
 0x1a9   :  { %v211_v3 = vpop.eup %210  ;;  %v175_v4 = vmul.f32 0.7978846, %v173_v2 }
 0x1aa   :  { %v178_v6 = vadd.f32 1.0, %v211_v3 }
 0x1ab   :  { %212 = vtanh.f32 %v175_v4 }
 0x1ac   :  { %v180_v7 = vmul.f32 %v178_v6, %v164_v5 }
 0x1ae   :  { %183 = vst.msk [vmem:[%s368_s5] sm:$0xff] %vm182_vm8, %v180_v7 }
 0x1b1   :  { %v213_v8 = vpop.eup %212 }
 0x1b2   :  { %v179_v10 = vadd.f32 1.0, %v213_v8 }
 0x1b4   :  { %v181_v11 = vmul.f32 %v179_v10, %v165_v9 }
 0x1b6   :  { %184 = vst.msk [vmem:[%s368_s5 + $0x8] sm:$0xff] %vm182_vm8, %v181_v11 }
 0x1b7   :  { %189 = vsyncpa [#allocation3], 1 }
 0x1b8   :  { %190 = vsyncpa [#allocation5], 1 }

// kernel: esm_encoder_forward.10
= control target key start
LH: loop header
LB: loop body
LE: loop exit
PB: predicated region body
PF: predicated region fallthrough
CT: control target
= control target key end

     0   :  { %15 = vsyncpa [#allocation3], 0  ;;  %s1377_s13 = smov 0   ;;  %s1379_s14 = smov 0   ;;  %s1591_s0 = inlined_call_operand.vmem [shape: f32[2,8,32], index: 0, kind: input, shape index: {}]   ;;  %s1592_s1 = inlined_call_operand.vmem [shape: f32[2,8,32], index: 1, kind: input, shape index: {}]   ;;  %s1593_s2 = inlined_call_operand.vmem [shape: f32[2,8,32], index: 2, kind: input, shape index: {}]   ;;  %s1594_s3 = inlined_call_operand.vmem [shape: f32[8,8], index: 3, kind: input, shape index: {}, may-alias: {3,5}]   ;;  %s1595_s4 = inlined_call_operand.vmem [shape: f32[8,8], index: 4, kind: input, shape index: {}, may-alias: {4,6}]   ;;  %s1596_s5 = inlined_call_operand.vmem [shape: f32[8,8], index: 5, kind: input, shape index: {}, may-alias: {3,5}]   ;;  %s1597_s6 = inlined_call_operand.vmem [shape: f32[8,8], index: 6, kind: input, shape index: {}, may-alias: {4,6}]   ;;  %s1598_s7 = inlined_call_operand.vmem [shape: f32[32,32], index: 7, kind: input, shape index: {}]   ;;  %s1599_s8 = inlined_call_operand.hbm [shape: f32[1,32], index: 8, kind: input, shape index: {}]   ;;  %s1600_s9 = inlined_call_operand.vmem [shape: f32[2,8,32], index: 9, kind: input, shape index: {}]   ;;  %s1601_s10 = inlined_call_operand.vmem [shape: f32[2,8,32], index: 10, kind: output, shape index: {}]  }
   0x1   :  { %s1381_s15 = smov 0  }
   0x2 LB: > { %s1166_s16 = sadd.s32 4294967295, %s1311_s15   ;;  %s33_s17 = sadd.s32 1, %s1307_s14  ;;  %s1311_s15 = sphi %s1381_s15, %s21_s15   ;;  %s1307_s14 = sphi %s1379_s14, %s1603_s14   ;;  %s1303_s13 = sphi %s1377_s13, %s1602_s13  }
   0x3   : > { %p35_p0 = scmp.ge.s32.totalorder %s33_s17, 2  ;;  %p1168_p1 = scmp.ge.s32.totalorder %s1311_s15, 1 }
   0x4   : > { %p310_p2 = scmp.lt.s32.totalorder %s1311_s15, 3  ;;  %p1203_p4 = scmp.eq.s32.totalorder %s1166_s16, 0 }
   0x5   : > { %s1605_s17 = smov (%p35_p0, %s33_s17), 0  ;;  %s345_s20 = sshll.u32 %s1599_s8, 4  ;;  %s346_s20 = int_to_ptr.hbm [resolvable:$true] %s345_s20 }
   0x6   : > { %p311_p3 = pnand %p1168_p1, %p310_p2  ;;  %s1313_s21 = smov [#allocation2]  }
   0x7   : > { %s347_s22 = sshll.u32 %s1313_s21, 4  ;;  %s348_s22 = int_to_ptr.vmem [resolvable:$true] %s347_s22 }
   0x8   : > { %p1199_p5 = pneg %p311_p3  ;;  %394 = sbr.rel (%p311_p3) target bundleno = 1273 (0x4f9), region = 60 }
   0xa   : > { %p1200_p6 = pnand %p1203_p4, %p1199_p5 }
   0xc   : > { %1202 = dma.hbm_to_vmem [thread:$0]  (!%p1200_p6), %s346_s20, 16, %s348_s22, [#allocation3]  }
   0xd   : > { %1298 = dma.done.wait (%p1203_p4), [#allocation3], 16  }
   0xe   : > { %1300 = vsyncadd (%p1203_p4), [#allocation3], 4294967280  ;;  %p460_p7 = scmp.lt.s32.totalorder %s1303_s13, 1  ;;  %s1314_s30 = smov 112   ;;  %v591_v8 = vld [vmem:[%s1597_s6] sm:$0xff]  ;;  %vm537_vm0 = vcmask 1047616  }
   0xf   : > { %s1315_s11 = smov 120   ;;  %s1316_s12 = smov 104   ;;  %v532_v10 = vld [vmem:[%s1595_s4] sm:$0xff]  ;;  %vm648_vm1 = vcmask 64512  }
  0x10   : > { %s1607_s13 = smov (!%p460_p7, %s1303_s13), 1  ;;  %s1318_s19 = smov 4   ;;  %v590_v46 = vld [vmem:[%s1596_s5] sm:$0xff] }
  0x11   : > { %s1399_s23 = sshll.u32 %s1607_s13, 3  ;;  %s1317_s13 = smov 8   ;;  %v531_v56 = vld [vmem:[%s1594_s3] sm:$0xff] }
  0x12   : > { %s470_s26 = scalar_lea.vmem %s1592_s1, %s1399_s23  ;;  %s466_s29 = scalar_lea.vmem %s1591_s0, %s1399_s23 }
  0x13   : > { %v1409_v0 = vld [vmem:[%s470_s26] sm:$0xff]  ;;  %s1319_s22 = smov 124   ;;  %s474_s16 = scalar_lea.vmem %s1593_s2, %s1399_s23 }
  0x14   : > { %v1411_v1 = vld [vmem:[%s466_s29] sm:$0xff]  ;;  %515 = vrot.lane.b32.xlu0 %v1409_v0, %s1314_s30  ;;  %512 = vrot.lane.b32.xlu2 %v1409_v0, %s1315_s11  ;;  %s489_s27 = scalar_lea.vmem %s1600_s9, %s1399_s23 }
  0x15   : > { %505 = vrot.lane.b32.xlu1 %v1411_v1, %s1314_s30 }
  0x1c   : > { %518 = vrot.lane.b32.xlu0 %v1409_v0, %s1316_s12  ;;  %502 = vrot.lane.b32.xlu2 %v1411_v1, %s1315_s11 }
  0x1d   : > { %508 = vrot.lane.b32.xlu1 %v1411_v1, %s1316_s12 }
  0x6e   : > { %v1425_v2 = vpop.permute.xlu2 %512 }
  0x76   : > { %v1435_v5 = vpop.permute.xlu2 %502 }
  0x86   : > { %v1427_v3 = vpop.permute.xlu0 %515 }
  0x87   : > { %v1429_v4 = vpop.permute.xlu1 %505  ;;  %602 = vrot.lane.b32.xlu0 %v1427_v3, %s1317_s13  ;;  %v594_v53 = vmul.f32 %v590_v46, %v1427_v3 }
  0x88   : > { %544 = vrot.lane.b32.xlu2 %v1429_v4, %s1317_s13  ;;  %v535_v57 = vmul.f32 %v531_v56, %v1429_v4 }
  0x8e   : > { %v1437_v6 = vpop.permute.xlu0 %518 }
  0x8f   : > { %v1439_v7 = vpop.permute.xlu1 %508  ;;  %605 = vrot.lane.b32.xlu1 %v1437_v6, %s1317_s13  ;;  %v595_v47 = vmul.f32 %v590_v46, %v1437_v6 }
  0x90   : > { %541 = vrot.lane.b32.xlu2 %v1435_v5, %s1317_s13  ;;  %547 = vrot.lane.b32.xlu0 %v1439_v7, %s1317_s13  ;;  %v536_v61 = vmul.f32 %v531_v56, %v1439_v7 }
  0x97   : > { %599 = vrot.lane.b32.xlu1 %v1425_v2, %s1317_s13 }
  0x98   : > { %621 = vrot.lane.b32.xlu2 %v591_v8, %s1318_s19  ;;  %v593_v8 = vmul.f32 %v590_v46, %v1425_v2 }
  0xa0   : > { %563 = vrot.lane.b32.xlu2 %v532_v10, %s1318_s19 }
  0xa8   : > { %538 = vrot.lane.b32.xlu2 %v1411_v1, %s1317_s13 }
  0xe2   : > { %v545_v12 = vpop.permute.xlu2 %544 }
  0xe3   : > { %v546_v14 = vsel %vm537_vm0, %v545_v12, %v1429_v4  ;;  %v592_v12 = vmul.f32 %v590_v46, %v1409_v0 }
  0xea   : > { %v542_v18 = vpop.permute.xlu2 %541 }
  0xeb   : > { %v543_v20 = vsel %vm537_vm0, %v542_v18, %v1435_v5 }
  0xf2   : > { %v622_v22 = vpop.permute.xlu2 %621 }
  0xf9   : > { %v603_v9 = vpop.permute.xlu0 %602 }
  0xfa   : > { %v604_v11 = vsel %vm537_vm0, %v603_v9, %v1427_v3  ;;  %v564_v26 = vpop.permute.xlu2 %563 }
  0xfb   : > { %612 = vrot.lane.b32.xlu0 %v604_v11, %s1317_s13  ;;  %v534_v11 = vmul.f32 %v531_v56, %v1435_v5 }
 0x101   : > { %v606_v13 = vpop.permute.xlu1 %605 }
 0x102   : > { %v607_v15 = vsel %vm537_vm0, %v606_v13, %v1437_v6  ;;  %v548_v16 = vpop.permute.xlu0 %547  ;;  %v539_v33 = vpop.permute.xlu2 %538 }
 0x103   : > { %554 = vrot.lane.b32.xlu0 %v546_v14, %s1317_s13  ;;  %614 = vrot.lane.b32.xlu1 %v607_v15, %s1317_s13  ;;  %v549_v17 = vsel %vm537_vm0, %v548_v16, %v1439_v7  ;;  %v540_v37 = vsel %vm537_vm0, %v539_v33, %v1411_v1  ;;  %v533_v15 = vmul.f32 %v531_v56, %v1411_v1 }
 0x109   : > { %v600_v19 = vpop.permute.xlu1 %599 }
 0x10a   : > { %v601_v21 = vsel %vm537_vm0, %v600_v19, %v1425_v2 }
 0x10b   : > { %596 = vrot.lane.b32.xlu0 %v1409_v0, %s1317_s13  ;;  %556 = vrot.lane.b32.xlu1 %v549_v17, %s1317_s13 }
 0x113   : > { %552 = vrot.lane.b32.xlu0 %v543_v20, %s1317_s13  ;;  %610 = vrot.lane.b32.xlu1 %v601_v21, %s1317_s13 }
 0x16d   : > { %v613_v23 = vpop.permute.xlu0 %612 }
 0x16e   : > { %v618_v24 = vsel %vm537_vm0, %v613_v23, %v1427_v3 }
 0x16f   : > { %v626_v25 = vmul.f32 %v622_v22, %v618_v24 }
 0x171   : > { %636 = vrot.lane.b32.xlu1 %v626_v25, %s1319_s22 }
 0x175   : > { %v555_v27 = vpop.permute.xlu0 %554  ;;  %v615_v28 = vpop.permute.xlu1 %614 }
 0x176   : > { %v560_v29 = vsel %vm537_vm0, %v555_v27, %v1429_v4  ;;  %v619_v30 = vsel %vm537_vm0, %v615_v28, %v1437_v6 }
 0x177   : > { %v627_v31 = vmul.f32 %v622_v22, %v619_v30  ;;  %v568_v32 = vmul.f32 %v564_v26, %v560_v29  ;;  %v500_v29 = vld [vmem:[%s474_s16] sm:$0xff]  ;;  %s496_s16 = scalar_lea.vmem %s1601_s10, %s1399_s23 }
 0x179   : > { %578 = vrot.lane.b32.xlu0 %v568_v32, %s1319_s22  ;;  %638 = vrot.lane.b32.xlu2 %v627_v31, %s1319_s22 }
 0x17d   : > { %v597_v34 = vpop.permute.xlu0 %596  ;;  %v557_v35 = vpop.permute.xlu1 %556 }
 0x17e   : > { %v561_v36 = vsel %vm537_vm0, %v557_v35, %v1439_v7  ;;  %v598_v38 = vsel %vm537_vm0, %v597_v34, %v1409_v0 }
 0x17f   : > { %v569_v39 = vmul.f32 %v564_v26, %v561_v36 }
 0x181   : > { %550 = vrot.lane.b32.xlu0 %v540_v37, %s1317_s13  ;;  %608 = vrot.lane.b32.xlu2 %v598_v38, %s1317_s13 }
 0x182   : > { %580 = vrot.lane.b32.xlu1 %v569_v39, %s1319_s22 }
 0x185   : > { %v553_v40 = vpop.permute.xlu0 %552  ;;  %v611_v41 = vpop.permute.xlu1 %610 }
 0x186   : > { %v559_v42 = vsel %vm537_vm0, %v553_v40, %v1435_v5  ;;  %v617_v43 = vsel %vm537_vm0, %v611_v41, %v1425_v2  ;;  %v757_v2 = vlaneseq }
 0x187   : > { %v567_v44 = vmul.f32 %v564_v26, %v559_v42  ;;  %v625_v45 = vmul.f32 %v622_v22, %v617_v43 }
 0x188   : > { %v758_v18 = vshrl.u32 %v757_v2, 7  ;;  %v762_v5 = vand.u32 127, %v757_v2 }
 0x189   : > { %576 = vrot.lane.b32.xlu2 %v567_v44, %s1319_s22 }
 0x18a   : > { %634 = vrot.lane.b32.xlu1 %v625_v45, %s1319_s22  ;;  %vm763_vm2 = vcmp.le.s32.totalorder %v762_v5, %v758_v18 }
 0x1d3   : > { %v639_v48 = vpop.permute.xlu2 %638 }
 0x1d4   : > { %v647_v49 = vadd.f32 %v639_v48, %v595_v47 }
 0x1d6   : > { %1186 = vmatpush.xpose.msk.msra.mxu3 %vm648_vm1, %v647_v49 }
 0x1db   : > { %v609_v50 = vpop.permute.xlu2 %608 }
 0x1dc   : > { %v616_v51 = vsel %vm537_vm0, %v609_v50, %v1409_v0 }
 0x1dd   : > { %v624_v52 = vmul.f32 %v622_v22, %v616_v51 }
 0x1df   : > { %632 = vrot.lane.b32.xlu0 %v624_v52, %s1319_s22 }
 0x1e3   : > { %v637_v54 = vpop.permute.xlu1 %636  ;;  %v577_v9 = vpop.permute.xlu2 %576 }
 0x1e4   : > { %v646_v55 = vadd.f32 %v637_v54, %v594_v53  ;;  %v587_v7 = vadd.f32 %v577_v9, %v534_v11 }
 0x1e6   : > { %1184 = vmatpush.xpose.msk.msra.mxu2 %vm648_vm1, %v646_v55 }
 0x1eb   : > { %v579_v58 = vpop.permute.xlu0 %578 }
 0x1ec   : > { %v588_v59 = vadd.f32 %v579_v58, %v535_v57 }
 0x1ee   : > { %1185 = vmatmul.msk.f32.vlgmr.msra.gmra.mxu2 %vm648_vm1, %v588_v59 }
 0x1f3   : > { %v551_v60 = vpop.permute.xlu0 %550 }
 0x1f4   : > { %v558_v62 = vsel %vm537_vm0, %v551_v60, %v1411_v1  ;;  %v581_v63 = vpop.permute.xlu1 %580 }
 0x1f5   : > { %v566_v3 = vmul.f32 %v564_v26, %v558_v62  ;;  %v589_v6 = vadd.f32 %v581_v63, %v536_v61 }
 0x1f7   : > { %1187 = vmatmul.msk.f32.vlgmr.msra.gmra.mxu3 %vm648_vm1, %v589_v6  ;;  %574 = vrot.lane.b32.xlu1 %v566_v3, %s1319_s22 }
 0x1fc   : > { %v635_v4 = vpop.permute.xlu1 %634 }
 0x1fd   : > { %v645_v10 = vadd.f32 %v635_v4, %v593_v8 }
 0x1ff   : > { %1182 = vmatpush.xpose.msk.msra.mxu1 %vm648_vm1, %v645_v10 }
 0x202   : > { %1183 = vmatmul.msk.f32.vlgmr.msra.gmra.mxu1 %vm648_vm1, %v587_v7 }
 0x251   : > { %v633_v13 = vpop.permute.xlu0 %632 }
 0x252   : > { %v644_v14 = vadd.f32 %v633_v13, %v592_v12 }
 0x254   : > { %1180 = vmatpush.xpose.msk.msra.mxu0 %vm648_vm1, %v644_v14 }
 0x258   : > { %884 = vmatpush.msrb.mxu0 %v500_v29 }
 0x269   : > { %v575_v16 = vpop.permute.xlu1 %574 }
 0x26a   : > { %v586_v17 = vadd.f32 %v575_v16, %v533_v15 }
 0x26c   : > { %1181 = vmatmul.msk.f32.vlgmr.msra.gmra.mxu0 %vm648_vm1, %v586_v17 }
 0x271   : > { %v724_v19 = vpop.f32.mrf.mxu2 }
 0x272   : > { %v755_v20 = vmul.f32 0.35355338, %v724_v19 }
 0x274   : > { %v768_v21 = vsel %vm763_vm2, %v755_v20, -1e+30 }
 0x275   : > { %v776_v0 = vsel %vm648_vm1, %v768_v21, -inf }
 0x276   : > { %777 = vmax.xlane.f32.xlu2 %v776_v0 }
 0x27a   : > { %v750_v22 = vpop.f32.mrf.mxu3 }
 0x27b   : > { %v756_v23 = vmul.f32 0.35355338, %v750_v22 }
 0x27d   : > { %v769_v1 = vsel %vm763_vm2, %v756_v23, -1e+30 }
 0x27e   : > { %v779_v24 = vsel %vm648_vm1, %v769_v1, -inf }
 0x27f   : > { %780 = vmax.xlane.f32.xlu0 %v779_v24  ;;  %v698_v25 = vpop.f32.mrf.mxu1 }
 0x280   : > { %v754_v26 = vmul.f32 0.35355338, %v698_v25 }
 0x282   : > { %v767_v27 = vsel %vm763_vm2, %v754_v26, -1e+30 }
 0x283   : > { %v773_v28 = vsel %vm648_vm1, %v767_v27, -inf }
 0x284   : > { %774 = vmax.xlane.f32.xlu1 %v773_v28 }
 0x2e9   : > { %v778_v30 = vpop.xlane.xlu2 %777  ;;  %v672_v31 = vpop.f32.mrf.mxu0 }
 0x2ea   : > { %v784_v32 = vsub.f32 %v768_v21, %v778_v30  ;;  %v753_v33 = vmul.f32 0.35355338, %v672_v31 }
 0x2ec   : > { %v790_v34 = vmul.f32 1.442695, %v784_v32  ;;  %v766_v35 = vsel %vm763_vm2, %v753_v33, -1e+30 }
 0x2ed   : > { %v770_v36 = vsel %vm648_vm1, %v766_v35, -inf }
 0x2ee   : > { %1239 = vpow2.f32 %v790_v34  ;;  %771 = vmax.xlane.f32.xlu2 %v770_v36 }
 0x2f2   : > { %v781_v37 = vpop.xlane.xlu0 %780 }
 0x2f3   : > { %v785_v38 = vsub.f32 %v769_v1, %v781_v37 }
 0x2f4   : > { %v1240_v39 = vpop.eup %1239 }
 0x2f5   : > { %v792_v40 = vmul.f32 1.442695, %v785_v38  ;;  %v800_v41 = vsel %vm648_vm1, %v1240_v39, 0.0 }
 0x2f6   : > { %801 = vadd.xlane.f32.xlu2 %v800_v41 }
 0x2f7   : > { %1241 = vpow2.f32 %v792_v40  ;;  %v775_v42 = vpop.xlane.xlu1 %774 }
 0x2f8   : > { %v783_v43 = vsub.f32 %v767_v27, %v775_v42 }
 0x2fa   : > { %v788_v44 = vmul.f32 1.442695, %v783_v43 }
 0x2fc   : > { %1243 = vpow2.f32 %v788_v44  ;;  %v978_v44 = vld [vmem:[%s1598_s7 + $0x18] sm:$0xff] }
 0x2fd   : > { %v1242_v45 = vpop.eup %1241  ;;  %999 = vmatpush.msra.mxu0 %v978_v44 }
 0x2fe   : > { %v803_v46 = vsel %vm648_vm1, %v1242_v45, 0.0 }
 0x2ff   : > { %804 = vadd.xlane.f32.xlu0 %v803_v46  ;;  %v976_v46 = vld [vmem:[%s1598_s7 + $0x8] sm:$0xff] }
 0x302   : > { %v1543_v47 = vpop.eup %1243 }
 0x303   : > { %v797_v48 = vsel %vm648_vm1, %v1543_v47, 0.0 }
 0x304   : > { %798 = vadd.xlane.f32.xlu1 %v797_v48 }
 0x30e   : > { %525 = vrot.lane.b32.xlu2 %v500_v29, %s1314_s30  ;;  %s1320_s30 = smov 16  }
 0x313   : > { %528 = vrot.lane.b32.xlu0 %v500_v29, %s1316_s12 }
 0x31d   : > { %522 = vrot.lane.b32.xlu1 %v500_v29, %s1315_s11  ;;  %s1321_s11 = smov 24  }
 0x361   : > { %v772_v49 = vpop.xlane.xlu2 %771 }
 0x362   : > { %v782_v50 = vsub.f32 %v766_v35, %v772_v49 }
 0x364   : > { %v786_v51 = vmul.f32 1.442695, %v782_v50 }
 0x366   : > { %1245 = vpow2.f32 %v786_v51 }
 0x369   : > { %v802_v52 = vpop.xlane.xlu2 %801 }
 0x36a   : > { %1247 = vrcp.f32 %v802_v52  ;;  %v847_v61 = vand.u32 2147483648, %v802_v52  ;;  %v845_v62 = vand.u32 2147483647, %v802_v52  ;;  %vm841_vm4 = vweird.f32 %v802_v52 }
 0x36c   : > { %v1550_v53 = vpop.eup %1245  ;;  %v848_v8 = vor.u32 1.1754944e-38, %v847_v61  ;;  %vm846_vm6 = vcmp.eq.f32.partialorder %v845_v62, 8.507059e+37 }
 0x36d   : > { %v794_v54 = vsel %vm648_vm1, %v1550_v53, 0.0 }
 0x36e   : > { %795 = vadd.xlane.f32.xlu0 %v794_v54 }
 0x370   : > { %v1248_v55 = vpop.eup %1247 }
 0x371   : > { %v837_v56 = vmul.f32 %v1248_v55, %v802_v52  ;;  %v526_v57 = vpop.permute.xlu2 %525  ;;  %vm842_vm3 = vweird.f32 %v1248_v55 }
 0x372   : > { %v805_v58 = vpop.xlane.xlu0 %804  ;;  %930 = vmatpush.msrb.mxu2 %v526_v57  ;;  %vm843_vm5 = vmor %vm841_vm4, %vm842_vm3  ;;  %vm971_vm4 = vcmask 130048   ;;  %v1007_v57 = vld [vmem:[%s489_s27] sm:$0xff] }
 0x373   : > { %v838_v59 = vsub.f32 1.0, %v837_v56  ;;  %1249 = vrcp.f32 %v805_v58  ;;  %v862_v12 = vand.u32 2147483648, %v805_v58  ;;  %v860_v15 = vand.u32 2147483647, %v805_v58 }
 0x374   : > { %vm856_vm8 = vweird.f32 %v805_v58 }
 0x375   : > { %v839_v60 = vmul.f32 %v1248_v55, %v838_v59  ;;  %v863_v17 = vor.u32 1.1754944e-38, %v862_v12  ;;  %vm861_vm10 = vcmp.eq.f32.partialorder %v860_v15, 8.507059e+37 }
 0x377   : > { %v840_v63 = vadd.f32 %v1248_v55, %v839_v60  ;;  %v799_v3 = vpop.xlane.xlu1 %798 }
 0x378   : > { %1251 = vrcp.f32 %v799_v3  ;;  %v832_v23 = vand.u32 2147483648, %v799_v3  ;;  %vm826_vm12 = vweird.f32 %v799_v3  ;;  %v830_v1 = vand.u32 2147483647, %v799_v3 }
 0x379   : > { %v1250_v6 = vpop.eup %1249  ;;  %v844_v4 = vsel %vm843_vm5, %v1248_v55, %v840_v63  ;;  %vm973_vm5 = vcmask 195584   ;;  %v1238_v55 = vld [vmem:[#allocation2] ss:$0 sm:$0xff] }
 0x37a   : > { %v852_v9 = vmul.f32 %v1250_v6, %v805_v58  ;;  %v849_v10 = vsel %vm846_vm6, %v848_v8, %v844_v4  ;;  %vm857_vm7 = vweird.f32 %v1250_v6  ;;  %v833_v25 = vor.u32 1.1754944e-38, %v832_v23 }
 0x37b   : > { %v850_v7 = vmul.f32 %v1240_v39, %v849_v10  ;;  %vm858_vm9 = vmor %vm856_vm8, %vm857_vm7  ;;  %vm831_vm14 = vcmp.eq.f32.partialorder %v830_v1, 8.507059e+37  ;;  %vm983_vm6 = vcmask 261120  }
 0x37c   : > { %v853_v11 = vsub.f32 1.0, %v852_v9 }
 0x37d   : > { %1190 = vmatmul.msk.f32.vlgmr.msrb.gmra.mxu2 %vm648_vm1, %v850_v7 }
 0x37e   : > { %v1252_v13 = vpop.eup %1251  ;;  %v854_v14 = vmul.f32 %v1250_v6, %v853_v11 }
 0x37f   : > { %v822_v16 = vmul.f32 %v1252_v13, %v799_v3  ;;  %vm827_vm11 = vweird.f32 %v1252_v13 }
 0x380   : > { %v855_v2 = vadd.f32 %v1250_v6, %v854_v14  ;;  %vm828_vm13 = vmor %vm826_vm12, %vm827_vm11 }
 0x381   : > { %v823_v18 = vsub.f32 1.0, %v822_v16 }
 0x382   : > { %v859_v5 = vsel %vm858_vm9, %v1250_v6, %v855_v2 }
 0x383   : > { %v824_v19 = vmul.f32 %v1252_v13, %v823_v18  ;;  %v864_v20 = vsel %vm861_vm10, %v863_v17, %v859_v5 }
 0x384   : > { %v865_v21 = vmul.f32 %v1242_v45, %v864_v20  ;;  %v977_v45 = vld [vmem:[%s1598_s7 + $0x10] sm:$0xff] }
 0x385   : > { %v825_v0 = vadd.f32 %v1252_v13, %v824_v19  ;;  %v529_v22 = vpop.permute.xlu0 %528  ;;  %1000 = vmatpush.msra.mxu0 %v977_v45 }
 0x386   : > { %953 = vmatpush.msrb.mxu3 %v529_v22 }
 0x387   : > { %1191 = vmatmul.msk.f32.vlgmr.msrb.gmra.mxu3 %vm648_vm1, %v865_v21  ;;  %v829_v24 = vsel %vm828_vm13, %v1252_v13, %v825_v0  ;;  %1001 = vmatpush.msra.mxu0 %v976_v46 }
 0x388   : > { %v834_v26 = vsel %vm831_vm14, %v833_v25, %v829_v24 }
 0x389   : > { %v835_v28 = vmul.f32 %v1543_v47, %v834_v26  ;;  %v975_v47 = vld [vmem:[%s1598_s7] sm:$0xff] }
 0x38a   : > { %1002 = vmatpush.msra.mxu0 %v975_v47 }
 0x38f   : > { %v523_v27 = vpop.permute.xlu1 %522 }
 0x390   : > { %907 = vmatpush.msrb.mxu1 %v523_v27 }
 0x391   : > { %1189 = vmatmul.msk.f32.vlgmr.msrb.gmra.mxu1 %vm648_vm1, %v835_v28 }
 0x3e1   : > { %v796_v29 = vpop.xlane.xlu0 %795 }
 0x3e2   : > { %1253 = vrcp.f32 %v796_v29  ;;  %v817_v33 = vand.u32 2147483648, %v796_v29  ;;  %v815_v35 = vand.u32 2147483647, %v796_v29  ;;  %vm811_vm0 = vweird.f32 %v796_v29 }
 0x3e4   : > { %v818_v37 = vor.u32 1.1754944e-38, %v817_v33  ;;  %vm816_vm3 = vcmp.eq.f32.partialorder %v815_v35, 8.507059e+37 }
 0x3e8   : > { %v1254_v30 = vpop.eup %1253 }
 0x3e9   : > { %v807_v31 = vmul.f32 %v1254_v30, %v796_v29  ;;  %vm812_vm15 = vweird.f32 %v1254_v30 }
 0x3ea   : > { %vm813_vm2 = vmor %vm811_vm0, %vm812_vm15 }
 0x3eb   : > { %v808_v32 = vsub.f32 1.0, %v807_v31 }
 0x3ed   : > { %v809_v34 = vmul.f32 %v1254_v30, %v808_v32 }
 0x3ef   : > { %v810_v36 = vadd.f32 %v1254_v30, %v809_v34 }
 0x3f1   : > { %v814_v38 = vsel %vm813_vm2, %v1254_v30, %v810_v36 }
 0x3f2   : > { %v819_v39 = vsel %vm816_vm3, %v818_v37, %v814_v38 }
 0x3f3   : > { %v820_v40 = vmul.f32 %v1550_v53, %v819_v39 }
 0x3f5   : > { %1188 = vmatmul.msk.f32.vlgmr.msrb.gmra.mxu0 %vm648_vm1, %v820_v40 }
 0x400   : > { %v932_v41 = vpop.f32.mrf.mxu2 }
 0x401   : > { %963 = vrot.lane.b32.xlu1 %v932_v41, %s1320_s30 }
 0x40a   : > { %v955_v43 = vpop.f32.mrf.mxu3 }
 0x40e   : > { %v909_v42 = vpop.f32.mrf.mxu1 }
 0x40f   : > { %959 = vrot.lane.b32.xlu2 %v909_v42, %s1317_s13 }
 0x417   : > { %967 = vrot.lane.b32.xlu2 %v955_v43, %s1321_s11 }
 0x469   : > { %v960_v48 = vpop.permute.xlu2 %959 }
 0x471   : > { %v968_v52 = vpop.permute.xlu2 %967 }
 0x472   : > { %v886_v49 = vpop.f32.mrf.mxu0 }
 0x473   : > { %v970_v50 = vsel %vm648_vm1, %v886_v49, %v960_v48  ;;  %v964_v51 = vpop.permute.xlu1 %963 }
 0x474   : > { %v972_v53 = vsel %vm971_vm4, %v970_v50, %v964_v51 }
 0x475   : > { %v974_v54 = vsel %vm973_vm5, %v972_v53, %v968_v52 }
 0x476   : > { %1192 = vmatmul.msk.f32.vlgmr.msra.gmra.mxu0 %vm983_vm6, %v974_v54 }
 0x4f3   : > { %v1004_v56 = vpop.f32.mrf.mxu0 }
 0x4f4   : > { %v1005_v58 = vadd.f32 %v1238_v55, %v1004_v56 }
 0x4f6   : > { %v1008_v59 = vadd.f32 %v1007_v57, %v1005_v58 }
 0x4f8   : > { %1009 = vst.msk [vmem:[%s496_s16] sm:$0xff] %vm983_vm6, %v1008_v59 }
 0x4f9 PF: > { %s21_s15 = sadd.s32 1, %s1311_s15   ;;  %s1602_s13 = smov %s1307_s14 }
 0x4fa   : > { %p18_p8 = scmp.ge.s32.totalorder %s21_s15, 4   ;;  %s1603_s14 = smov %s1605_s17 }
 0x4fc   :  { %20 = sbr.rel (!%p18_p8) target bundleno = 2 (0x2), region = 110 }
 0x501   :  { %1035 = vsyncpa [#allocation3], 1 }
 0x502   :  { %1037 = vsyncpa [#allocation3 + $0x1], 1 }

// kernel: esm_encoder_forward.15
= control target key start
LH: loop header
LB: loop body
LE: loop exit
PB: predicated region body
PF: predicated region fallthrough
CT: control target
= control target key end

     0   :  { %10 = vsyncpa [#allocation3], 0  ;;  %s214_s21 = smov [#allocation2]   ;;  %s215_s23 = smov 128   ;;  %s278_s0 = inlined_call_operand.vmem [shape: f32[16,32], index: 0, kind: input, shape index: {}]   ;;  %s279_s1 = inlined_call_operand.vmem [shape: f32[1,32], index: 1, kind: input, shape index: {}]   ;;  %s280_s2 = inlined_call_operand.vmem [shape: f32[1,32], index: 2, kind: input, shape index: {}]   ;;  %s281_s3 = inlined_call_operand.hbm [shape: f32[32,64], index: 3, kind: input, shape index: {}]   ;;  %s282_s4 = inlined_call_operand.vmem [shape: f32[1,64], index: 4, kind: input, shape index: {}]   ;;  %s283_s5 = inlined_call_operand.vmem [shape: f32[16,64], index: 5, kind: output, shape index: {}]  }
   0x1   :  { %s21_s20 = sshll.u32 %s281_s3, 4  ;;  %s23_s22 = sshll.u32 %s214_s21, 4  ;;  %s22_s20 = int_to_ptr.hbm [resolvable:$true] %s21_s20  ;;  %s24_s22 = int_to_ptr.vmem [resolvable:$true] %s23_s22 }
   0x2   :  { %s216_s24 = smov 8  }
   0x3   :  { %29 = dma.hbm_to_vmem [thread:$0]  %s22_s20, 512, %s24_s22, [#allocation3], %s215_s23, %s215_s23, %s216_s24  }
   0x4   :  { %212 = dma.done.wait [#allocation3], 512  }
   0x5   :  { %213 = vsyncadd [#allocation3], 4294966784  ;;  %vm38_vm0 = vcmask 261120   ;;  %v36_v0 = vld [vmem:[%s278_s0] sm:$0xff]  ;;  %v37_v2 = vld [vmem:[%s278_s0 + $0x8] sm:$0xff]  ;;  %v217_v4 = vmov 32.0  }
   0x6   :  { %v39_v1 = vsel %vm38_vm0, %v36_v0, 0.0  ;;  %v42_v3 = vsel %vm38_vm0, %v37_v2, 0.0  ;;  %178 = vrcp.f32 %v217_v4  ;;  %v105_v21 = vld [vmem:[#allocation2 + $0x18] sm:$0xff]  ;;  %v104_v22 = vld [vmem:[#allocation2 + $0x10] sm:$0xff]  ;;  %v103_v23 = vld [vmem:[#allocation2 + $0x8] sm:$0xff]  ;;  %vm157_vm8 = vcmask 523264  }
   0x7   :  { %40 = vadd.xlane.f32.xlu0 %v39_v1  ;;  %128 = vmatpush.msra.mxu0 %v105_v21  ;;  %v102_v24 = vld [vmem:[#allocation2] sm:$0xff] }
   0x8   :  { %167 = vmatpush.msra.mxu1 %v105_v21  ;;  %v175_v39 = vld [vmem:[%s279_s1] ss:$0 sm:$0xff] }
   0x9   :  { %129 = vmatpush.msra.mxu0 %v104_v22  ;;  %v176_v43 = vld [vmem:[%s280_s2] ss:$0 sm:$0xff] }
   0xa   :  { %168 = vmatpush.msra.mxu1 %v104_v22  ;;  %v177_v53 = vld [vmem:[%s282_s4] ss:$0 sm:$0xff] }
   0xb   :  { %130 = vmatpush.msra.mxu0 %v103_v23 }
   0xc   :  { %v179_v5 = vpop.eup %178  ;;  %169 = vmatpush.msra.mxu1 %v103_v23 }
   0xd   :  { %v46_v6 = vmul.f32 32.0, %v179_v5  ;;  %vm50_vm1 = vweird.f32 %v179_v5  ;;  %131 = vmatpush.msra.mxu0 %v102_v24 }
   0xe   :  { %170 = vmatpush.msra.mxu1 %v102_v24 }
   0xf   :  { %43 = vadd.xlane.f32.xlu0 %v42_v3  ;;  %v47_v7 = vsub.f32 1.0, %v46_v6 }
  0x11   :  { %v48_v8 = vmul.f32 %v179_v5, %v47_v7 }
  0x13   :  { %v49_v9 = vadd.f32 %v179_v5, %v48_v8 }
  0x15   :  { %v51_v10 = vsel %vm50_vm1, %v179_v5, %v49_v9 }
  0x7a   :  { %v41_v11 = vpop.xlane.xlu0 %40 }
  0x7b   :  { %v52_v12 = vmul.f32 %v51_v10, %v41_v11 }
  0x7d   :  { %v54_v13 = vsub.f32 %v36_v0, %v52_v12 }
  0x7f   :  { %v56_v14 = vmul.f32 %v54_v13, %v54_v13 }
  0x81   :  { %v58_v15 = vsel %vm38_vm0, %v56_v14, 0.0 }
  0x82   :  { %59 = vadd.xlane.f32.xlu1 %v58_v15  ;;  %v44_v16 = vpop.xlane.xlu0 %43 }
  0x83   :  { %v53_v17 = vmul.f32 %v51_v10, %v44_v16 }
  0x85   :  { %v55_v18 = vsub.f32 %v37_v2, %v53_v17 }
  0x87   :  { %v57_v19 = vmul.f32 %v55_v18, %v55_v18 }
  0x89   :  { %v61_v20 = vsel %vm38_vm0, %v57_v19, 0.0 }
  0x8a   :  { %62 = vadd.xlane.f32.xlu1 %v61_v20 }
  0xf5   :  { %v60_v25 = vpop.xlane.xlu1 %59 }
  0xf6   :  { %v64_v26 = vmul.f32 %v60_v25, %v51_v10 }
  0xf8   :  { %v66_v27 = vadd.f32 1e-05, %v64_v26 }
  0xfa   :  { %180 = vrsqrt.f32 %v66_v27  ;;  %vm74_vm3 = vweird.f32 %v66_v27 }
  0xfd   :  { %v63_v28 = vpop.xlane.xlu1 %62 }
  0xfe   :  { %v65_v29 = vmul.f32 %v63_v28, %v51_v10 }
 0x100   :  { %v181_v30 = vpop.eup %180  ;;  %v67_v31 = vadd.f32 1e-05, %v65_v29 }
 0x101   :  { %v69_v32 = vmul.f32 %v181_v30, %v66_v27  ;;  %vm75_vm2 = vweird.f32 %v181_v30 }
 0x102   :  { %182 = vrsqrt.f32 %v67_v31  ;;  %vm76_vm4 = vmor %vm74_vm3, %vm75_vm2  ;;  %vm84_vm6 = vweird.f32 %v67_v31 }
 0x103   :  { %v70_v33 = vmul.f32 %v181_v30, %v69_v32 }
 0x105   :  { %v71_v34 = vmul.f32 0.5, %v70_v33 }
 0x107   :  { %v72_v35 = vsub.f32 1.5, %v71_v34 }
 0x108   :  { %v183_v36 = vpop.eup %182 }
 0x109   :  { %v73_v37 = vmul.f32 %v181_v30, %v72_v35  ;;  %v79_v38 = vmul.f32 %v183_v36, %v67_v31  ;;  %vm85_vm5 = vweird.f32 %v183_v36 }
 0x10a   :  { %vm86_vm7 = vmor %vm84_vm6, %vm85_vm5 }
 0x10b   :  { %v77_v40 = vsel %vm76_vm4, %v181_v30, %v73_v37  ;;  %v80_v41 = vmul.f32 %v183_v36, %v79_v38 }
 0x10c   :  { %v88_v42 = vmul.f32 %v77_v40, %v54_v13 }
 0x10d   :  { %v81_v44 = vmul.f32 0.5, %v80_v41 }
 0x10e   :  { %v94_v45 = vmul.f32 %v175_v39, %v88_v42 }
 0x10f   :  { %v82_v46 = vsub.f32 1.5, %v81_v44 }
 0x110   :  { %v100_v47 = vadd.f32 %v176_v43, %v94_v45 }
 0x111   :  { %v83_v48 = vmul.f32 %v183_v36, %v82_v46 }
 0x112   :  { %165 = vmatmul.msk.f32.vlgmr.msra.gmra.mxu0 %vm38_vm0, %v100_v47 }
 0x113   :  { %v87_v49 = vsel %vm86_vm7, %v183_v36, %v83_v48 }
 0x114   :  { %v89_v50 = vmul.f32 %v87_v49, %v55_v18 }
 0x116   :  { %v95_v51 = vmul.f32 %v175_v39, %v89_v50 }
 0x118   :  { %v101_v52 = vadd.f32 %v176_v43, %v95_v51 }
 0x11a   :  { %166 = vmatmul.msk.f32.vlgmr.msra.gmra.mxu1 %vm38_vm0, %v101_v52 }
 0x18f   :  { %v133_v54 = vpop.f32.mrf.mxu0 }
 0x190   :  { %v134_v55 = vadd.f32 %v177_v53, %v133_v54 }
 0x192   :  { %v141_v56 = vmul.f32 0.044715, %v134_v55  ;;  %v139_v5 = vmul.f32 0.5, %v134_v55 }
 0x194   :  { %v143_v57 = vmul.f32 %v141_v56, %v134_v55 }
 0x196   :  { %v145_v58 = vmul.f32 %v143_v57, %v134_v55 }
 0x197   :  { %v136_v59 = vpop.f32.mrf.mxu1 }
 0x198   :  { %v147_v60 = vadd.f32 %v145_v58, %v134_v55  ;;  %v137_v61 = vadd.f32 %v177_v53, %v136_v59 }
 0x19a   :  { %v149_v62 = vmul.f32 0.7978846, %v147_v60  ;;  %v142_v63 = vmul.f32 0.044715, %v137_v61  ;;  %v140_v9 = vmul.f32 0.5, %v137_v61 }
 0x19c   :  { %184 = vtanh.f32 %v149_v62  ;;  %v144_v0 = vmul.f32 %v142_v63, %v137_v61 }
 0x19e   :  { %v146_v1 = vmul.f32 %v144_v0, %v137_v61 }
 0x1a0   :  { %v148_v2 = vadd.f32 %v146_v1, %v137_v61 }
 0x1a2   :  { %v185_v3 = vpop.eup %184  ;;  %v150_v4 = vmul.f32 0.7978846, %v148_v2 }
 0x1a3   :  { %v153_v6 = vadd.f32 1.0, %v185_v3 }
 0x1a4   :  { %186 = vtanh.f32 %v150_v4 }
 0x1a5   :  { %v155_v7 = vmul.f32 %v153_v6, %v139_v5 }
 0x1a7   :  { %158 = vst.msk [vmem:[%s283_s5] sm:$0xff] %vm157_vm8, %v155_v7 }
 0x1aa   :  { %v187_v8 = vpop.eup %186 }
 0x1ab   :  { %v154_v10 = vadd.f32 1.0, %v187_v8 }
 0x1ad   :  { %v156_v11 = vmul.f32 %v154_v10, %v140_v9 }
 0x1af   :  { %159 = vst.msk [vmem:[%s283_s5 + $0x8] sm:$0xff] %vm157_vm8, %v156_v11 }
 0x1b0   :  { %164 = vsyncpa [#allocation3], 1 }

// kernel: esm_encoder_forward.13
= control target key start
LH: loop header
LB: loop body
LE: loop exit
PB: predicated region body
PF: predicated region fallthrough
CT: control target
= control target key end

     0   :  { %13 = vsyncpa [#allocation3], 0  ;;  %s362_s0 = inlined_call_operand.vmem [shape: f32[16,32], index: 0, kind: input, shape index: {}]   ;;  %s363_s1 = inlined_call_operand.vmem [shape: f32[1,32], index: 1, kind: input, shape index: {}]   ;;  %s364_s2 = inlined_call_operand.hbm [shape: f32[1,32], index: 2, kind: input, shape index: {}]   ;;  %s365_s3 = inlined_call_operand.vmem [shape: f32[32,96], index: 3, kind: input, shape index: {}]   ;;  %s366_s4 = inlined_call_operand.hbm [shape: f32[1,96], index: 4, kind: input, shape index: {}]   ;;  %s367_s5 = inlined_call_operand.vmem [shape: f32[16,32], index: 5, kind: output, shape index: {0}]   ;;  %s368_s6 = inlined_call_operand.vmem [shape: f32[16,32], index: 6, kind: output, shape index: {1}]   ;;  %s369_s7 = inlined_call_operand.vmem [shape: f32[16,32], index: 7, kind: output, shape index: {2}]  }
   0x1   :  { %s24_s26 = sshll.u32 %s364_s2, 4  ;;  %s25_s26 = int_to_ptr.hbm [resolvable:$true] %s24_s26 }
   0x2   :  { %14 = vsyncpa [#allocation5], 0  ;;  %s260_s27 = smov [#allocation2]   ;;  %s37_s8 = sshll.u32 %s366_s4, 4  ;;  %s38_s8 = int_to_ptr.hbm [resolvable:$true] %s37_s8 }
   0x3   :  { %s26_s28 = sshll.u32 %s260_s27, 4  ;;  %s261_s9 = smov [#allocation4]   ;;  %s27_s28 = int_to_ptr.vmem [resolvable:$true] %s26_s28 }
   0x4   :  { %29 = dma.hbm_to_vmem [thread:$0]  %s25_s26, 16, %s27_s28, [#allocation3]  }
   0x5   :  { %s39_s10 = sshll.u32 %s261_s9, 4  ;;  %s40_s10 = int_to_ptr.vmem [resolvable:$true] %s39_s10 }
   0x6   :  { %42 = dma.hbm_to_vmem [thread:$0]  %s38_s8, 16, %s40_s10, [#allocation5]  }
   0x7   :  { %256 = dma.done.wait [#allocation3], 16  }
   0x8   :  { %257 = vsyncadd [#allocation3], 4294967280 }
   0x9   :  { %258 = dma.done.wait [#allocation5], 16  }
   0xa   :  { %259 = vsyncadd [#allocation5], 4294967280  ;;  %vm53_vm0 = vcmask 261120   ;;  %v51_v0 = vld [vmem:[%s362_s0] sm:$0xff]  ;;  %v52_v2 = vld [vmem:[%s362_s0 + $0x8] sm:$0xff]  ;;  %v262_v4 = vmov 32.0  }
   0xb   :  { %v54_v1 = vsel %vm53_vm0, %v51_v0, 0.0  ;;  %v57_v3 = vsel %vm53_vm0, %v52_v2, 0.0  ;;  %202 = vrcp.f32 %v262_v4  ;;  %v120_v21 = vld [vmem:[%s365_s3 + $0x18] sm:$0xff]  ;;  %v119_v22 = vld [vmem:[%s365_s3 + $0x10] sm:$0xff]  ;;  %v118_v23 = vld [vmem:[%s365_s3 + $0x8] sm:$0xff]  ;;  %s263_s22 = smov 64  }
   0xc   :  { %55 = vadd.xlane.f32.xlu0 %v54_v1  ;;  %143 = vmatpush.msra.mxu0 %v120_v21  ;;  %v117_v24 = vld [vmem:[%s365_s3] sm:$0xff]  ;;  %s264_s23 = smov 96  }
   0xd   :  { %190 = vmatpush.msra.mxu1 %v120_v21  ;;  %v199_v39 = vld [vmem:[%s363_s1] ss:$0 sm:$0xff]  ;;  %v201_v53 = vld [vmem:[#allocation4] ss:$0 sm:$0xff] }
   0xe   :  { %144 = vmatpush.msra.mxu0 %v119_v22  ;;  %v200_v43 = vld [vmem:[#allocation2] ss:$0 sm:$0xff] }
   0xf   :  { %191 = vmatpush.msra.mxu1 %v119_v22 }
  0x10   :  { %145 = vmatpush.msra.mxu0 %v118_v23 }
  0x11   :  { %v203_v5 = vpop.eup %202  ;;  %192 = vmatpush.msra.mxu1 %v118_v23 }
  0x12   :  { %v61_v6 = vmul.f32 32.0, %v203_v5  ;;  %vm65_vm1 = vweird.f32 %v203_v5  ;;  %146 = vmatpush.msra.mxu0 %v117_v24 }
  0x13   :  { %193 = vmatpush.msra.mxu1 %v117_v24 }
  0x14   :  { %58 = vadd.xlane.f32.xlu0 %v57_v3  ;;  %v62_v7 = vsub.f32 1.0, %v61_v6 }
  0x16   :  { %v63_v8 = vmul.f32 %v203_v5, %v62_v7 }
  0x18   :  { %v64_v9 = vadd.f32 %v203_v5, %v63_v8 }
  0x1a   :  { %v66_v10 = vsel %vm65_vm1, %v203_v5, %v64_v9 }
  0x7f   :  { %v56_v11 = vpop.xlane.xlu0 %55 }
  0x80   :  { %v67_v12 = vmul.f32 %v66_v10, %v56_v11 }
  0x82   :  { %v69_v13 = vsub.f32 %v51_v0, %v67_v12 }
  0x84   :  { %v71_v14 = vmul.f32 %v69_v13, %v69_v13 }
  0x86   :  { %v73_v15 = vsel %vm53_vm0, %v71_v14, 0.0 }
  0x87   :  { %74 = vadd.xlane.f32.xlu1 %v73_v15  ;;  %v59_v16 = vpop.xlane.xlu0 %58 }
  0x88   :  { %v68_v17 = vmul.f32 %v66_v10, %v59_v16 }
  0x8a   :  { %v70_v18 = vsub.f32 %v52_v2, %v68_v17 }
  0x8c   :  { %v72_v19 = vmul.f32 %v70_v18, %v70_v18 }
  0x8e   :  { %v76_v20 = vsel %vm53_vm0, %v72_v19, 0.0 }
  0x8f   :  { %77 = vadd.xlane.f32.xlu1 %v76_v20 }
  0xfa   :  { %v75_v25 = vpop.xlane.xlu1 %74 }
  0xfb   :  { %v79_v26 = vmul.f32 %v75_v25, %v66_v10 }
  0xfd   :  { %v81_v27 = vadd.f32 1e-05, %v79_v26 }
  0xff   :  { %204 = vrsqrt.f32 %v81_v27  ;;  %vm89_vm3 = vweird.f32 %v81_v27 }
 0x102   :  { %v78_v28 = vpop.xlane.xlu1 %77 }
 0x103   :  { %v80_v29 = vmul.f32 %v78_v28, %v66_v10 }
 0x105   :  { %v205_v30 = vpop.eup %204  ;;  %v82_v31 = vadd.f32 1e-05, %v80_v29 }
 0x106   :  { %v84_v32 = vmul.f32 %v205_v30, %v81_v27  ;;  %vm90_vm2 = vweird.f32 %v205_v30 }
 0x107   :  { %206 = vrsqrt.f32 %v82_v31  ;;  %vm91_vm4 = vmor %vm89_vm3, %vm90_vm2  ;;  %vm99_vm6 = vweird.f32 %v82_v31 }
 0x108   :  { %v85_v33 = vmul.f32 %v205_v30, %v84_v32 }
 0x10a   :  { %v86_v34 = vmul.f32 0.5, %v85_v33 }
 0x10c   :  { %v87_v35 = vsub.f32 1.5, %v86_v34 }
 0x10d   :  { %v207_v36 = vpop.eup %206 }
 0x10e   :  { %v88_v37 = vmul.f32 %v205_v30, %v87_v35  ;;  %v94_v38 = vmul.f32 %v207_v36, %v82_v31  ;;  %vm100_vm5 = vweird.f32 %v207_v36 }
 0x10f   :  { %vm101_vm7 = vmor %vm99_vm6, %vm100_vm5 }
 0x110   :  { %v92_v40 = vsel %vm91_vm4, %v205_v30, %v88_v37  ;;  %v95_v41 = vmul.f32 %v207_v36, %v94_v38 }
 0x111   :  { %v103_v42 = vmul.f32 %v92_v40, %v69_v13 }
 0x112   :  { %v96_v44 = vmul.f32 0.5, %v95_v41 }
 0x113   :  { %v109_v45 = vmul.f32 %v199_v39, %v103_v42 }
 0x114   :  { %v97_v46 = vsub.f32 1.5, %v96_v44 }
 0x115   :  { %v115_v47 = vadd.f32 %v200_v43, %v109_v45 }
 0x116   :  { %v98_v48 = vmul.f32 %v207_v36, %v97_v46 }
 0x117   :  { %188 = vmatmul.msk.f32.vlgmr.msra.gmra.mxu0 %vm53_vm0, %v115_v47 }
 0x118   :  { %v102_v49 = vsel %vm101_vm7, %v207_v36, %v98_v48 }
 0x119   :  { %v104_v50 = vmul.f32 %v102_v49, %v70_v18 }
 0x11b   :  { %v110_v51 = vmul.f32 %v199_v39, %v104_v50 }
 0x11d   :  { %v116_v52 = vadd.f32 %v200_v43, %v110_v51 }
 0x11f   :  { %189 = vmatmul.msk.f32.vlgmr.msra.gmra.mxu1 %vm53_vm0, %v116_v52 }
 0x194   :  { %v148_v54 = vpop.f32.mrf.mxu0 }
 0x195   :  { %v149_v55 = vadd.f32 %v201_v53, %v148_v54 }
 0x197   :  { %154 = vst.msk [vmem:[%s367_s5] sm:$0xff] %vm53_vm0, %v149_v55  ;;  %166 = vrot.lane.b32.xlu0 %v149_v55, %s263_s22  ;;  %158 = vrot.lane.b32.xlu2 %v149_v55, %s264_s23 }
 0x19c   :  { %v151_v56 = vpop.f32.mrf.mxu1 }
 0x19d   :  { %v152_v57 = vadd.f32 %v201_v53, %v151_v56 }
 0x19f   :  { %155 = vst.msk [vmem:[%s367_s5 + $0x8] sm:$0xff] %vm53_vm0, %v152_v57  ;;  %168 = vrot.lane.b32.xlu1 %v152_v57, %s263_s22  ;;  %160 = vrot.lane.b32.xlu2 %v152_v57, %s264_s23 }
 0x1f1   :  { %v159_v58 = vpop.permute.xlu2 %158 }
 0x1f2   :  { %164 = vst.msk [vmem:[%s368_s6] sm:$0xff] %vm53_vm0, %v159_v58 }
 0x1f9   :  { %v161_v59 = vpop.permute.xlu2 %160 }
 0x1fa   :  { %165 = vst.msk [vmem:[%s368_s6 + $0x8] sm:$0xff] %vm53_vm0, %v161_v59 }
 0x209   :  { %v167_v60 = vpop.permute.xlu0 %166 }
 0x20a   :  { %172 = vst.msk [vmem:[%s369_s7] sm:$0xff] %vm53_vm0, %v167_v60 }
 0x211   :  { %v169_v61 = vpop.permute.xlu1 %168 }
 0x212   :  { %173 = vst.msk [vmem:[%s369_s7 + $0x8] sm:$0xff] %vm53_vm0, %v169_v61 }
 0x213   :  { %186 = vsyncpa [#allocation3], 1 }
 0x214   :  { %187 = vsyncpa [#allocation5], 1 }

// kernel: esm_encoder_forward.14
= control target key start
LH: loop header
LB: loop body
LE: loop exit
PB: predicated region body
PF: predicated region fallthrough
CT: control target
= control target key end

     0   :  { %s1302_s13 = smov 0   ;;  %s1304_s14 = smov 0   ;;  %s1515_s0 = inlined_call_operand.vmem [shape: f32[2,8,32], index: 0, kind: input, shape index: {}]   ;;  %s1516_s1 = inlined_call_operand.vmem [shape: f32[2,8,32], index: 1, kind: input, shape index: {}]   ;;  %s1517_s2 = inlined_call_operand.vmem [shape: f32[2,8,32], index: 2, kind: input, shape index: {}]   ;;  %s1518_s3 = inlined_call_operand.vmem [shape: f32[8,8], index: 3, kind: input, shape index: {}, may-alias: {3,5}]   ;;  %s1519_s4 = inlined_call_operand.vmem [shape: f32[8,8], index: 4, kind: input, shape index: {}, may-alias: {4,6}]   ;;  %s1520_s5 = inlined_call_operand.vmem [shape: f32[8,8], index: 5, kind: input, shape index: {}, may-alias: {3,5}]   ;;  %s1521_s6 = inlined_call_operand.vmem [shape: f32[8,8], index: 6, kind: input, shape index: {}, may-alias: {4,6}]   ;;  %s1522_s7 = inlined_call_operand.vmem [shape: f32[32,32], index: 7, kind: input, shape index: {}]   ;;  %s1523_s8 = inlined_call_operand.vmem [shape: f32[1,32], index: 8, kind: input, shape index: {}]   ;;  %s1524_s9 = inlined_call_operand.vmem [shape: f32[2,8,32], index: 9, kind: input, shape index: {}]   ;;  %s1525_s10 = inlined_call_operand.vmem [shape: f32[2,8,32], index: 10, kind: output, shape index: {}]  }
   0x1   :  { %s1306_s15 = smov 0  }
   0x2 LB: > { %s32_s16 = sadd.s32 1, %s1233_s14  ;;  %p1145_p0 = scmp.ge.s32.totalorder %s1237_s15, 1  ;;  %s1237_s15 = sphi %s1306_s15, %s20_s15   ;;  %s1233_s14 = sphi %s1304_s14, %s1527_s14   ;;  %s1229_s13 = sphi %s1302_s13, %s1526_s13  }
   0x3   : > { %p34_p1 = scmp.ge.s32.totalorder %s32_s16, 2  ;;  %p380_p2 = scmp.lt.s32.totalorder %s1237_s15, 3 }
   0x5   : > { %s1529_s16 = smov (%p34_p1, %s32_s16), 0  ;;  %p381_p3 = pnand %p1145_p0, %p380_p2 }
   0x6   : > { %p445_p4 = scmp.lt.s32.totalorder (!%p381_p3), %s1229_s13, 1  ;;  %s1239_s24 = smov (!%p381_p3), 112  }
   0x7   : > { %384 = sbr.rel (%p381_p3) target bundleno = 1269 (0x4f5), region = 60  ;;  %s1240_s25 = smov (!%p381_p3), 120  }
   0x8   : > { %s1241_s26 = smov (!%p381_p3), 104   ;;  %s1242_s27 = smov (!%p381_p3), 8  }
   0x9   : > { %s1243_s30 = smov (!%p381_p3), 4  }
   0xc   : > { %s1531_s13 = smov (!%p445_p4, %s1229_s13), 1  ;;  %v576_v8 = vld [vmem:[%s1521_s6] sm:$0xff]  ;;  %vm522_vm0 = vcmask 1047616   ;;  %vm633_vm1 = vcmask 64512  }
   0xd   : > { %s1320_s17 = sshll.u32 %s1531_s13, 3  ;;  %v517_v10 = vld [vmem:[%s1519_s4] sm:$0xff]  ;;  %s1244_s13 = smov 124  }
   0xe   : > { %s455_s20 = scalar_lea.vmem %s1516_s1, %s1320_s17  ;;  %s451_s23 = scalar_lea.vmem %s1515_s0, %s1320_s17  ;;  %v575_v46 = vld [vmem:[%s1520_s5] sm:$0xff] }
   0xf   : > { %v1330_v0 = vld [vmem:[%s455_s20] sm:$0xff]  ;;  %s459_s28 = scalar_lea.vmem %s1517_s2, %s1320_s17  ;;  %s474_s21 = scalar_lea.vmem %s1524_s9, %s1320_s17 }
  0x10   : > { %v1332_v1 = vld [vmem:[%s451_s23] sm:$0xff]  ;;  %500 = vrot.lane.b32.xlu0 %v1330_v0, %s1239_s24  ;;  %497 = vrot.lane.b32.xlu2 %v1330_v0, %s1240_s25 }
  0x11   : > { %490 = vrot.lane.b32.xlu1 %v1332_v1, %s1239_s24  ;;  %v516_v56 = vld [vmem:[%s1518_s3] sm:$0xff] }
  0x18   : > { %503 = vrot.lane.b32.xlu0 %v1330_v0, %s1241_s26  ;;  %487 = vrot.lane.b32.xlu2 %v1332_v1, %s1240_s25 }
  0x19   : > { %493 = vrot.lane.b32.xlu1 %v1332_v1, %s1241_s26 }
  0x6a   : > { %v1346_v2 = vpop.permute.xlu2 %497 }
  0x72   : > { %v1356_v5 = vpop.permute.xlu2 %487 }
  0x82   : > { %v1348_v3 = vpop.permute.xlu0 %500 }
  0x83   : > { %v1350_v4 = vpop.permute.xlu1 %490  ;;  %587 = vrot.lane.b32.xlu0 %v1348_v3, %s1242_s27  ;;  %v579_v53 = vmul.f32 %v575_v46, %v1348_v3 }
  0x84   : > { %529 = vrot.lane.b32.xlu2 %v1350_v4, %s1242_s27  ;;  %v520_v57 = vmul.f32 %v516_v56, %v1350_v4 }
  0x8a   : > { %v1358_v6 = vpop.permute.xlu0 %503 }
  0x8b   : > { %v1360_v7 = vpop.permute.xlu1 %493  ;;  %590 = vrot.lane.b32.xlu1 %v1358_v6, %s1242_s27  ;;  %v580_v47 = vmul.f32 %v575_v46, %v1358_v6 }
  0x8c   : > { %526 = vrot.lane.b32.xlu2 %v1356_v5, %s1242_s27  ;;  %532 = vrot.lane.b32.xlu0 %v1360_v7, %s1242_s27  ;;  %v521_v61 = vmul.f32 %v516_v56, %v1360_v7 }
  0x93   : > { %584 = vrot.lane.b32.xlu1 %v1346_v2, %s1242_s27 }
  0x94   : > { %606 = vrot.lane.b32.xlu2 %v576_v8, %s1243_s30  ;;  %v578_v8 = vmul.f32 %v575_v46, %v1346_v2 }
  0x9c   : > { %548 = vrot.lane.b32.xlu2 %v517_v10, %s1243_s30 }
  0xa4   : > { %523 = vrot.lane.b32.xlu2 %v1332_v1, %s1242_s27 }
  0xde   : > { %v530_v12 = vpop.permute.xlu2 %529 }
  0xdf   : > { %v531_v14 = vsel %vm522_vm0, %v530_v12, %v1350_v4  ;;  %v577_v12 = vmul.f32 %v575_v46, %v1330_v0 }
  0xe6   : > { %v527_v18 = vpop.permute.xlu2 %526 }
  0xe7   : > { %v528_v20 = vsel %vm522_vm0, %v527_v18, %v1356_v5 }
  0xee   : > { %v607_v22 = vpop.permute.xlu2 %606 }
  0xf5   : > { %v588_v9 = vpop.permute.xlu0 %587 }
  0xf6   : > { %v589_v11 = vsel %vm522_vm0, %v588_v9, %v1348_v3  ;;  %v549_v26 = vpop.permute.xlu2 %548 }
  0xf7   : > { %597 = vrot.lane.b32.xlu0 %v589_v11, %s1242_s27  ;;  %v519_v11 = vmul.f32 %v516_v56, %v1356_v5 }
  0xfd   : > { %v591_v13 = vpop.permute.xlu1 %590 }
  0xfe   : > { %v592_v15 = vsel %vm522_vm0, %v591_v13, %v1358_v6  ;;  %v533_v16 = vpop.permute.xlu0 %532  ;;  %v524_v33 = vpop.permute.xlu2 %523 }
  0xff   : > { %539 = vrot.lane.b32.xlu0 %v531_v14, %s1242_s27  ;;  %599 = vrot.lane.b32.xlu1 %v592_v15, %s1242_s27  ;;  %v534_v17 = vsel %vm522_vm0, %v533_v16, %v1360_v7  ;;  %v525_v37 = vsel %vm522_vm0, %v524_v33, %v1332_v1  ;;  %v518_v15 = vmul.f32 %v516_v56, %v1332_v1 }
 0x105   : > { %v585_v19 = vpop.permute.xlu1 %584 }
 0x106   : > { %v586_v21 = vsel %vm522_vm0, %v585_v19, %v1346_v2 }
 0x107   : > { %581 = vrot.lane.b32.xlu0 %v1330_v0, %s1242_s27  ;;  %541 = vrot.lane.b32.xlu1 %v534_v17, %s1242_s27 }
 0x10f   : > { %537 = vrot.lane.b32.xlu0 %v528_v20, %s1242_s27  ;;  %595 = vrot.lane.b32.xlu1 %v586_v21, %s1242_s27 }
 0x169   : > { %v598_v23 = vpop.permute.xlu0 %597 }
 0x16a   : > { %v603_v24 = vsel %vm522_vm0, %v598_v23, %v1348_v3 }
 0x16b   : > { %v611_v25 = vmul.f32 %v607_v22, %v603_v24 }
 0x16d   : > { %621 = vrot.lane.b32.xlu1 %v611_v25, %s1244_s13 }
 0x171   : > { %v540_v27 = vpop.permute.xlu0 %539  ;;  %v600_v28 = vpop.permute.xlu1 %599 }
 0x172   : > { %v545_v29 = vsel %vm522_vm0, %v540_v27, %v1350_v4  ;;  %v604_v30 = vsel %vm522_vm0, %v600_v28, %v1358_v6 }
 0x173   : > { %v612_v31 = vmul.f32 %v607_v22, %v604_v30  ;;  %v553_v32 = vmul.f32 %v549_v26, %v545_v29  ;;  %v485_v29 = vld [vmem:[%s459_s28] sm:$0xff] }
 0x175   : > { %563 = vrot.lane.b32.xlu0 %v553_v32, %s1244_s13  ;;  %623 = vrot.lane.b32.xlu2 %v612_v31, %s1244_s13 }
 0x179   : > { %v582_v34 = vpop.permute.xlu0 %581  ;;  %v542_v35 = vpop.permute.xlu1 %541 }
 0x17a   : > { %v546_v36 = vsel %vm522_vm0, %v542_v35, %v1360_v7  ;;  %v583_v38 = vsel %vm522_vm0, %v582_v34, %v1330_v0 }
 0x17b   : > { %v554_v39 = vmul.f32 %v549_v26, %v546_v36 }
 0x17d   : > { %535 = vrot.lane.b32.xlu0 %v525_v37, %s1242_s27  ;;  %593 = vrot.lane.b32.xlu2 %v583_v38, %s1242_s27 }
 0x17e   : > { %565 = vrot.lane.b32.xlu1 %v554_v39, %s1244_s13 }
 0x181   : > { %v538_v40 = vpop.permute.xlu0 %537  ;;  %v596_v41 = vpop.permute.xlu1 %595 }
 0x182   : > { %v544_v42 = vsel %vm522_vm0, %v538_v40, %v1356_v5  ;;  %v602_v43 = vsel %vm522_vm0, %v596_v41, %v1346_v2  ;;  %v742_v2 = vlaneseq }
 0x183   : > { %v552_v44 = vmul.f32 %v549_v26, %v544_v42  ;;  %v610_v45 = vmul.f32 %v607_v22, %v602_v43 }
 0x184   : > { %v743_v18 = vshrl.u32 %v742_v2, 7  ;;  %v747_v5 = vand.u32 127, %v742_v2 }
 0x185   : > { %561 = vrot.lane.b32.xlu2 %v552_v44, %s1244_s13 }
 0x186   : > { %619 = vrot.lane.b32.xlu1 %v610_v45, %s1244_s13  ;;  %vm748_vm2 = vcmp.le.s32.totalorder %v747_v5, %v743_v18 }
 0x1cf   : > { %v624_v48 = vpop.permute.xlu2 %623 }
 0x1d0   : > { %v632_v49 = vadd.f32 %v624_v48, %v580_v47 }
 0x1d2   : > { %1157 = vmatpush.xpose.msk.msra.mxu3 %vm633_vm1, %v632_v49 }
 0x1d7   : > { %v594_v50 = vpop.permute.xlu2 %593 }
 0x1d8   : > { %v601_v51 = vsel %vm522_vm0, %v594_v50, %v1330_v0 }
 0x1d9   : > { %v609_v52 = vmul.f32 %v607_v22, %v601_v51 }
 0x1db   : > { %617 = vrot.lane.b32.xlu0 %v609_v52, %s1244_s13 }
 0x1df   : > { %v622_v54 = vpop.permute.xlu1 %621  ;;  %v562_v9 = vpop.permute.xlu2 %561 }
 0x1e0   : > { %v631_v55 = vadd.f32 %v622_v54, %v579_v53  ;;  %v572_v7 = vadd.f32 %v562_v9, %v519_v11 }
 0x1e2   : > { %1155 = vmatpush.xpose.msk.msra.mxu2 %vm633_vm1, %v631_v55 }
 0x1e7   : > { %v564_v58 = vpop.permute.xlu0 %563 }
 0x1e8   : > { %v573_v59 = vadd.f32 %v564_v58, %v520_v57 }
 0x1ea   : > { %1156 = vmatmul.msk.f32.vlgmr.msra.gmra.mxu2 %vm633_vm1, %v573_v59 }
 0x1ef   : > { %v536_v60 = vpop.permute.xlu0 %535 }
 0x1f0   : > { %v543_v62 = vsel %vm522_vm0, %v536_v60, %v1332_v1  ;;  %v566_v63 = vpop.permute.xlu1 %565 }
 0x1f1   : > { %v551_v3 = vmul.f32 %v549_v26, %v543_v62  ;;  %v574_v6 = vadd.f32 %v566_v63, %v521_v61 }
 0x1f3   : > { %1158 = vmatmul.msk.f32.vlgmr.msra.gmra.mxu3 %vm633_vm1, %v574_v6  ;;  %559 = vrot.lane.b32.xlu1 %v551_v3, %s1244_s13 }
 0x1f8   : > { %v620_v4 = vpop.permute.xlu1 %619 }
 0x1f9   : > { %v630_v10 = vadd.f32 %v620_v4, %v578_v8 }
 0x1fb   : > { %1153 = vmatpush.xpose.msk.msra.mxu1 %vm633_vm1, %v630_v10 }
 0x1fe   : > { %1154 = vmatmul.msk.f32.vlgmr.msra.gmra.mxu1 %vm633_vm1, %v572_v7 }
 0x24d   : > { %v618_v13 = vpop.permute.xlu0 %617 }
 0x24e   : > { %v629_v14 = vadd.f32 %v618_v13, %v577_v12 }
 0x250   : > { %1151 = vmatpush.xpose.msk.msra.mxu0 %vm633_vm1, %v629_v14 }
 0x254   : > { %869 = vmatpush.msrb.mxu0 %v485_v29 }
 0x265   : > { %v560_v16 = vpop.permute.xlu1 %559 }
 0x266   : > { %v571_v17 = vadd.f32 %v560_v16, %v518_v15 }
 0x268   : > { %1152 = vmatmul.msk.f32.vlgmr.msra.gmra.mxu0 %vm633_vm1, %v571_v17 }
 0x26d   : > { %v709_v19 = vpop.f32.mrf.mxu2 }
 0x26e   : > { %v740_v20 = vmul.f32 0.35355338, %v709_v19 }
 0x270   : > { %v753_v21 = vsel %vm748_vm2, %v740_v20, -1e+30 }
 0x271   : > { %v761_v0 = vsel %vm633_vm1, %v753_v21, -inf }
 0x272   : > { %762 = vmax.xlane.f32.xlu2 %v761_v0 }
 0x276   : > { %v735_v22 = vpop.f32.mrf.mxu3 }
 0x277   : > { %v741_v23 = vmul.f32 0.35355338, %v735_v22 }
 0x279   : > { %v754_v1 = vsel %vm748_vm2, %v741_v23, -1e+30 }
 0x27a   : > { %v764_v24 = vsel %vm633_vm1, %v754_v1, -inf }
 0x27b   : > { %765 = vmax.xlane.f32.xlu0 %v764_v24  ;;  %v683_v25 = vpop.f32.mrf.mxu1 }
 0x27c   : > { %v739_v26 = vmul.f32 0.35355338, %v683_v25 }
 0x27e   : > { %v752_v27 = vsel %vm748_vm2, %v739_v26, -1e+30 }
 0x27f   : > { %v758_v28 = vsel %vm633_vm1, %v752_v27, -inf }
 0x280   : > { %759 = vmax.xlane.f32.xlu1 %v758_v28 }
 0x2e5   : > { %v763_v30 = vpop.xlane.xlu2 %762  ;;  %v657_v31 = vpop.f32.mrf.mxu0 }
 0x2e6   : > { %v769_v32 = vsub.f32 %v753_v21, %v763_v30  ;;  %v738_v33 = vmul.f32 0.35355338, %v657_v31 }
 0x2e8   : > { %v775_v34 = vmul.f32 1.442695, %v769_v32  ;;  %v751_v35 = vsel %vm748_vm2, %v738_v33, -1e+30 }
 0x2e9   : > { %v755_v36 = vsel %vm633_vm1, %v751_v35, -inf }
 0x2ea   : > { %1199 = vpow2.f32 %v775_v34  ;;  %756 = vmax.xlane.f32.xlu2 %v755_v36 }
 0x2ee   : > { %v766_v37 = vpop.xlane.xlu0 %765 }
 0x2ef   : > { %v770_v38 = vsub.f32 %v754_v1, %v766_v37 }
 0x2f0   : > { %v1200_v39 = vpop.eup %1199 }
 0x2f1   : > { %v777_v40 = vmul.f32 1.442695, %v770_v38  ;;  %v785_v41 = vsel %vm633_vm1, %v1200_v39, 0.0 }
 0x2f2   : > { %786 = vadd.xlane.f32.xlu2 %v785_v41 }
 0x2f3   : > { %1201 = vpow2.f32 %v777_v40  ;;  %v760_v42 = vpop.xlane.xlu1 %759 }
 0x2f4   : > { %v768_v43 = vsub.f32 %v752_v27, %v760_v42 }
 0x2f6   : > { %v773_v44 = vmul.f32 1.442695, %v768_v43 }
 0x2f8   : > { %1203 = vpow2.f32 %v773_v44  ;;  %v963_v44 = vld [vmem:[%s1522_s7 + $0x18] sm:$0xff] }
 0x2f9   : > { %v1202_v45 = vpop.eup %1201  ;;  %984 = vmatpush.msra.mxu0 %v963_v44 }
 0x2fa   : > { %v788_v46 = vsel %vm633_vm1, %v1202_v45, 0.0 }
 0x2fb   : > { %789 = vadd.xlane.f32.xlu0 %v788_v46  ;;  %v961_v46 = vld [vmem:[%s1522_s7 + $0x8] sm:$0xff] }
 0x2fe   : > { %v1464_v47 = vpop.eup %1203 }
 0x2ff   : > { %v782_v48 = vsel %vm633_vm1, %v1464_v47, 0.0 }
 0x300   : > { %783 = vadd.xlane.f32.xlu1 %v782_v48 }
 0x30a   : > { %510 = vrot.lane.b32.xlu2 %v485_v29, %s1239_s24  ;;  %s1245_s24 = smov 16  }
 0x30f   : > { %513 = vrot.lane.b32.xlu0 %v485_v29, %s1241_s26 }
 0x319   : > { %507 = vrot.lane.b32.xlu1 %v485_v29, %s1240_s25  ;;  %s1246_s25 = smov 24  }
 0x35d   : > { %v757_v49 = vpop.xlane.xlu2 %756 }
 0x35e   : > { %v767_v50 = vsub.f32 %v751_v35, %v757_v49 }
 0x360   : > { %v771_v51 = vmul.f32 1.442695, %v767_v50 }
 0x362   : > { %1205 = vpow2.f32 %v771_v51 }
 0x365   : > { %v787_v52 = vpop.xlane.xlu2 %786 }
 0x366   : > { %1207 = vrcp.f32 %v787_v52  ;;  %v832_v61 = vand.u32 2147483648, %v787_v52  ;;  %v830_v62 = vand.u32 2147483647, %v787_v52  ;;  %vm826_vm4 = vweird.f32 %v787_v52 }
 0x368   : > { %v1471_v53 = vpop.eup %1205  ;;  %v833_v8 = vor.u32 1.1754944e-38, %v832_v61  ;;  %vm831_vm6 = vcmp.eq.f32.partialorder %v830_v62, 8.507059e+37 }
 0x369   : > { %v779_v54 = vsel %vm633_vm1, %v1471_v53, 0.0 }
 0x36a   : > { %780 = vadd.xlane.f32.xlu0 %v779_v54 }
 0x36c   : > { %v1208_v55 = vpop.eup %1207 }
 0x36d   : > { %v822_v56 = vmul.f32 %v1208_v55, %v787_v52  ;;  %v511_v57 = vpop.permute.xlu2 %510  ;;  %vm827_vm3 = vweird.f32 %v1208_v55 }
 0x36e   : > { %v790_v58 = vpop.xlane.xlu0 %789  ;;  %915 = vmatpush.msrb.mxu2 %v511_v57  ;;  %vm828_vm5 = vmor %vm826_vm4, %vm827_vm3  ;;  %vm956_vm4 = vcmask 130048   ;;  %v992_v57 = vld [vmem:[%s474_s21] sm:$0xff] }
 0x36f   : > { %v823_v59 = vsub.f32 1.0, %v822_v56  ;;  %1209 = vrcp.f32 %v790_v58  ;;  %v847_v12 = vand.u32 2147483648, %v790_v58  ;;  %v845_v15 = vand.u32 2147483647, %v790_v58 }
 0x370   : > { %vm841_vm8 = vweird.f32 %v790_v58 }
 0x371   : > { %v824_v60 = vmul.f32 %v1208_v55, %v823_v59  ;;  %v848_v17 = vor.u32 1.1754944e-38, %v847_v12  ;;  %vm846_vm10 = vcmp.eq.f32.partialorder %v845_v15, 8.507059e+37 }
 0x373   : > { %v825_v63 = vadd.f32 %v1208_v55, %v824_v60  ;;  %v784_v3 = vpop.xlane.xlu1 %783 }
 0x374   : > { %1211 = vrcp.f32 %v784_v3  ;;  %v817_v23 = vand.u32 2147483648, %v784_v3  ;;  %vm811_vm12 = vweird.f32 %v784_v3  ;;  %v815_v1 = vand.u32 2147483647, %v784_v3 }
 0x375   : > { %v1210_v6 = vpop.eup %1209  ;;  %v829_v4 = vsel %vm828_vm5, %v1208_v55, %v825_v63  ;;  %vm958_vm5 = vcmask 195584   ;;  %v1198_v55 = vld [vmem:[%s1523_s8] ss:$0 sm:$0xff] }
 0x376   : > { %v837_v9 = vmul.f32 %v1210_v6, %v790_v58  ;;  %v834_v10 = vsel %vm831_vm6, %v833_v8, %v829_v4  ;;  %vm842_vm7 = vweird.f32 %v1210_v6  ;;  %v818_v25 = vor.u32 1.1754944e-38, %v817_v23 }
 0x377   : > { %v835_v7 = vmul.f32 %v1200_v39, %v834_v10  ;;  %vm843_vm9 = vmor %vm841_vm8, %vm842_vm7  ;;  %vm816_vm14 = vcmp.eq.f32.partialorder %v815_v1, 8.507059e+37  ;;  %vm968_vm6 = vcmask 261120  }
 0x378   : > { %v838_v11 = vsub.f32 1.0, %v837_v9 }
 0x379   : > { %1161 = vmatmul.msk.f32.vlgmr.msrb.gmra.mxu2 %vm633_vm1, %v835_v7 }
 0x37a   : > { %v1212_v13 = vpop.eup %1211  ;;  %v839_v14 = vmul.f32 %v1210_v6, %v838_v11 }
 0x37b   : > { %v807_v16 = vmul.f32 %v1212_v13, %v784_v3  ;;  %vm812_vm11 = vweird.f32 %v1212_v13 }
 0x37c   : > { %v840_v2 = vadd.f32 %v1210_v6, %v839_v14  ;;  %vm813_vm13 = vmor %vm811_vm12, %vm812_vm11 }
 0x37d   : > { %v808_v18 = vsub.f32 1.0, %v807_v16 }
 0x37e   : > { %v844_v5 = vsel %vm843_vm9, %v1210_v6, %v840_v2 }
 0x37f   : > { %v809_v19 = vmul.f32 %v1212_v13, %v808_v18  ;;  %v849_v20 = vsel %vm846_vm10, %v848_v17, %v844_v5 }
 0x380   : > { %v850_v21 = vmul.f32 %v1202_v45, %v849_v20  ;;  %v962_v45 = vld [vmem:[%s1522_s7 + $0x10] sm:$0xff] }
 0x381   : > { %v810_v0 = vadd.f32 %v1212_v13, %v809_v19  ;;  %v514_v22 = vpop.permute.xlu0 %513  ;;  %985 = vmatpush.msra.mxu0 %v962_v45 }
 0x382   : > { %938 = vmatpush.msrb.mxu3 %v514_v22 }
 0x383   : > { %1162 = vmatmul.msk.f32.vlgmr.msrb.gmra.mxu3 %vm633_vm1, %v850_v21  ;;  %v814_v24 = vsel %vm813_vm13, %v1212_v13, %v810_v0  ;;  %986 = vmatpush.msra.mxu0 %v961_v46 }
 0x384   : > { %v819_v26 = vsel %vm816_vm14, %v818_v25, %v814_v24 }
 0x385   : > { %v820_v28 = vmul.f32 %v1464_v47, %v819_v26  ;;  %v960_v47 = vld [vmem:[%s1522_s7] sm:$0xff] }
 0x386   : > { %987 = vmatpush.msra.mxu0 %v960_v47 }
 0x38b   : > { %v508_v27 = vpop.permute.xlu1 %507 }
 0x38c   : > { %892 = vmatpush.msrb.mxu1 %v508_v27 }
 0x38d   : > { %1160 = vmatmul.msk.f32.vlgmr.msrb.gmra.mxu1 %vm633_vm1, %v820_v28 }
 0x3dd   : > { %v781_v29 = vpop.xlane.xlu0 %780 }
 0x3de   : > { %1213 = vrcp.f32 %v781_v29  ;;  %v802_v33 = vand.u32 2147483648, %v781_v29  ;;  %v800_v35 = vand.u32 2147483647, %v781_v29  ;;  %vm796_vm0 = vweird.f32 %v781_v29 }
 0x3e0   : > { %v803_v37 = vor.u32 1.1754944e-38, %v802_v33  ;;  %vm801_vm3 = vcmp.eq.f32.partialorder %v800_v35, 8.507059e+37 }
 0x3e4   : > { %v1214_v30 = vpop.eup %1213 }
 0x3e5   : > { %v792_v31 = vmul.f32 %v1214_v30, %v781_v29  ;;  %vm797_vm15 = vweird.f32 %v1214_v30 }
 0x3e6   : > { %vm798_vm2 = vmor %vm796_vm0, %vm797_vm15 }
 0x3e7   : > { %v793_v32 = vsub.f32 1.0, %v792_v31 }
 0x3e9   : > { %v794_v34 = vmul.f32 %v1214_v30, %v793_v32 }
 0x3eb   : > { %v795_v36 = vadd.f32 %v1214_v30, %v794_v34 }
 0x3ed   : > { %v799_v38 = vsel %vm798_vm2, %v1214_v30, %v795_v36 }
 0x3ee   : > { %v804_v39 = vsel %vm801_vm3, %v803_v37, %v799_v38 }
 0x3ef   : > { %v805_v40 = vmul.f32 %v1471_v53, %v804_v39 }
 0x3f1   : > { %1159 = vmatmul.msk.f32.vlgmr.msrb.gmra.mxu0 %vm633_vm1, %v805_v40 }
 0x3fc   : > { %v917_v41 = vpop.f32.mrf.mxu2 }
 0x3fd   : > { %948 = vrot.lane.b32.xlu1 %v917_v41, %s1245_s24 }
 0x406   : > { %v940_v43 = vpop.f32.mrf.mxu3 }
 0x40a   : > { %v894_v42 = vpop.f32.mrf.mxu1 }
 0x40b   : > { %944 = vrot.lane.b32.xlu2 %v894_v42, %s1242_s27 }
 0x413   : > { %952 = vrot.lane.b32.xlu2 %v940_v43, %s1246_s25  ;;  %s481_s25 = scalar_lea.vmem %s1525_s10, %s1320_s17 }
 0x465   : > { %v945_v48 = vpop.permute.xlu2 %944 }
 0x46d   : > { %v953_v52 = vpop.permute.xlu2 %952 }
 0x46e   : > { %v871_v49 = vpop.f32.mrf.mxu0 }
 0x46f   : > { %v955_v50 = vsel %vm633_vm1, %v871_v49, %v945_v48  ;;  %v949_v51 = vpop.permute.xlu1 %948 }
 0x470   : > { %v957_v53 = vsel %vm956_vm4, %v955_v50, %v949_v51 }
 0x471   : > { %v959_v54 = vsel %vm958_vm5, %v957_v53, %v953_v52 }
 0x472   : > { %1163 = vmatmul.msk.f32.vlgmr.msra.gmra.mxu0 %vm968_vm6, %v959_v54 }
 0x4ef   : > { %v989_v56 = vpop.f32.mrf.mxu0 }
 0x4f0   : > { %v990_v58 = vadd.f32 %v1198_v55, %v989_v56 }
 0x4f2   : > { %v993_v59 = vadd.f32 %v992_v57, %v990_v58 }
 0x4f4   : > { %994 = vst.msk [vmem:[%s481_s25] sm:$0xff] %vm968_vm6, %v993_v59 }
 0x4f5 PF: > { %s20_s15 = sadd.s32 1, %s1237_s15   ;;  %s1526_s13 = smov %s1233_s14 }
 0x4f6   : > { %p17_p5 = scmp.ge.s32.totalorder %s20_s15, 4   ;;  %s1527_s14 = smov %s1529_s16 }
 0x4f8   :  { %19 = sbr.rel (!%p17_p5) target bundleno = 2 (0x2), region = 105 }

// kernel: esm_encoder_forward.17
= control target key start
LH: loop header
LB: loop body
LE: loop exit
PB: predicated region body
PF: predicated region fallthrough
CT: control target
= control target key end

     0   :  { %vm17_vm0 = vcmask 261120   ;;  %s184_s0 = inlined_call_operand.vmem [shape: f32[16,32], index: 0, kind: input, shape index: {}]   ;;  %s185_s1 = inlined_call_operand.vmem [shape: f32[1,32], index: 1, kind: input, shape index: {}]   ;;  %s186_s2 = inlined_call_operand.vmem [shape: f32[1,32], index: 2, kind: input, shape index: {}]   ;;  %s187_s3 = inlined_call_operand.hbm [shape: f32[16,32], index: 3, kind: output, shape index: {}]  }
   0x1   :  { %v15_v0 = vld [vmem:[%s184_s0] sm:$0xff] }
   0x2   :  { %v18_v1 = vsel %vm17_vm0, %v15_v0, 0.0 }
   0x3   :  { %8 = vsyncpa [#allocation3], 0  ;;  %19 = vadd.xlane.f32.xlu0 %v18_v1  ;;  %v16_v2 = vld [vmem:[%s184_s0 + $0x8] sm:$0xff]  ;;  %v139_v4 = vmov 32.0   ;;  %v105_v35 = vld [vmem:[%s185_s1] ss:$0 sm:$0xff] }
   0x4   :  { %v21_v3 = vsel %vm17_vm0, %v16_v2, 0.0  ;;  %107 = vrcp.f32 %v139_v4  ;;  %v106_v39 = vld [vmem:[%s186_s2] ss:$0 sm:$0xff]  ;;  %s140_s1 = smov [#allocation2]   ;;  %s89_s22 = sshll.u32 %s187_s3, 4  ;;  %s90_s22 = int_to_ptr.hbm [resolvable:$true] %s89_s22 }
   0x5   :  { %s87_s19 = sshll.u32 %s140_s1, 4  ;;  %s141_s2 = smov 128   ;;  %s88_s19 = int_to_ptr.vmem [resolvable:$true] %s87_s19 }
   0x6   :  { %s142_s23 = smov 8  }
   0xa   :  { %v108_v5 = vpop.eup %107 }
   0xb   :  { %22 = vadd.xlane.f32.xlu0 %v21_v3  ;;  %v25_v6 = vmul.f32 32.0, %v108_v5  ;;  %vm29_vm1 = vweird.f32 %v108_v5 }
   0xd   :  { %v26_v7 = vsub.f32 1.0, %v25_v6 }
   0xf   :  { %v27_v8 = vmul.f32 %v108_v5, %v26_v7 }
  0x11   :  { %v28_v9 = vadd.f32 %v108_v5, %v27_v8 }
  0x13   :  { %v30_v10 = vsel %vm29_vm1, %v108_v5, %v28_v9 }
  0x76   :  { %v20_v11 = vpop.xlane.xlu0 %19 }
  0x77   :  { %v31_v12 = vmul.f32 %v30_v10, %v20_v11 }
  0x79   :  { %v33_v13 = vsub.f32 %v15_v0, %v31_v12 }
  0x7b   :  { %v35_v14 = vmul.f32 %v33_v13, %v33_v13 }
  0x7d   :  { %v37_v15 = vsel %vm17_vm0, %v35_v14, 0.0 }
  0x7e   :  { %38 = vadd.xlane.f32.xlu1 %v37_v15  ;;  %v23_v16 = vpop.xlane.xlu0 %22 }
  0x7f   :  { %v32_v17 = vmul.f32 %v30_v10, %v23_v16 }
  0x81   :  { %v34_v18 = vsub.f32 %v16_v2, %v32_v17 }
  0x83   :  { %v36_v19 = vmul.f32 %v34_v18, %v34_v18 }
  0x85   :  { %v40_v20 = vsel %vm17_vm0, %v36_v19, 0.0 }
  0x86   :  { %41 = vadd.xlane.f32.xlu1 %v40_v20 }
  0xf1   :  { %v39_v21 = vpop.xlane.xlu1 %38 }
  0xf2   :  { %v43_v22 = vmul.f32 %v39_v21, %v30_v10 }
  0xf4   :  { %v45_v23 = vadd.f32 1e-05, %v43_v22 }
  0xf6   :  { %109 = vrsqrt.f32 %v45_v23  ;;  %vm53_vm3 = vweird.f32 %v45_v23 }
  0xf9   :  { %v42_v24 = vpop.xlane.xlu1 %41 }
  0xfa   :  { %v44_v25 = vmul.f32 %v42_v24, %v30_v10 }
  0xfc   :  { %v110_v26 = vpop.eup %109  ;;  %v46_v27 = vadd.f32 1e-05, %v44_v25 }
  0xfd   :  { %v48_v28 = vmul.f32 %v110_v26, %v45_v23  ;;  %vm54_vm2 = vweird.f32 %v110_v26 }
  0xfe   :  { %111 = vrsqrt.f32 %v46_v27  ;;  %vm55_vm4 = vmor %vm53_vm3, %vm54_vm2  ;;  %vm63_vm6 = vweird.f32 %v46_v27 }
  0xff   :  { %v49_v29 = vmul.f32 %v110_v26, %v48_v28 }
 0x101   :  { %v50_v30 = vmul.f32 0.5, %v49_v29 }
 0x103   :  { %v51_v31 = vsub.f32 1.5, %v50_v30 }
 0x104   :  { %v112_v32 = vpop.eup %111 }
 0x105   :  { %v52_v33 = vmul.f32 %v110_v26, %v51_v31  ;;  %v58_v34 = vmul.f32 %v112_v32, %v46_v27  ;;  %vm64_vm5 = vweird.f32 %v112_v32 }
 0x106   :  { %vm65_vm7 = vmor %vm63_vm6, %vm64_vm5 }
 0x107   :  { %v56_v36 = vsel %vm55_vm4, %v110_v26, %v52_v33  ;;  %v59_v37 = vmul.f32 %v112_v32, %v58_v34 }
 0x108   :  { %v67_v38 = vmul.f32 %v56_v36, %v33_v13 }
 0x109   :  { %v60_v40 = vmul.f32 0.5, %v59_v37 }
 0x10a   :  { %v73_v41 = vmul.f32 %v105_v35, %v67_v38 }
 0x10b   :  { %v61_v42 = vsub.f32 1.5, %v60_v40 }
 0x10c   :  { %v79_v43 = vadd.f32 %v106_v39, %v73_v41 }
 0x10d   :  { %v62_v44 = vmul.f32 %v112_v32, %v61_v42 }
 0x10e   :  { %81 = vst.msk [vmem:[#allocation2] sm:$0xff] %vm17_vm0, %v79_v43 }
 0x10f   :  { %v66_v45 = vsel %vm65_vm7, %v112_v32, %v62_v44 }
 0x110   :  { %v68_v46 = vmul.f32 %v66_v45, %v34_v18 }
 0x112   :  { %v74_v47 = vmul.f32 %v105_v35, %v68_v46 }
 0x114   :  { %v80_v48 = vadd.f32 %v106_v39, %v74_v47 }
 0x116   :  { %82 = vst.msk [vmem:[#allocation2 + $0x8] sm:$0xff] %vm17_vm0, %v80_v48 }
 0x117   :  { %95 = dma.vmem_to_hbm [thread:$0]  %s88_s19, 256, %s90_s22, [#allocation3], %s141_s2, %s141_s2, %s142_s23  }
 0x118   :  { %137 = dma.done.wait [#allocation3], 256  }
 0x119   :  { %138 = vsyncadd [#allocation3], 4294967040 }
 0x11a   :  { %100 = vsyncpa [#allocation3], 1 }

</bundles_post_ra>
